<compile_context>
chip_gen: v6e
topology: v6e:2x2x1
jax: 0.10.0
libtpu: 0.0.40
codegen_flags: <defaults>
</compile_context>

<pallas_src>
import functools

import jax
import jax.numpy as jnp
import numpy as np
from jax.experimental import pallas as pl
from jax.experimental.pallas import tpu as pltpu


def _tile(n, prefs):
    """Pick the largest preferred tile that divides n, else use the full dim."""
    for t in prefs:
        if n % t == 0:
            return t
    return n


def _cp(*semantics, vmem_bytes=64 * 1024 * 1024):
    return pltpu.CompilerParams(dimension_semantics=semantics,
                                vmem_limit_bytes=vmem_bytes)


# ----------------------------------------------------------------------------
# Pallas kernels
# ----------------------------------------------------------------------------
def _adaln_kernel(c_ref, w_ref, b_ref, o_ref):
    # adaLN_modulation = Linear(SiLU(clip)); output-column tiled (weights streamed once).
    c = c_ref[...]
    h = (c * jax.nn.sigmoid(c)).astype(jnp.bfloat16)
    o_ref[...] = jnp.dot(h, w_ref[...], preferred_element_type=jnp.float32) + b_ref[...]


def adaln_modulation(clip, w_bf16, b):
    B, D = clip.shape
    D6 = w_bf16.shape[1]
    tn = _tile(D6, (1024, 512, 256, 128))
    return pl.pallas_call(
        _adaln_kernel,
        grid=(D6 // tn,),
        in_specs=[pl.BlockSpec((B, D), lambda n: (0, 0)),
                  pl.BlockSpec((D, tn), lambda n: (0, n)),
                  pl.BlockSpec((1, tn), lambda n: (0, n))],
        out_specs=pl.BlockSpec((B, tn), lambda n: (0, n)),
        out_shape=jax.ShapeDtypeStruct((B, D6), jnp.float32),
        compiler_params=_cp("parallel", vmem_bytes=32 * 1024 * 1024),
    )(clip, w_bf16, b)


def _ln_qkv_kernel(x_ref, sc_ref, sh_ref, w_ref, b_ref, g_ref, o_ref):
    # LayerNorm(eps=1e-6, no affine) -> modulate -> one of {q,k,v} projection
    # (selected by OUTERMOST grid axis p, so the weight block stays VMEM-resident
    # across all token tiles) -> RMSNorm(eps=1e-5) for q,k only (skipped for v).
    p = pl.program_id(0)
    x = x_ref[0]                                   # (ts, D) f32
    mu = jnp.mean(x, axis=-1, keepdims=True)
    xc = x - mu
    xn = xc * jax.lax.rsqrt(jnp.mean(xc * xc, axis=-1, keepdims=True) + 1e-6)
    xm = (xn * (1.0 + sc_ref[0]) + sh_ref[0]).astype(jnp.bfloat16)
    y = jnp.dot(xm, w_ref[...], preferred_element_type=jnp.float32) + b_ref[...]

    @pl.when(p < 2)
    def _():
        rms = jax.lax.rsqrt(jnp.mean(y * y, axis=-1, keepdims=True) + 1e-5)
        o_ref[0, 0] = (y * rms * g_ref[0]).astype(o_ref.dtype)

    @pl.when(p == 2)
    def _():
        o_ref[0, 0] = y.astype(o_ref.dtype)


def ln_mod_qkv(img, scale, shift, wqkv_bf16, bqkv, gains):
    # Returns q/k/v stacked along a leading axis: (3, B, S, inner) in bf16.
    B, S, D = img.shape
    I = wqkv_bf16.shape[1] // 3
    ts = _tile(S, (512, 256, 128))
    return pl.pallas_call(
        _ln_qkv_kernel,
        grid=(3, B, S // ts),                       # p OUTERMOST: weights fetched 3x total
        in_specs=[
            pl.BlockSpec((1, ts, D), lambda p, b, s: (b, s, 0)),
            pl.BlockSpec((1, 1, D), lambda p, b, s: (b, 0, 0)),
            pl.BlockSpec((1, 1, D), lambda p, b, s: (b, 0, 0)),
            pl.BlockSpec((D, I), lambda p, b, s: (0, p)),
            pl.BlockSpec((1, I), lambda p, b, s: (0, p)),
            pl.BlockSpec((1, 1, I), lambda p, b, s: (p, 0, 0)),
        ],
        out_specs=pl.BlockSpec((1, 1, ts, I), lambda p, b, s: (p, b, s, 0)),
        out_shape=jax.ShapeDtypeStruct((3, B, S, I), jnp.bfloat16),
        compiler_params=_cp("parallel", "parallel", "parallel"),
    )(img, scale, shift, wqkv_bf16, bqkv, gains)


def _flash_attn_kernel(q_ref, k_ref, v_ref, o_ref, m_sc, l_sc, acc_sc):
    # Online-softmax flash attention; 1/sqrt(hd) is pre-folded into q.
    ki = pl.program_id(3)

    @pl.when(ki == 0)
    def _():
        m_sc[...] = jnp.full_like(m_sc, -jnp.inf)
        l_sc[...] = jnp.zeros_like(l_sc)
        acc_sc[...] = jnp.zeros_like(acc_sc)

    q = q_ref[0, 0]                                # (tq, hd) bf16 (pre-scaled)
    k = k_ref[0, 0]                                # (tk, hd) bf16
    v = v_ref[0, 0]
    s = jax.lax.dot_general(q, k, (((1,), (1,)), ((), ())),
                            preferred_element_type=jnp.float32)
    m_prev = m_sc[...]
    m_new = jnp.maximum(m_prev, jnp.max(s, axis=-1, keepdims=True))
    alpha = jnp.exp(m_prev - m_new)
    p = jnp.exp(s - m_new)
    l_sc[...] = alpha * l_sc[...] + jnp.sum(p, axis=-1, keepdims=True)
    acc_sc[...] = alpha * acc_sc[...] + jnp.dot(p.astype(jnp.bfloat16), v,
                                                preferred_element_type=jnp.float32)
    m_sc[...] = m_new

    @pl.when(ki == pl.num_programs(3) - 1)
    def _():
        o_ref[0, 0] = (acc_sc[...] *
                       pl.reciprocal(l_sc[...], approx=True)).astype(o_ref.dtype)


def flash_mha(q, k, v):
    # q, k, v: (B, H, S, hd) bf16 (q pre-scaled by 1/sqrt(hd)) -> (B, H, S, hd) bf16
    B, H, S, hd = q.shape
    tq = _tile(S, (512, 256, 128))
    tk = _tile(S, (512, 256, 128))
    q_spec = pl.BlockSpec((1, 1, tq, hd), lambda b, h, qi, ki: (b, h, qi, 0))
    kv_spec = pl.BlockSpec((1, 1, tk, hd), lambda b, h, qi, ki: (b, h, ki, 0))
    return pl.pallas_call(
        _flash_attn_kernel,
        grid=(B, H, S // tq, S // tk),
        in_specs=[q_spec, kv_spec, kv_spec],
        out_specs=q_spec,
        out_shape=jax.ShapeDtypeStruct((B, H, S, hd), jnp.bfloat16),
        scratch_shapes=[pltpu.VMEM((tq, 1), jnp.float32),
                        pltpu.VMEM((tq, 1), jnp.float32),
                        pltpu.VMEM((tq, hd), jnp.float32)],
        compiler_params=_cp("parallel", "parallel", "parallel", "arbitrary"),
    )(q, k, v)


def _proj_res_kernel(o_ref, w_ref, b_ref, x_ref, g_ref, out_ref):
    # out = img + (attn @ wo + bo) * gate   (gated residual fused as epilogue)
    y = jnp.dot(o_ref[0], w_ref[...], preferred_element_type=jnp.float32) + b_ref[...]
    out_ref[0] = x_ref[0] + y * g_ref[0]


def out_proj_residual(o_bf16, wo_bf16, bo, img, gate):
    # Whole (I, D) wo block stays VMEM-resident (constant index map); fetched once.
    B, S, I = o_bf16.shape
    D = wo_bf16.shape[1]
    ts = _tile(S, (512, 256, 128))
    return pl.pallas_call(
        _proj_res_kernel,
        grid=(B, S // ts),
        in_specs=[
            pl.BlockSpec((1, ts, I), lambda b, s: (b, s, 0)),
            pl.BlockSpec((I, D), lambda b, s: (0, 0)),
            pl.BlockSpec((1, D), lambda b, s: (0, 0)),
            pl.BlockSpec((1, ts, D), lambda b, s: (b, s, 0)),
            pl.BlockSpec((1, 1, D), lambda b, s: (b, 0, 0)),
        ],
        out_specs=pl.BlockSpec((1, ts, D), lambda b, s: (b, s, 0)),
        out_shape=jax.ShapeDtypeStruct((B, S, D), jnp.float32),
        compiler_params=_cp("parallel", "parallel"),
    )(o_bf16, wo_bf16, bo, img, gate)


def _ln_gate_kernel(x_ref, sc_ref, sh_ref, gw_ref, xn_ref, probs_ref):
    # Pre-FFN LayerNorm + modulate (emitted as bf16 for all downstream matmuls)
    # fused with the MoE gate logits + exact softmax.
    x = x_ref[0]
    mu = jnp.mean(x, axis=-1, keepdims=True)
    xc = x - mu
    xn = xc * jax.lax.rsqrt(jnp.mean(xc * xc, axis=-1, keepdims=True) + 1e-6)
    xm = (xn * (1.0 + sc_ref[0]) + sh_ref[0]).astype(jnp.bfloat16)
    xn_ref[0] = xm
    logits = jnp.dot(xm, gw_ref[...], preferred_element_type=jnp.float32)
    m = jnp.max(logits, axis=-1, keepdims=True)
    e = jnp.exp(logits - m)
    probs_ref[0] = e / jnp.sum(e, axis=-1, keepdims=True)


def ln_mod_gate(img, scale, shift, gate_w_bf16):
    B, S, D = img.shape
    E = gate_w_bf16.shape[1]
    ts = _tile(S, (512, 256, 128))
    return pl.pallas_call(
        _ln_gate_kernel,
        grid=(B, S // ts),
        in_specs=[
            pl.BlockSpec((1, ts, D), lambda b, s: (b, s, 0)),
            pl.BlockSpec((1, 1, D), lambda b, s: (b, 0, 0)),
            pl.BlockSpec((1, 1, D), lambda b, s: (b, 0, 0)),
            pl.BlockSpec((D, E), lambda b, s: (0, 0)),
        ],
        out_specs=[pl.BlockSpec((1, ts, D), lambda b, s: (b, s, 0)),
                   pl.BlockSpec((1, ts, E), lambda b, s: (b, s, 0))],
        out_shape=[jax.ShapeDtypeStruct((B, S, D), jnp.bfloat16),
                   jax.ShapeDtypeStruct((B, S, E), jnp.float32)],
        compiler_params=_cp("parallel", "parallel", vmem_bytes=32 * 1024 * 1024),
    )(img, scale, shift, gate_w_bf16)


def _moe_kernel(x_ref, w1_ref, w3_ref, w2_ref, we_ref, out_ref, acc_ref):
    # Routed experts: accumulate sum_e w_e(token) * SwiGLU_e(x) over expert and
    # hidden-tile grid axes; unselected experts carry weight 0 exactly.
    # Routing weight is applied to the (tm, th) hidden activation before the w2
    # matmul (broadcast over th, not D) so the accumulate is a plain add.
    e = pl.program_id(1)
    h = pl.program_id(2)

    @pl.when((e == 0) & (h == 0))
    def _():
        acc_ref[...] = jnp.zeros_like(acc_ref)

    x = x_ref[...]                                  # (tm, D) bf16
    h1 = jnp.dot(x, w1_ref[0], preferred_element_type=jnp.float32)
    h3 = jnp.dot(x, w3_ref[0], preferred_element_type=jnp.float32)
    hh = ((h1 * jax.nn.sigmoid(h1) * h3) * we_ref[0]).astype(jnp.bfloat16)
    acc_ref[...] += jnp.dot(hh, w2_ref[0], preferred_element_type=jnp.float32)

    @pl.when((e == pl.num_programs(1) - 1) & (h == pl.num_programs(2) - 1))
    def _():
        out_ref[...] = acc_ref[...]


def moe_routed(xn2d_bf16, w1_bf16, w3_bf16, w2_bf16, wexp):
    N, D = xn2d_bf16.shape
    E, _, Hh = w1_bf16.shape
    tm = _tile(N, (1024, 512, 256, 128))            # big token tile amortizes weight streams
    th = _tile(Hh, (512, 256, 128))
    return pl.pallas_call(
        _moe_kernel,
        grid=(N // tm, E, Hh // th),
        in_specs=[
            pl.BlockSpec((tm, D), lambda m, e, h: (m, 0)),
            pl.BlockSpec((1, D, th), lambda m, e, h: (e, 0, h)),
            pl.BlockSpec((1, D, th), lambda m, e, h: (e, 0, h)),
            pl.BlockSpec((1, th, D), lambda m, e, h: (e, h, 0)),
            pl.BlockSpec((1, tm, 1), lambda m, e, h: (e, m, 0)),
        ],
        out_specs=pl.BlockSpec((tm, D), lambda m, e, h: (m, 0)),
        out_shape=jax.ShapeDtypeStruct((N, D), jnp.float32),
        scratch_shapes=[pltpu.VMEM((tm, D), jnp.float32)],
        compiler_params=_cp("parallel", "arbitrary", "arbitrary"),
    )(xn2d_bf16, w1_bf16, w3_bf16, w2_bf16, wexp)


def _shared_combine_kernel(x_ref, w1_ref, w3_ref, w2_ref, r_ref, img_ref, g_ref,
                           out_ref, acc_ref):
    # Shared-expert SwiGLU (hidden-tiled) + add routed output + gated residual.
    h = pl.program_id(2)

    @pl.when(h == 0)
    def _():
        acc_ref[...] = jnp.zeros_like(acc_ref)

    x = x_ref[0]                                    # (ts, D) bf16
    h1 = jnp.dot(x, w1_ref[...], preferred_element_type=jnp.float32)
    h3 = jnp.dot(x, w3_ref[...], preferred_element_type=jnp.float32)
    hh = (h1 * jax.nn.sigmoid(h1) * h3).astype(jnp.bfloat16)
    acc_ref[...] += jnp.dot(hh, w2_ref[...], preferred_element_type=jnp.float32)

    @pl.when(h == pl.num_programs(2) - 1)
    def _():
        out_ref[0] = img_ref[0] + (acc_ref[...] + r_ref[0]) * g_ref[0]


def shared_combine(xn_bf16, w1_bf16, w3_bf16, w2_bf16, routed, img, gate):
    B, S, D = img.shape
    Hs = w1_bf16.shape[1]
    ts = _tile(S, (512, 256, 128))                  # bigger token tile -> fewer weight streams
    th = _tile(Hs, (512, 256, 128))
    return pl.pallas_call(
        _shared_combine_kernel,
        grid=(B, S // ts, Hs // th),
        in_specs=[
            pl.BlockSpec((1, ts, D), lambda b, s, h: (b, s, 0)),
            pl.BlockSpec((D, th), lambda b, s, h: (0, h)),
            pl.BlockSpec((D, th), lambda b, s, h: (0, h)),
            pl.BlockSpec((th, D), lambda b, s, h: (h, 0)),
            pl.BlockSpec((1, ts, D), lambda b, s, h: (b, s, 0)),
            pl.BlockSpec((1, ts, D), lambda b, s, h: (b, s, 0)),
            pl.BlockSpec((1, 1, D), lambda b, s, h: (b, 0, 0)),
        ],
        out_specs=pl.BlockSpec((1, ts, D), lambda b, s, h: (b, s, 0)),
        out_shape=jax.ShapeDtypeStruct((B, S, D), jnp.float32),
        scratch_shapes=[pltpu.VMEM((ts, D), jnp.float32)],
        compiler_params=_cp("parallel", "parallel", "arbitrary"),
    )(xn_bf16, w1_bf16, w3_bf16, w2_bf16, routed, img, gate)


# ----------------------------------------------------------------------------
# Glue (rope, params, full forward)
# ----------------------------------------------------------------------------
def build_rope(B, S, hd, theta=10000.0):
    pos = jnp.arange(S, dtype=jnp.float32)
    scale = jnp.arange(0, hd, 2, dtype=jnp.float32) / hd
    omega = 1.0 / (theta ** scale)
    ang = pos[:, None] * omega[None, :]                       # (S, hd/2)
    cos, sin = jnp.cos(ang), jnp.sin(ang)
    rot = jnp.stack([jnp.stack([cos, -sin], -1),
                     jnp.stack([sin, cos], -1)], -2)          # (S, hd/2, 2, 2)
    return jnp.broadcast_to(rot[None, :, None], (B, S, 1, hd // 2, 2, 2))


def apply_rope(xq, xk, freqs):
    B, S, H, hd = xq.shape
    xq_ = xq.reshape(B, S, H, hd // 2, 1, 2)
    xk_ = xk.reshape(B, S, H, hd // 2, 1, 2)
    xq_out = freqs[..., 0] * xq_[..., 0] + freqs[..., 1] * xq_[..., 1]
    xk_out = freqs[..., 0] * xk_[..., 0] + freqs[..., 1] * xk_[..., 1]
    return xq_out.reshape(B, S, H, hd), xk_out.reshape(B, S, H, hd)


def swiglu_hidden(hidden_dim, multiple_of=256):
    hidden_dim = int(2 * hidden_dim / 3)
    return multiple_of * ((hidden_dim + multiple_of - 1) // multiple_of)


def init_params(key, dim, heads, head_dim, num_routed_experts=4):
    inner = heads * head_dim
    assert inner == dim, "HiDream blocks assume inner_dim == dim"
    h_sh = swiglu_hidden((4 * dim) // 2)
    h_ex = swiglu_hidden(4 * dim)
    keys = iter(jax.random.split(key, 64))

    def rnd(shape, scale=0.02):
        return jax.random.normal(next(keys), shape, jnp.float32) * scale

    p = {}
    p["mod_w"] = rnd((dim, 6 * dim)); p["mod_b"] = rnd((1, 6 * dim), 0.02)
    p["wq"] = rnd((dim, inner)); p["bq"] = rnd((1, inner), 0.01)
    p["wk"] = rnd((inner, inner)); p["bk"] = rnd((1, inner), 0.01)
    p["wv"] = rnd((inner, inner)); p["bv"] = rnd((1, inner), 0.01)
    p["wo"] = rnd((inner, dim)); p["bo"] = rnd((1, dim), 0.01)
    p["gq"] = 1.0 + rnd((1, inner), 0.1)
    p["gk"] = 1.0 + rnd((1, inner), 0.1)
    p["sh_w1"] = rnd((dim, h_sh)); p["sh_w3"] = rnd((dim, h_sh)); p["sh_w2"] = rnd((h_sh, dim))
    p["ex_w1"] = rnd((num_routed_experts, dim, h_ex))
    p["ex_w3"] = rnd((num_routed_experts, dim, h_ex))
    p["ex_w2"] = rnd((num_routed_experts, h_ex, dim))
    p["gate_w"] = rnd((dim, num_routed_experts), 0.1)
    return p


def hd_block_single(params, img, clip, rope, heads, head_dim, num_activated_experts=2):
    B, S, D = img.shape
    inner = heads * head_dim
    bf = jnp.bfloat16

    # bf16 weight casts happen once at the pallas_call boundary (f32 accumulation inside).
    mod_w = params["mod_w"].astype(bf)
    wqkv = jnp.concatenate([params["wq"], params["wk"], params["wv"]], axis=1).astype(bf)
    bqkv = jnp.concatenate([params["bq"], params["bk"], params["bv"]], axis=1)
    gains = jnp.stack([params["gq"], params["gk"], jnp.ones_like(params["gq"])], axis=0)
    wo = params["wo"].astype(bf)
    gate_w = params["gate_w"].astype(bf)
    ex_w1 = params["ex_w1"].astype(bf)
    ex_w3 = params["ex_w3"].astype(bf)
    ex_w2 = params["ex_w2"].astype(bf)
    sh_w1 = params["sh_w1"].astype(bf)
    sh_w3 = params["sh_w3"].astype(bf)
    sh_w2 = params["sh_w2"].astype(bf)

    # adaLN modulation -> 6 chunks of (B, 1, D)
    mod = adaln_modulation(clip, mod_w, params["mod_b"])[:, None, :]
    (msa_shift, msa_scale, msa_gate,
     mlp_shift, mlp_scale, mlp_gate) = jnp.split(mod, 6, axis=-1)

    # ---- attention branch (LN + modulate + fused QKV + RMSNorm in one kernel) ----
    qkv = ln_mod_qkv(img, msa_scale, msa_shift, wqkv, bqkv, gains)   # (3,B,S,inner) bf16
    q = qkv[0].reshape(B, S, heads, head_dim)
    k = qkv[1].reshape(B, S, heads, head_dim)
    v = qkv[2].reshape(B, S, heads, head_dim)
    q, k = apply_rope(q, k, rope)                                    # promotes to f32
    scale = 1.0 / float(np.sqrt(head_dim))
    qh = (q * scale).astype(bf).transpose(0, 2, 1, 3)                # fold 1/sqrt(hd) into q
    kh = k.astype(bf).transpose(0, 2, 1, 3)
    vh = v.transpose(0, 2, 1, 3)
    o = flash_mha(qh, kh, vh)                                        # (B,H,S,hd) bf16
    o = o.transpose(0, 2, 1, 3).reshape(B, S, inner)
    img = out_proj_residual(o, wo, params["bo"], img, msa_gate)      # fused gated residual

    # ---- MoE SwiGLU feed-forward branch ----
    xn, probs = ln_mod_gate(img, mlp_scale, mlp_shift, gate_w)       # bf16 norm + gate probs
    N = B * S
    E = params["ex_w1"].shape[0]
    topk_w, topk_idx = jax.lax.top_k(probs.reshape(N, E), k=num_activated_experts)
    onehot = jax.nn.one_hot(topk_idx, E, dtype=jnp.float32)          # (N, k, E)
    wexp = jnp.einsum("nk,nke->en", topk_w, onehot)[..., None]       # (E, N, 1)

    routed = moe_routed(xn.reshape(N, D), ex_w1, ex_w3, ex_w2, wexp) # (N, D) f32
    img = shared_combine(xn, sh_w1, sh_w3, sh_w2,
                         routed.reshape(B, S, D), img, mlp_gate)     # + shared + residual
    return img


# ----------------------------------------------------------------------------
# Pure-JAX reference (for correctness check)
# ----------------------------------------------------------------------------
def reference_forward(params, img, clip, rope, heads, head_dim, num_activated_experts=2):
    B, S, D = img.shape
    inner = heads * head_dim
    mod = (jax.nn.silu(clip) @ params["mod_w"] + params["mod_b"])[:, None, :]
    (msa_shift, msa_scale, msa_gate,
     mlp_shift, mlp_scale, mlp_gate) = jnp.split(mod, 6, axis=-1)

    def ln(x):
        mu = jnp.mean(x, -1, keepdims=True)
        xc = x - mu
        return xc * jax.lax.rsqrt(jnp.mean(xc * xc, -1, keepdims=True) + 1e-6)

    def rms(x, g):
        return x * jax.lax.rsqrt(jnp.mean(x * x, -1, keepdims=True) + 1e-5) * g

    xn = ln(img) * (1 + msa_scale) + msa_shift
    q = rms(xn @ params["wq"] + params["bq"], params["gq"]).reshape(B, S, heads, head_dim)
    k = rms(xn @ params["wk"] + params["bk"], params["gk"]).reshape(B, S, heads, head_dim)
    v = (xn @ params["wv"] + params["bv"]).reshape(B, S, heads, head_dim)
    q, k = apply_rope(q, k, rope)
    qh, kh, vh = (t.transpose(0, 2, 1, 3) for t in (q, k, v))
    s = jnp.einsum("bhqd,bhkd->bhqk", qh, kh) / jnp.sqrt(jnp.float32(head_dim))
    o = jnp.einsum("bhqk,bhkd->bhqd", jax.nn.softmax(s, -1), vh)
    o = o.transpose(0, 2, 1, 3).reshape(B, S, inner)
    attn_out = o @ params["wo"] + params["bo"]
    img = img + attn_out * msa_gate

    xn2 = ln(img) * (1 + mlp_scale) + mlp_shift
    xf = xn2.reshape(B * S, D)

    def swiglu(x, w1, w3, w2):
        h1 = x @ w1
        return (jax.nn.silu(h1) * (x @ w3)) @ w2

    y_shared = swiglu(xf, params["sh_w1"], params["sh_w3"], params["sh_w2"])
    scores = jax.nn.softmax(xf @ params["gate_w"], -1)
    topk_w, topk_idx = jax.lax.top_k(scores, k=num_activated_experts)
    E = params["ex_w1"].shape[0]
    y_exp = jnp.stack([swiglu(xf, params["ex_w1"][i], params["ex_w3"][i], params["ex_w2"][i])
                       for i in range(E)], axis=0)
    N = xf.shape[0]
    sel = y_exp[topk_idx, jnp.arange(N)[:, None]]
    y_routed = jnp.sum(topk_w[..., None] * sel, axis=1)
    ff = (y_routed + y_shared).reshape(B, S, D)
    return img + ff * mlp_gate


# ----------------------------------------------------------------------------
if __name__ == "__main__":
    # Small shapes consistent with the module: dim = heads * head_dim.
    dim, heads, head_dim = 128, 4, 32
    B, S = 2, 16

    key = jax.random.PRNGKey(0)
    kp, ki, kc = jax.random.split(key, 3)
    params = init_params(kp, dim, heads, head_dim, num_routed_experts=4)
    img = jax.random.normal(ki, (B, S, dim), jnp.float32)
    clip = jax.random.normal(kc, (B, dim), jnp.float32)
    rope = build_rope(B, S, head_dim)

    fwd = jax.jit(functools.partial(hd_block_single, heads=heads, head_dim=head_dim))
    out = jax.block_until_ready(fwd(params, img, clip, rope))

    ref = reference_forward(params, img, clip, rope, heads, head_dim)
    np.testing.assert_allclose(np.asarray(out), np.asarray(ref), rtol=2e-2, atol=2e-2)

    print("KERNEL_OK")
</pallas_src>

<mosaic_0001>
module attributes {stable_mosaic.version = 11 : i64} {
  func.func @_adaln_kernel(%arg0: i32, %arg1: memref<2x128xf32, #tpu.memory_space<vmem>>, %arg2: memref<128x256xbf16, #tpu.memory_space<vmem>>, %arg3: memref<1x256xf32, #tpu.memory_space<vmem>>, %arg4: memref<2x256xf32, #tpu.memory_space<vmem>>) attributes {dimension_semantics = [#tpu.dimension_semantics<parallel>], iteration_bounds = array<i64: 3>, scalar_prefetch = 0 : i64, scratch_operands = 0 : i64, tpu.core_type = #tpu.core_type<tc>, window_params = [{pipeline_mode = #tpu.pipeline_mode<synchronous>, transform_indices = @transform_0, window_bounds = array<i64: 2, 128>}, {transform_indices = @transform_1, window_bounds = array<i64: 128, 256>}, {transform_indices = @transform_2, window_bounds = array<i64: 1, 256>}, {transform_indices = @transform_3, window_bounds = array<i64: 2, 256>}]} {
    %c0 = arith.constant 0 : index
    %c0_0 = arith.constant 0 : index
    %0 = vector.load %arg1[%c0, %c0_0] : memref<2x128xf32, #tpu.memory_space<vmem>>, vector<2x128xf32>
    %1 = arith.negf %0 : vector<2x128xf32>
    %2 = math.exp %1 : vector<2x128xf32>
    %cst = arith.constant 1.000000e+00 : f32
    %3 = vector.broadcast %cst : f32 to vector<2x128xf32>
    %4 = arith.addf %3, %2 : vector<2x128xf32>
    %5 = arith.divf %3, %4 : vector<2x128xf32>
    %6 = arith.mulf %0, %5 : vector<2x128xf32>
    %7 = arith.truncf %6 : vector<2x128xf32> to vector<2x128xbf16>
    %c0_1 = arith.constant 0 : index
    %c0_2 = arith.constant 0 : index
    %8 = vector.load %arg2[%c0_1, %c0_2] : memref<128x256xbf16, #tpu.memory_space<vmem>>, vector<128x256xbf16>
    %cst_3 = arith.constant dense<0.000000e+00> : vector<2x256xf32>
    %9 = tpu.matmul %7, %8, %cst_3 {dimension_numbers = #tpu.dot_dimension_numbers<[1], [0], [0], [1], [0, 0, 1, 1], [], []>} : vector<2x128xbf16>, vector<128x256xbf16>, vector<2x256xf32> -> vector<2x256xf32>
    %c0_4 = arith.constant 0 : index
    %c0_5 = arith.constant 0 : index
    %10 = vector.load %arg3[%c0_4, %c0_5] : memref<1x256xf32, #tpu.memory_space<vmem>>, vector<1x256xf32>
    %11 = vector.broadcast %10 : vector<1x256xf32> to vector<2x256xf32>
    %12 = arith.addf %9, %11 : vector<2x256xf32>
    %c0_6 = arith.constant 0 : index
    %c0_7 = arith.constant 0 : index
    %13 = vector.load %arg4[%c0_6, %c0_7] : memref<2x256xf32, #tpu.memory_space<vmem>>, vector<2x256xf32>
    tpu.vector_store %arg4[%c0_6, %c0_7], %12 {strides = array<i32>} : memref<2x256xf32, #tpu.memory_space<vmem>>, vector<2x256xf32>,
    return
  }
  func.func @transform_0(%arg0: i32) -> (i32, i32) {
    %c0_i32 = arith.constant 0 : i32
    %c0_i32_0 = arith.constant 0 : i32
    %c0_i32_1 = arith.constant 0 : i32
    return %c0_i32, %c0_i32_0 : i32, i32
  }
  func.func @transform_1(%arg0: i32) -> (i32, i32) {
    %c0_i32 = arith.constant 0 : i32
    %c0_i32_0 = arith.constant 0 : i32
    return %c0_i32, %arg0 : i32, i32
  }
  func.func @transform_2(%arg0: i32) -> (i32, i32) {
    %c0_i32 = arith.constant 0 : i32
    %c0_i32_0 = arith.constant 0 : i32
    return %c0_i32, %arg0 : i32, i32
  }
  func.func @transform_3(%arg0: i32) -> (i32, i32) {
    %c0_i32 = arith.constant 0 : i32
    %c0_i32_0 = arith.constant 0 : i32
    return %c0_i32, %arg0 : i32, i32
  }
}

module attributes {stable_mosaic.version = 11 : i64} {
  func.func @_ln_qkv_kernel(%arg0: i32, %arg1: i32, %arg2: i32, %arg3: memref<1x16x128xf32, #tpu.memory_space<vmem>>, %arg4: memref<1x1x128xf32, #tpu.memory_space<vmem>>, %arg5: memref<1x1x128xf32, #tpu.memory_space<vmem>>, %arg6: memref<128x128xbf16, #tpu.memory_space<vmem>>, %arg7: memref<1x128xf32, #tpu.memory_space<vmem>>, %arg8: memref<1x1x128xf32, #tpu.memory_space<vmem>>, %arg9: memref<1x1x16x128xbf16, #tpu.memory_space<vmem>>) attributes {dimension_semantics = [#tpu.dimension_semantics<parallel>, #tpu.dimension_semantics<parallel>, #tpu.dimension_semantics<parallel>], iteration_bounds = array<i64: 3, 2, 1>, scalar_prefetch = 0 : i64, scratch_operands = 0 : i64, tpu.core_type = #tpu.core_type<tc>, window_params = [{transform_indices = @transform_0, window_bounds = array<i64: 1, 16, 128>}, {transform_indices = @transform_1, window_bounds = array<i64: 1, 1, 128>}, {transform_indices = @transform_2, window_bounds = array<i64: 1, 1, 128>}, {transform_indices = @transform_3, window_bounds = array<i64: 128, 128>}, {transform_indices = @transform_4, window_bounds = array<i64: 1, 128>}, {transform_indices = @transform_5, window_bounds = array<i64: 1, 1, 128>}, {transform_indices = @transform_6, window_bounds = array<i64: 1, 1, 16, 128>}]} {
    %c0 = arith.constant 0 : index
    %c0_0 = arith.constant 0 : index
    %c0_1 = arith.constant 0 : index
    %0 = vector.load %arg3[%c0, %c0_0, %c0_1] : memref<1x16x128xf32, #tpu.memory_space<vmem>>, vector<1x16x128xf32>
    %1 = vector.shape_cast %0 : vector<1x16x128xf32> to vector<16x128xf32>
    %cst = arith.constant dense<0.000000e+00> : vector<16xf32>
    %2 = vector.multi_reduction <add>, %1, %cst [1] : vector<16x128xf32> to vector<16xf32>
    %3 = vector.shape_cast %2 : vector<16xf32> to vector<16x1xf32>
    %cst_2 = arith.constant 1.280000e+02 : f32
    %4 = vector.broadcast %cst_2 : f32 to vector<16x1xf32>
    %5 = arith.divf %3, %4 : vector<16x1xf32>
    %6 = vector.broadcast %5 : vector<16x1xf32> to vector<16x128xf32>
    %7 = arith.subf %1, %6 : vector<16x128xf32>
    %8 = arith.mulf %7, %7 : vector<16x128xf32>
    %cst_3 = arith.constant dense<0.000000e+00> : vector<16xf32>
    %9 = vector.multi_reduction <add>, %8, %cst_3 [1] : vector<16x128xf32> to vector<16xf32>
    %10 = vector.shape_cast %9 : vector<16xf32> to vector<16x1xf32>
    %cst_4 = arith.constant 1.280000e+02 : f32
    %11 = vector.broadcast %cst_4 : f32 to vector<16x1xf32>
    %12 = arith.divf %10, %11 : vector<16x1xf32>
    %cst_5 = arith.constant 9.99999997E-7 : f32
    %13 = vector.broadcast %cst_5 : f32 to vector<16x1xf32>
    %14 = arith.addf %12, %13 : vector<16x1xf32>
    %15 = math.rsqrt %14 : vector<16x1xf32>
    %16 = vector.broadcast %15 : vector<16x1xf32> to vector<16x128xf32>
    %17 = arith.mulf %7, %16 : vector<16x128xf32>
    %c0_6 = arith.constant 0 : index
    %c0_7 = arith.constant 0 : index
    %c0_8 = arith.constant 0 : index
    %18 = vector.load %arg4[%c0_6, %c0_7, %c0_8] : memref<1x1x128xf32, #tpu.memory_space<vmem>>, vector<1x1x128xf32>
    %19 = vector.shape_cast %18 : vector<1x1x128xf32> to vector<1x128xf32>
    %cst_9 = arith.constant 1.000000e+00 : f32
    %20 = vector.broadcast %cst_9 : f32 to vector<1x128xf32>
    %21 = arith.addf %20, %19 : vector<1x128xf32>
    %22 = vector.broadcast %21 : vector<1x128xf32> to vector<16x128xf32>
    %23 = arith.mulf %17, %22 : vector<16x128xf32>
    %c0_10 = arith.constant 0 : index
    %c0_11 = arith.constant 0 : index
    %c0_12 = arith.constant 0 : index
    %24 = vector.load %arg5[%c0_10, %c0_11, %c0_12] : memref<1x1x128xf32, #tpu.memory_space<vmem>>, vector<1x1x128xf32>
    %25 = vector.shape_cast %24 : vector<1x1x128xf32> to vector<1x128xf32>
    %26 = vector.broadcast %25 : vector<1x128xf32> to vector<16x128xf32>
    %27 = arith.addf %23, %26 : vector<16x128xf32>
    %28 = arith.truncf %27 : vector<16x128xf32> to vector<16x128xbf16>
    %c0_13 = arith.constant 0 : index
    %c0_14 = arith.constant 0 : index
    %29 = vector.load %arg6[%c0_13, %c0_14] : memref<128x128xbf16, #tpu.memory_space<vmem>>, vector<128x128xbf16>
    %cst_15 = arith.constant dense<0.000000e+00> : vector<16x128xf32>
    %30 = tpu.matmul %28, %29, %cst_15 {dimension_numbers = #tpu.dot_dimension_numbers<[1], [0], [0], [1], [0, 0, 1, 1], [], []>} : vector<16x128xbf16>, vector<128x128xbf16>, vector<16x128xf32> -> vector<16x128xf32>
    %c0_16 = arith.constant 0 : index
    %c0_17 = arith.constant 0 : index
    %31 = vector.load %arg7[%c0_16, %c0_17] : memref<1x128xf32, #tpu.memory_space<vmem>>, vector<1x128xf32>
    %32 = vector.broadcast %31 : vector<1x128xf32> to vector<16x128xf32>
    %33 = arith.addf %30, %32 : vector<16x128xf32>
    %c2_i32 = arith.constant 2 : i32
    %34 = arith.cmpi slt, %arg0, %c2_i32 : i32
    %35 = arith.extui %34 : i1 to i32
    %c0_i32 = arith.constant 0 : i32
    %36 = arith.cmpi ne, %35, %c0_i32 : i32
    scf.if %36 {
      %40 = arith.mulf %33, %33 : vector<16x128xf32>
      %cst_20 = arith.constant dense<0.000000e+00> : vector<16xf32>
      %41 = vector.multi_reduction <add>, %40, %cst_20 [1] : vector<16x128xf32> to vector<16xf32>
      %42 = vector.shape_cast %41 : vector<16xf32> to vector<16x1xf32>
      %cst_21 = arith.constant 1.280000e+02 : f32
      %43 = vector.broadcast %cst_21 : f32 to vector<16x1xf32>
      %44 = arith.divf %42, %43 : vector<16x1xf32>
      %cst_22 = arith.constant 9.99999974E-6 : f32
      %45 = vector.broadcast %cst_22 : f32 to vector<16x1xf32>
      %46 = arith.addf %44, %45 : vector<16x1xf32>
      %47 = math.rsqrt %46 : vector<16x1xf32>
      %48 = vector.broadcast %47 : vector<16x1xf32> to vector<16x128xf32>
      %49 = arith.mulf %33, %48 : vector<16x128xf32>
      %c0_23 = arith.constant 0 : index
      %c0_24 = arith.constant 0 : index
      %c0_25 = arith.constant 0 : index
      %50 = vector.load %arg8[%c0_23, %c0_24, %c0_25] : memref<1x1x128xf32, #tpu.memory_space<vmem>>, vector<1x1x128xf32>
      %51 = vector.shape_cast %50 : vector<1x1x128xf32> to vector<1x128xf32>
      %52 = vector.broadcast %51 : vector<1x128xf32> to vector<16x128xf32>
      %53 = arith.mulf %49, %52 : vector<16x128xf32>
      %54 = arith.truncf %53 : vector<16x128xf32> to vector<16x128xbf16>
      %c0_26 = arith.constant 0 : index
      %c0_27 = arith.constant 0 : index
      %c0_28 = arith.constant 0 : index
      %c0_29 = arith.constant 0 : index
      %55 = vector.load %arg9[%c0_26, %c0_27, %c0_28, %c0_29] : memref<1x1x16x128xbf16, #tpu.memory_space<vmem>>, vector<1x1x16x128xbf16>
      %56 = vector.shape_cast %55 : vector<1x1x16x128xbf16> to vector<16x128xbf16>
      %57 = vector.shape_cast %54 : vector<16x128xbf16> to vector<1x1x16x128xbf16>
      tpu.vector_store %arg9[%c0_26, %c0_27, %c0_28, %c0_29], %57 {strides = array<i32>} : memref<1x1x16x128xbf16, #tpu.memory_space<vmem>>, vector<1x1x16x128xbf16>,
    } else {
    }
    %c2_i32_18 = arith.constant 2 : i32
    %37 = arith.cmpi eq, %arg0, %c2_i32_18 : i32
    %38 = arith.extui %37 : i1 to i32
    %c0_i32_19 = arith.constant 0 : i32
    %39 = arith.cmpi ne, %38, %c0_i32_19 : i32
    scf.if %39 {
      %40 = arith.truncf %33 : vector<16x128xf32> to vector<16x128xbf16>
      %c0_20 = arith.constant 0 : index
      %c0_21 = arith.constant 0 : index
      %c0_22 = arith.constant 0 : index
      %c0_23 = arith.constant 0 : index
      %41 = vector.load %arg9[%c0_20, %c0_21, %c0_22, %c0_23] : memref<1x1x16x128xbf16, #tpu.memory_space<vmem>>, vector<1x1x16x128xbf16>
      %42 = vector.shape_cast %41 : vector<1x1x16x128xbf16> to vector<16x128xbf16>
      %43 = vector.shape_cast %40 : vector<16x128xbf16> to vector<1x1x16x128xbf16>
      tpu.vector_store %arg9[%c0_20, %c0_21, %c0_22, %c0_23], %43 {strides = array<i32>} : memref<1x1x16x128xbf16, #tpu.memory_space<vmem>>, vector<1x1x16x128xbf16>,
    } else {
    }
    return
  }
  func.func @transform_0(%arg0: i32, %arg1: i32, %arg2: i32) -> (i32, i32, i32) {
    %c0_i32 = arith.constant 0 : i32
    %c0_i32_0 = arith.constant 0 : i32
    return %arg1, %arg2, %c0_i32 : i32, i32, i32
  }
  func.func @transform_1(%arg0: i32, %arg1: i32, %arg2: i32) -> (i32, i32, i32) {
    %c0_i32 = arith.constant 0 : i32
    %c0_i32_0 = arith.constant 0 : i32
    %c0_i32_1 = arith.constant 0 : i32
    return %arg1, %c0_i32, %c0_i32_0 : i32, i32, i32
  }
  func.func @transform_2(%arg0: i32, %arg1: i32, %arg2: i32) -> (i32, i32, i32) {
    %c0_i32 = arith.constant 0 : i32
    %c0_i32_0 = arith.constant 0 : i32
    %c0_i32_1 = arith.constant 0 : i32
    return %arg1, %c0_i32, %c0_i32_0 : i32, i32, i32
  }
  func.func @transform_3(%arg0: i32, %arg1: i32, %arg2: i32) -> (i32, i32) {
    %c0_i32 = arith.constant 0 : i32
    %c0_i32_0 = arith.constant 0 : i32
    return %c0_i32, %arg0 : i32, i32
  }
  func.func @transform_4(%arg0: i32, %arg1: i32, %arg2: i32) -> (i32, i32) {
    %c0_i32 = arith.constant 0 : i32
    %c0_i32_0 = arith.constant 0 : i32
    return %c0_i32, %arg0 : i32, i32
  }
  func.func @transform_5(%arg0: i32, %arg1: i32, %arg2: i32) -> (i32, i32, i32) {
    %c0_i32 = arith.constant 0 : i32
    %c0_i32_0 = arith.constant 0 : i32
    %c0_i32_1 = arith.constant 0 : i32
    return %arg0, %c0_i32, %c0_i32_0 : i32, i32, i32
  }
  func.func @transform_6(%arg0: i32, %arg1: i32, %arg2: i32) -> (i32, i32, i32, i32) {
    %c0_i32 = arith.constant 0 : i32
    %c0_i32_0 = arith.constant 0 : i32
    return %arg0, %arg1, %arg2, %c0_i32 : i32, i32, i32, i32
  }
}

module attributes {stable_mosaic.version = 11 : i64} {
  func.func @_flash_attn_kernel(%arg0: i32, %arg1: i32, %arg2: i32, %arg3: i32, %arg4: memref<1x1x16x32xbf16, #tpu.memory_space<vmem>>, %arg5: memref<1x1x16x32xbf16, #tpu.memory_space<vmem>>, %arg6: memref<1x1x16x32xbf16, #tpu.memory_space<vmem>>, %arg7: memref<1x1x16x32xbf16, #tpu.memory_space<vmem>>, %arg8: memref<16x1xf32, #tpu.memory_space<vmem>>, %arg9: memref<16x1xf32, #tpu.memory_space<vmem>>, %arg10: memref<16x32xf32, #tpu.memory_space<vmem>>) attributes {dimension_semantics = [#tpu.dimension_semantics<parallel>, #tpu.dimension_semantics<parallel>, #tpu.dimension_semantics<parallel>, #tpu.dimension_semantics<arbitrary>], iteration_bounds = array<i64: 2, 4, 1, 1>, scalar_prefetch = 0 : i64, scratch_operands = 3 : i64, tpu.core_type = #tpu.core_type<tc>, window_params = [{transform_indices = @transform_0, window_bounds = array<i64: 1, 1, 16, 32>}, {transform_indices = @transform_1, window_bounds = array<i64: 1, 1, 16, 32>}, {transform_indices = @transform_2, window_bounds = array<i64: 1, 1, 16, 32>}, {transform_indices = @transform_3, window_bounds = array<i64: 1, 1, 16, 32>}]} {
    %c0_i32 = arith.constant 0 : i32
    %0 = arith.cmpi eq, %arg3, %c0_i32 : i32
    %1 = arith.extui %0 : i1 to i32
    %c0_i32_0 = arith.constant 0 : i32
    %2 = arith.cmpi ne, %1, %c0_i32_0 : i32
    scf.if %2 {
      %cst_29 = arith.constant 0xFF800000 : f32
      %36 = vector.broadcast %cst_29 : f32 to vector<16x1xf32>
      %c0_30 = arith.constant 0 : index
      %c0_31 = arith.constant 0 : index
      %37 = vector.load %arg8[%c0_30, %c0_31] : memref<16x1xf32, #tpu.memory_space<vmem>>, vector<16x1xf32>
      tpu.vector_store %arg8[%c0_30, %c0_31], %36 {strides = array<i32>} : memref<16x1xf32, #tpu.memory_space<vmem>>, vector<16x1xf32>,
      %cst_32 = arith.constant 0.000000e+00 : f32
      %38 = vector.broadcast %cst_32 : f32 to vector<16x1xf32>
      %c0_33 = arith.constant 0 : index
      %c0_34 = arith.constant 0 : index
      %39 = vector.load %arg9[%c0_33, %c0_34] : memref<16x1xf32, #tpu.memory_space<vmem>>, vector<16x1xf32>
      tpu.vector_store %arg9[%c0_33, %c0_34], %38 {strides = array<i32>} : memref<16x1xf32, #tpu.memory_space<vmem>>, vector<16x1xf32>,
      %cst_35 = arith.constant 0.000000e+00 : f32
      %40 = vector.broadcast %cst_35 : f32 to vector<16x32xf32>
      %c0_36 = arith.constant 0 : index
      %c0_37 = arith.constant 0 : index
      %41 = vector.load %arg10[%c0_36, %c0_37] : memref<16x32xf32, #tpu.memory_space<vmem>>, vector<16x32xf32>
      tpu.vector_store %arg10[%c0_36, %c0_37], %40 {strides = array<i32>} : memref<16x32xf32, #tpu.memory_space<vmem>>, vector<16x32xf32>,
    } else {
    }
    %c0 = arith.constant 0 : index
    %c0_1 = arith.constant 0 : index
    %c0_2 = arith.constant 0 : index
    %c0_3 = arith.constant 0 : index
    %3 = vector.load %arg4[%c0, %c0_1, %c0_2, %c0_3] : memref<1x1x16x32xbf16, #tpu.memory_space<vmem>>, vector<1x1x16x32xbf16>
    %4 = vector.shape_cast %3 : vector<1x1x16x32xbf16> to vector<16x32xbf16>
    %c0_4 = arith.constant 0 : index
    %c0_5 = arith.constant 0 : index
    %c0_6 = arith.constant 0 : index
    %c0_7 = arith.constant 0 : index
    %5 = vector.load %arg5[%c0_4, %c0_5, %c0_6, %c0_7] : memref<1x1x16x32xbf16, #tpu.memory_space<vmem>>, vector<1x1x16x32xbf16>
    %6 = vector.shape_cast %5 : vector<1x1x16x32xbf16> to vector<16x32xbf16>
    %c0_8 = arith.constant 0 : index
    %c0_9 = arith.constant 0 : index
    %c0_10 = arith.constant 0 : index
    %c0_11 = arith.constant 0 : index
    %7 = vector.load %arg6[%c0_8, %c0_9, %c0_10, %c0_11] : memref<1x1x16x32xbf16, #tpu.memory_space<vmem>>, vector<1x1x16x32xbf16>
    %8 = vector.shape_cast %7 : vector<1x1x16x32xbf16> to vector<16x32xbf16>
    %cst = arith.constant dense<0.000000e+00> : vector<16x16xf32>
    %9 = tpu.matmul %4, %6, %cst {dimension_numbers = #tpu.dot_dimension_numbers<[1], [1], [0], [0], [0, 0, 1, 0], [], []>} : vector<16x32xbf16>, vector<16x32xbf16>, vector<16x16xf32> -> vector<16x16xf32>
    %c0_12 = arith.constant 0 : index
    %c0_13 = arith.constant 0 : index
    %10 = vector.load %arg8[%c0_12, %c0_13] : memref<16x1xf32, #tpu.memory_space<vmem>>, vector<16x1xf32>
    %cst_14 = arith.constant dense<0xFF800000> : vector<16xf32>
    %11 = vector.multi_reduction <maximumf>, %9, %cst_14 [1] : vector<16x16xf32> to vector<16xf32>
    %12 = vector.shape_cast %11 : vector<16xf32> to vector<16x1xf32>
    %13 = arith.maximumf %10, %12 : vector<16x1xf32>
    %14 = arith.subf %10, %13 : vector<16x1xf32>
    %15 = math.exp %14 : vector<16x1xf32>
    %16 = vector.broadcast %13 : vector<16x1xf32> to vector<16x16xf32>
    %17 = arith.subf %9, %16 : vector<16x16xf32>
    %18 = math.exp %17 : vector<16x16xf32>
    %c0_15 = arith.constant 0 : index
    %c0_16 = arith.constant 0 : index
    %19 = vector.load %arg9[%c0_15, %c0_16] : memref<16x1xf32, #tpu.memory_space<vmem>>, vector<16x1xf32>
    %20 = arith.mulf %15, %19 : vector<16x1xf32>
    %cst_17 = arith.constant dense<0.000000e+00> : vector<16xf32>
    %21 = vector.multi_reduction <add>, %18, %cst_17 [1] : vector<16x16xf32> to vector<16xf32>
    %22 = vector.shape_cast %21 : vector<16xf32> to vector<16x1xf32>
    %23 = arith.addf %20, %22 : vector<16x1xf32>
    %c0_18 = arith.constant 0 : index
    %c0_19 = arith.constant 0 : index
    %24 = vector.load %arg9[%c0_18, %c0_19] : memref<16x1xf32, #tpu.memory_space<vmem>>, vector<16x1xf32>
    tpu.vector_store %arg9[%c0_18, %c0_19], %23 {strides = array<i32>} : memref<16x1xf32, #tpu.memory_space<vmem>>, vector<16x1xf32>,
    %c0_20 = arith.constant 0 : index
    %c0_21 = arith.constant 0 : index
    %25 = vector.load %arg10[%c0_20, %c0_21] : memref<16x32xf32, #tpu.memory_space<vmem>>, vector<16x32xf32>
    %26 = vector.broadcast %15 : vector<16x1xf32> to vector<16x32xf32>
    %27 = arith.mulf %26, %25 : vector<16x32xf32>
    %28 = arith.truncf %18 : vector<16x16xf32> to vector<16x16xbf16>
    %cst_22 = arith.constant dense<0.000000e+00> : vector<16x32xf32>
    %29 = tpu.matmul %28, %8, %cst_22 {dimension_numbers = #tpu.dot_dimension_numbers<[1], [0], [0], [1], [0, 0, 1, 1], [], []>} : vector<16x16xbf16>, vector<16x32xbf16>, vector<16x32xf32> -> vector<16x32xf32>
    %30 = arith.addf %27, %29 : vector<16x32xf32>
    %c0_23 = arith.constant 0 : index
    %c0_24 = arith.constant 0 : index
    %31 = vector.load %arg10[%c0_23, %c0_24] : memref<16x32xf32, #tpu.memory_space<vmem>>, vector<16x32xf32>
    tpu.vector_store %arg10[%c0_23, %c0_24], %30 {strides = array<i32>} : memref<16x32xf32, #tpu.memory_space<vmem>>, vector<16x32xf32>,
    %c0_25 = arith.constant 0 : index
    %c0_26 = arith.constant 0 : index
    %32 = vector.load %arg8[%c0_25, %c0_26] : memref<16x1xf32, #tpu.memory_space<vmem>>, vector<16x1xf32>
    tpu.vector_store %arg8[%c0_25, %c0_26], %13 {strides = array<i32>} : memref<16x1xf32, #tpu.memory_space<vmem>>, vector<16x1xf32>,
    %c0_i32_27 = arith.constant 0 : i32
    %33 = arith.cmpi eq, %arg3, %c0_i32_27 : i32
    %34 = arith.extui %33 : i1 to i32
    %c0_i32_28 = arith.constant 0 : i32
    %35 = arith.cmpi ne, %34, %c0_i32_28 : i32
    scf.if %35 {
      %c0_29 = arith.constant 0 : index
      %c0_30 = arith.constant 0 : index
      %36 = vector.load %arg10[%c0_29, %c0_30] : memref<16x32xf32, #tpu.memory_space<vmem>>, vector<16x32xf32>
      %c0_31 = arith.constant 0 : index
      %c0_32 = arith.constant 0 : index
      %37 = vector.load %arg9[%c0_31, %c0_32] : memref<16x1xf32, #tpu.memory_space<vmem>>, vector<16x1xf32>
      %38 = tpu.reciprocal %37 {approx = true} : vector<16x1xf32> -> vector<16x1xf32>
      %39 = vector.broadcast %38 : vector<16x1xf32> to vector<16x32xf32>
      %40 = arith.mulf %36, %39 : vector<16x32xf32>
      %41 = arith.truncf %40 : vector<16x32xf32> to vector<16x32xbf16>
      %c0_33 = arith.constant 0 : index
      %c0_34 = arith.constant 0 : index
      %c0_35 = arith.constant 0 : index
      %c0_36 = arith.constant 0 : index
      %42 = vector.load %arg7[%c0_33, %c0_34, %c0_35, %c0_36] : memref<1x1x16x32xbf16, #tpu.memory_space<vmem>>, vector<1x1x16x32xbf16>
      %43 = vector.shape_cast %42 : vector<1x1x16x32xbf16> to vector<16x32xbf16>
      %44 = vector.shape_cast %41 : vector<16x32xbf16> to vector<1x1x16x32xbf16>
      tpu.vector_store %arg7[%c0_33, %c0_34, %c0_35, %c0_36], %44 {strides = array<i32>} : memref<1x1x16x32xbf16, #tpu.memory_space<vmem>>, vector<1x1x16x32xbf16>,
    } else {
    }
    return
  }
  func.func @transform_0(%arg0: i32, %arg1: i32, %arg2: i32, %arg3: i32) -> (i32, i32, i32, i32) {
    %c0_i32 = arith.constant 0 : i32
    %c0_i32_0 = arith.constant 0 : i32
    return %arg0, %arg1, %arg2, %c0_i32 : i32, i32, i32, i32
  }
  func.func @transform_1(%arg0: i32, %arg1: i32, %arg2: i32, %arg3: i32) -> (i32, i32, i32, i32) {
    %c0_i32 = arith.constant 0 : i32
    %c0_i32_0 = arith.constant 0 : i32
    return %arg0, %arg1, %arg3, %c0_i32 : i32, i32, i32, i32
  }
  func.func @transform_2(%arg0: i32, %arg1: i32, %arg2: i32, %arg3: i32) -> (i32, i32, i32, i32) {
    %c0_i32 = arith.constant 0 : i32
    %c0_i32_0 = arith.constant 0 : i32
    return %arg0, %arg1, %arg3, %c0_i32 : i32, i32, i32, i32
  }
  func.func @transform_3(%arg0: i32, %arg1: i32, %arg2: i32, %arg3: i32) -> (i32, i32, i32, i32) {
    %c0_i32 = arith.constant 0 : i32
    %c0_i32_0 = arith.constant 0 : i32
    return %arg0, %arg1, %arg2, %c0_i32 : i32, i32, i32, i32
  }
}

module attributes {stable_mosaic.version = 11 : i64} {
  func.func @_proj_res_kernel(%arg0: i32, %arg1: i32, %arg2: memref<1x16x128xbf16, #tpu.memory_space<vmem>>, %arg3: memref<128x128xbf16, #tpu.memory_space<vmem>>, %arg4: memref<1x128xf32, #tpu.memory_space<vmem>>, %arg5: memref<1x16x128xf32, #tpu.memory_space<vmem>>, %arg6: memref<1x1x128xf32, #tpu.memory_space<vmem>>, %arg7: memref<1x16x128xf32, #tpu.memory_space<vmem>>) attributes {dimension_semantics = [#tpu.dimension_semantics<parallel>, #tpu.dimension_semantics<parallel>], iteration_bounds = array<i64: 2, 1>, scalar_prefetch = 0 : i64, scratch_operands = 0 : i64, tpu.core_type = #tpu.core_type<tc>, window_params = [{transform_indices = @transform_0, window_bounds = array<i64: 1, 16, 128>}, {pipeline_mode = #tpu.pipeline_mode<synchronous>, transform_indices = @transform_1, window_bounds = array<i64: 128, 128>}, {pipeline_mode = #tpu.pipeline_mode<synchronous>, transform_indices = @transform_2, window_bounds = array<i64: 1, 128>}, {transform_indices = @transform_3, window_bounds = array<i64: 1, 16, 128>}, {transform_indices = @transform_4, window_bounds = array<i64: 1, 1, 128>}, {transform_indices = @transform_5, window_bounds = array<i64: 1, 16, 128>}]} {
    %c0 = arith.constant 0 : index
    %c0_0 = arith.constant 0 : index
    %c0_1 = arith.constant 0 : index
    %0 = vector.load %arg2[%c0, %c0_0, %c0_1] : memref<1x16x128xbf16, #tpu.memory_space<vmem>>, vector<1x16x128xbf16>
    %1 = vector.shape_cast %0 : vector<1x16x128xbf16> to vector<16x128xbf16>
    %c0_2 = arith.constant 0 : index
    %c0_3 = arith.constant 0 : index
    %2 = vector.load %arg3[%c0_2, %c0_3] : memref<128x128xbf16, #tpu.memory_space<vmem>>, vector<128x128xbf16>
    %cst = arith.constant dense<0.000000e+00> : vector<16x128xf32>
    %3 = tpu.matmul %1, %2, %cst {dimension_numbers = #tpu.dot_dimension_numbers<[1], [0], [0], [1], [0, 0, 1, 1], [], []>} : vector<16x128xbf16>, vector<128x128xbf16>, vector<16x128xf32> -> vector<16x128xf32>
    %c0_4 = arith.constant 0 : index
    %c0_5 = arith.constant 0 : index
    %4 = vector.load %arg4[%c0_4, %c0_5] : memref<1x128xf32, #tpu.memory_space<vmem>>, vector<1x128xf32>
    %5 = vector.broadcast %4 : vector<1x128xf32> to vector<16x128xf32>
    %6 = arith.addf %3, %5 : vector<16x128xf32>
    %c0_6 = arith.constant 0 : index
    %c0_7 = arith.constant 0 : index
    %c0_8 = arith.constant 0 : index
    %7 = vector.load %arg5[%c0_6, %c0_7, %c0_8] : memref<1x16x128xf32, #tpu.memory_space<vmem>>, vector<1x16x128xf32>
    %8 = vector.shape_cast %7 : vector<1x16x128xf32> to vector<16x128xf32>
    %c0_9 = arith.constant 0 : index
    %c0_10 = arith.constant 0 : index
    %c0_11 = arith.constant 0 : index
    %9 = vector.load %arg6[%c0_9, %c0_10, %c0_11] : memref<1x1x128xf32, #tpu.memory_space<vmem>>, vector<1x1x128xf32>
    %10 = vector.shape_cast %9 : vector<1x1x128xf32> to vector<1x128xf32>
    %11 = vector.broadcast %10 : vector<1x128xf32> to vector<16x128xf32>
    %12 = arith.mulf %6, %11 : vector<16x128xf32>
    %13 = arith.addf %8, %12 : vector<16x128xf32>
    %c0_12 = arith.constant 0 : index
    %c0_13 = arith.constant 0 : index
    %c0_14 = arith.constant 0 : index
    %14 = vector.load %arg7[%c0_12, %c0_13, %c0_14] : memref<1x16x128xf32, #tpu.memory_space<vmem>>, vector<1x16x128xf32>
    %15 = vector.shape_cast %14 : vector<1x16x128xf32> to vector<16x128xf32>
    %16 = vector.shape_cast %13 : vector<16x128xf32> to vector<1x16x128xf32>
    tpu.vector_store %arg7[%c0_12, %c0_13, %c0_14], %16 {strides = array<i32>} : memref<1x16x128xf32, #tpu.memory_space<vmem>>, vector<1x16x128xf32>,
    return
  }
  func.func @transform_0(%arg0: i32, %arg1: i32) -> (i32, i32, i32) {
    %c0_i32 = arith.constant 0 : i32
    %c0_i32_0 = arith.constant 0 : i32
    return %arg0, %arg1, %c0_i32 : i32, i32, i32
  }
  func.func @transform_1(%arg0: i32, %arg1: i32) -> (i32, i32) {
    %c0_i32 = arith.constant 0 : i32
    %c0_i32_0 = arith.constant 0 : i32
    %c0_i32_1 = arith.constant 0 : i32
    return %c0_i32, %c0_i32_0 : i32, i32
  }
  func.func @transform_2(%arg0: i32, %arg1: i32) -> (i32, i32) {
    %c0_i32 = arith.constant 0 : i32
    %c0_i32_0 = arith.constant 0 : i32
    %c0_i32_1 = arith.constant 0 : i32
    return %c0_i32, %c0_i32_0 : i32, i32
  }
  func.func @transform_3(%arg0: i32, %arg1: i32) -> (i32, i32, i32) {
    %c0_i32 = arith.constant 0 : i32
    %c0_i32_0 = arith.constant 0 : i32
    return %arg0, %arg1, %c0_i32 : i32, i32, i32
  }
  func.func @transform_4(%arg0: i32, %arg1: i32) -> (i32, i32, i32) {
    %c0_i32 = arith.constant 0 : i32
    %c0_i32_0 = arith.constant 0 : i32
    %c0_i32_1 = arith.constant 0 : i32
    return %arg0, %c0_i32, %c0_i32_0 : i32, i32, i32
  }
  func.func @transform_5(%arg0: i32, %arg1: i32) -> (i32, i32, i32) {
    %c0_i32 = arith.constant 0 : i32
    %c0_i32_0 = arith.constant 0 : i32
    return %arg0, %arg1, %c0_i32 : i32, i32, i32
  }
}

module attributes {stable_mosaic.version = 11 : i64} {
  func.func @_ln_gate_kernel(%arg0: i32, %arg1: i32, %arg2: memref<1x16x128xf32, #tpu.memory_space<vmem>>, %arg3: memref<1x1x128xf32, #tpu.memory_space<vmem>>, %arg4: memref<1x1x128xf32, #tpu.memory_space<vmem>>, %arg5: memref<128x4xbf16, #tpu.memory_space<vmem>>, %arg6: memref<1x16x128xbf16, #tpu.memory_space<vmem>>, %arg7: memref<1x16x4xf32, #tpu.memory_space<vmem>>) attributes {dimension_semantics = [#tpu.dimension_semantics<parallel>, #tpu.dimension_semantics<parallel>], iteration_bounds = array<i64: 2, 1>, scalar_prefetch = 0 : i64, scratch_operands = 0 : i64, tpu.core_type = #tpu.core_type<tc>, window_params = [{transform_indices = @transform_0, window_bounds = array<i64: 1, 16, 128>}, {transform_indices = @transform_1, window_bounds = array<i64: 1, 1, 128>}, {transform_indices = @transform_2, window_bounds = array<i64: 1, 1, 128>}, {pipeline_mode = #tpu.pipeline_mode<synchronous>, transform_indices = @transform_3, window_bounds = array<i64: 128, 4>}, {transform_indices = @transform_4, window_bounds = array<i64: 1, 16, 128>}, {transform_indices = @transform_5, window_bounds = array<i64: 1, 16, 4>}]} {
    %c0 = arith.constant 0 : index
    %c0_0 = arith.constant 0 : index
    %c0_1 = arith.constant 0 : index
    %0 = vector.load %arg2[%c0, %c0_0, %c0_1] : memref<1x16x128xf32, #tpu.memory_space<vmem>>, vector<1x16x128xf32>
    %1 = vector.shape_cast %0 : vector<1x16x128xf32> to vector<16x128xf32>
    %cst = arith.constant dense<0.000000e+00> : vector<16xf32>
    %2 = vector.multi_reduction <add>, %1, %cst [1] : vector<16x128xf32> to vector<16xf32>
    %3 = vector.shape_cast %2 : vector<16xf32> to vector<16x1xf32>
    %cst_2 = arith.constant 1.280000e+02 : f32
    %4 = vector.broadcast %cst_2 : f32 to vector<16x1xf32>
    %5 = arith.divf %3, %4 : vector<16x1xf32>
    %6 = vector.broadcast %5 : vector<16x1xf32> to vector<16x128xf32>
    %7 = arith.subf %1, %6 : vector<16x128xf32>
    %8 = arith.mulf %7, %7 : vector<16x128xf32>
    %cst_3 = arith.constant dense<0.000000e+00> : vector<16xf32>
    %9 = vector.multi_reduction <add>, %8, %cst_3 [1] : vector<16x128xf32> to vector<16xf32>
    %10 = vector.shape_cast %9 : vector<16xf32> to vector<16x1xf32>
    %cst_4 = arith.constant 1.280000e+02 : f32
    %11 = vector.broadcast %cst_4 : f32 to vector<16x1xf32>
    %12 = arith.divf %10, %11 : vector<16x1xf32>
    %cst_5 = arith.constant 9.99999997E-7 : f32
    %13 = vector.broadcast %cst_5 : f32 to vector<16x1xf32>
    %14 = arith.addf %12, %13 : vector<16x1xf32>
    %15 = math.rsqrt %14 : vector<16x1xf32>
    %16 = vector.broadcast %15 : vector<16x1xf32> to vector<16x128xf32>
    %17 = arith.mulf %7, %16 : vector<16x128xf32>
    %c0_6 = arith.constant 0 : index
    %c0_7 = arith.constant 0 : index
    %c0_8 = arith.constant 0 : index
    %18 = vector.load %arg3[%c0_6, %c0_7, %c0_8] : memref<1x1x128xf32, #tpu.memory_space<vmem>>, vector<1x1x128xf32>
    %19 = vector.shape_cast %18 : vector<1x1x128xf32> to vector<1x128xf32>
    %cst_9 = arith.constant 1.000000e+00 : f32
    %20 = vector.broadcast %cst_9 : f32 to vector<1x128xf32>
    %21 = arith.addf %20, %19 : vector<1x128xf32>
    %22 = vector.broadcast %21 : vector<1x128xf32> to vector<16x128xf32>
    %23 = arith.mulf %17, %22 : vector<16x128xf32>
    %c0_10 = arith.constant 0 : index
    %c0_11 = arith.constant 0 : index
    %c0_12 = arith.constant 0 : index
    %24 = vector.load %arg4[%c0_10, %c0_11, %c0_12] : memref<1x1x128xf32, #tpu.memory_space<vmem>>, vector<1x1x128xf32>
    %25 = vector.shape_cast %24 : vector<1x1x128xf32> to vector<1x128xf32>
    %26 = vector.broadcast %25 : vector<1x128xf32> to vector<16x128xf32>
    %27 = arith.addf %23, %26 : vector<16x128xf32>
    %28 = arith.truncf %27 : vector<16x128xf32> to vector<16x128xbf16>
    %c0_13 = arith.constant 0 : index
    %c0_14 = arith.constant 0 : index
    %c0_15 = arith.constant 0 : index
    %29 = vector.load %arg6[%c0_13, %c0_14, %c0_15] : memref<1x16x128xbf16, #tpu.memory_space<vmem>>, vector<1x16x128xbf16>
    %30 = vector.shape_cast %29 : vector<1x16x128xbf16> to vector<16x128xbf16>
    %31 = vector.shape_cast %28 : vector<16x128xbf16> to vector<1x16x128xbf16>
    tpu.vector_store %arg6[%c0_13, %c0_14, %c0_15], %31 {strides = array<i32>} : memref<1x16x128xbf16, #tpu.memory_space<vmem>>, vector<1x16x128xbf16>,
    %c0_16 = arith.constant 0 : index
    %c0_17 = arith.constant 0 : index
    %32 = vector.load %arg5[%c0_16, %c0_17] : memref<128x4xbf16, #tpu.memory_space<vmem>>, vector<128x4xbf16>
    %cst_18 = arith.constant dense<0.000000e+00> : vector<16x4xf32>
    %33 = tpu.matmul %28, %32, %cst_18 {dimension_numbers = #tpu.dot_dimension_numbers<[1], [0], [0], [1], [0, 0, 1, 1], [], []>} : vector<16x128xbf16>, vector<128x4xbf16>, vector<16x4xf32> -> vector<16x4xf32>
    %cst_19 = arith.constant dense<0xFF800000> : vector<16xf32>
    %34 = vector.multi_reduction <maximumf>, %33, %cst_19 [1] : vector<16x4xf32> to vector<16xf32>
    %35 = vector.shape_cast %34 : vector<16xf32> to vector<16x1xf32>
    %36 = vector.broadcast %35 : vector<16x1xf32> to vector<16x4xf32>
    %37 = arith.subf %33, %36 : vector<16x4xf32>
    %38 = math.exp %37 : vector<16x4xf32>
    %cst_20 = arith.constant dense<0.000000e+00> : vector<16xf32>
    %39 = vector.multi_reduction <add>, %38, %cst_20 [1] : vector<16x4xf32> to vector<16xf32>
    %40 = vector.shape_cast %39 : vector<16xf32> to vector<16x1xf32>
    %41 = vector.broadcast %40 : vector<16x1xf32> to vector<16x4xf32>
    %42 = arith.divf %38, %41 : vector<16x4xf32>
    %c0_21 = arith.constant 0 : index
    %c0_22 = arith.constant 0 : index
    %c0_23 = arith.constant 0 : index
    %43 = vector.load %arg7[%c0_21, %c0_22, %c0_23] : memref<1x16x4xf32, #tpu.memory_space<vmem>>, vector<1x16x4xf32>
    %44 = vector.shape_cast %43 : vector<1x16x4xf32> to vector<16x4xf32>
    %45 = vector.shape_cast %42 : vector<16x4xf32> to vector<1x16x4xf32>
    tpu.vector_store %arg7[%c0_21, %c0_22, %c0_23], %45 {strides = array<i32>} : memref<1x16x4xf32, #tpu.memory_space<vmem>>, vector<1x16x4xf32>,
    return
  }
  func.func @transform_0(%arg0: i32, %arg1: i32) -> (i32, i32, i32) {
    %c0_i32 = arith.constant 0 : i32
    %c0_i32_0 = arith.constant 0 : i32
    return %arg0, %arg1, %c0_i32 : i32, i32, i32
  }
  func.func @transform_1(%arg0: i32, %arg1: i32) -> (i32, i32, i32) {
    %c0_i32 = arith.constant 0 : i32
    %c0_i32_0 = arith.constant 0 : i32
    %c0_i32_1 = arith.constant 0 : i32
    return %arg0, %c0_i32, %c0_i32_0 : i32, i32, i32
  }
  func.func @transform_2(%arg0: i32, %arg1: i32) -> (i32, i32, i32) {
    %c0_i32 = arith.constant 0 : i32
    %c0_i32_0 = arith.constant 0 : i32
    %c0_i32_1 = arith.constant 0 : i32
    return %arg0, %c0_i32, %c0_i32_0 : i32, i32, i32
  }
  func.func @transform_3(%arg0: i32, %arg1: i32) -> (i32, i32) {
    %c0_i32 = arith.constant 0 : i32
    %c0_i32_0 = arith.constant 0 : i32
    %c0_i32_1 = arith.constant 0 : i32
    return %c0_i32, %c0_i32_0 : i32, i32
  }
  func.func @transform_4(%arg0: i32, %arg1: i32) -> (i32, i32, i32) {
    %c0_i32 = arith.constant 0 : i32
    %c0_i32_0 = arith.constant 0 : i32
    return %arg0, %arg1, %c0_i32 : i32, i32, i32
  }
  func.func @transform_5(%arg0: i32, %arg1: i32) -> (i32, i32, i32) {
    %c0_i32 = arith.constant 0 : i32
    %c0_i32_0 = arith.constant 0 : i32
    return %arg0, %arg1, %c0_i32 : i32, i32, i32
  }
}

module attributes {stable_mosaic.version = 11 : i64} {
  func.func @_moe_kernel(%arg0: i32, %arg1: i32, %arg2: i32, %arg3: memref<32x128xbf16, #tpu.memory_space<vmem>>, %arg4: memref<1x128x512xbf16, #tpu.memory_space<vmem>>, %arg5: memref<1x128x512xbf16, #tpu.memory_space<vmem>>, %arg6: memref<1x512x128xbf16, #tpu.memory_space<vmem>>, %arg7: memref<1x32x1xf32, #tpu.memory_space<vmem>>, %arg8: memref<32x128xf32, #tpu.memory_space<vmem>>, %arg9: memref<32x128xf32, #tpu.memory_space<vmem>>) attributes {dimension_semantics = [#tpu.dimension_semantics<parallel>, #tpu.dimension_semantics<arbitrary>, #tpu.dimension_semantics<arbitrary>], iteration_bounds = array<i64: 1, 4, 1>, scalar_prefetch = 0 : i64, scratch_operands = 1 : i64, tpu.core_type = #tpu.core_type<tc>, window_params = [{transform_indices = @transform_0, window_bounds = array<i64: 32, 128>}, {transform_indices = @transform_1, window_bounds = array<i64: 1, 128, 512>}, {transform_indices = @transform_2, window_bounds = array<i64: 1, 128, 512>}, {transform_indices = @transform_3, window_bounds = array<i64: 1, 512, 128>}, {transform_indices = @transform_4, window_bounds = array<i64: 1, 32, 1>}, {transform_indices = @transform_5, window_bounds = array<i64: 32, 128>}]} {
    %c0_i32 = arith.constant 0 : i32
    %0 = arith.cmpi eq, %arg1, %c0_i32 : i32
    %c0_i32_0 = arith.constant 0 : i32
    %1 = arith.cmpi eq, %arg2, %c0_i32_0 : i32
    %2 = arith.andi %0, %1 : i1
    %3 = arith.extui %2 : i1 to i32
    %c0_i32_1 = arith.constant 0 : i32
    %4 = arith.cmpi ne, %3, %c0_i32_1 : i32
    scf.if %4 {
      %cst_24 = arith.constant 0.000000e+00 : f32
      %35 = vector.broadcast %cst_24 : f32 to vector<32x128xf32>
      %c0_25 = arith.constant 0 : index
      %c0_26 = arith.constant 0 : index
      %36 = vector.load %arg9[%c0_25, %c0_26] : memref<32x128xf32, #tpu.memory_space<vmem>>, vector<32x128xf32>
      tpu.vector_store %arg9[%c0_25, %c0_26], %35 {strides = array<i32>} : memref<32x128xf32, #tpu.memory_space<vmem>>, vector<32x128xf32>,
    } else {
    }
    %c0 = arith.constant 0 : index
    %c0_2 = arith.constant 0 : index
    %5 = vector.load %arg3[%c0, %c0_2] : memref<32x128xbf16, #tpu.memory_space<vmem>>, vector<32x128xbf16>
    %c0_3 = arith.constant 0 : index
    %c0_4 = arith.constant 0 : index
    %c0_5 = arith.constant 0 : index
    %6 = vector.load %arg4[%c0_3, %c0_4, %c0_5] : memref<1x128x512xbf16, #tpu.memory_space<vmem>>, vector<1x128x512xbf16>
    %7 = vector.shape_cast %6 : vector<1x128x512xbf16> to vector<128x512xbf16>
    %cst = arith.constant dense<0.000000e+00> : vector<32x512xf32>
    %8 = tpu.matmul %5, %7, %cst {dimension_numbers = #tpu.dot_dimension_numbers<[1], [0], [0], [1], [0, 0, 1, 1], [], []>} : vector<32x128xbf16>, vector<128x512xbf16>, vector<32x512xf32> -> vector<32x512xf32>
    %c0_6 = arith.constant 0 : index
    %c0_7 = arith.constant 0 : index
    %c0_8 = arith.constant 0 : index
    %9 = vector.load %arg5[%c0_6, %c0_7, %c0_8] : memref<1x128x512xbf16, #tpu.memory_space<vmem>>, vector<1x128x512xbf16>
    %10 = vector.shape_cast %9 : vector<1x128x512xbf16> to vector<128x512xbf16>
    %cst_9 = arith.constant dense<0.000000e+00> : vector<32x512xf32>
    %11 = tpu.matmul %5, %10, %cst_9 {dimension_numbers = #tpu.dot_dimension_numbers<[1], [0], [0], [1], [0, 0, 1, 1], [], []>} : vector<32x128xbf16>, vector<128x512xbf16>, vector<32x512xf32> -> vector<32x512xf32>
    %12 = arith.negf %8 : vector<32x512xf32>
    %13 = math.exp %12 : vector<32x512xf32>
    %cst_10 = arith.constant 1.000000e+00 : f32
    %14 = vector.broadcast %cst_10 : f32 to vector<32x512xf32>
    %15 = arith.addf %14, %13 : vector<32x512xf32>
    %16 = arith.divf %14, %15 : vector<32x512xf32>
    %17 = arith.mulf %8, %16 : vector<32x512xf32>
    %18 = arith.mulf %17, %11 : vector<32x512xf32>
    %c0_11 = arith.constant 0 : index
    %c0_12 = arith.constant 0 : index
    %c0_13 = arith.constant 0 : index
    %19 = vector.load %arg7[%c0_11, %c0_12, %c0_13] : memref<1x32x1xf32, #tpu.memory_space<vmem>>, vector<1x32x1xf32>
    %20 = vector.shape_cast %19 : vector<1x32x1xf32> to vector<32x1xf32>
    %21 = vector.broadcast %20 : vector<32x1xf32> to vector<32x512xf32>
    %22 = arith.mulf %18, %21 : vector<32x512xf32>
    %23 = arith.truncf %22 : vector<32x512xf32> to vector<32x512xbf16>
    %c0_14 = arith.constant 0 : index
    %c0_15 = arith.constant 0 : index
    %24 = vector.load %arg9[%c0_14, %c0_15] : memref<32x128xf32, #tpu.memory_space<vmem>>, vector<32x128xf32>
    %c0_16 = arith.constant 0 : index
    %c0_17 = arith.constant 0 : index
    %c0_18 = arith.constant 0 : index
    %25 = vector.load %arg6[%c0_16, %c0_17, %c0_18] : memref<1x512x128xbf16, #tpu.memory_space<vmem>>, vector<1x512x128xbf16>
    %26 = vector.shape_cast %25 : vector<1x512x128xbf16> to vector<512x128xbf16>
    %cst_19 = arith.constant dense<0.000000e+00> : vector<32x128xf32>
    %27 = tpu.matmul %23, %26, %cst_19 {dimension_numbers = #tpu.dot_dimension_numbers<[1], [0], [0], [1], [0, 0, 1, 1], [], []>} : vector<32x512xbf16>, vector<512x128xbf16>, vector<32x128xf32> -> vector<32x128xf32>
    %28 = arith.addf %24, %27 : vector<32x128xf32>
    %c0_20 = arith.constant 0 : index
    %c0_21 = arith.constant 0 : index
    %29 = vector.load %arg9[%c0_20, %c0_21] : memref<32x128xf32, #tpu.memory_space<vmem>>, vector<32x128xf32>
    tpu.vector_store %arg9[%c0_20, %c0_21], %28 {strides = array<i32>} : memref<32x128xf32, #tpu.memory_space<vmem>>, vector<32x128xf32>,
    %c3_i32 = arith.constant 3 : i32
    %30 = arith.cmpi eq, %arg1, %c3_i32 : i32
    %c0_i32_22 = arith.constant 0 : i32
    %31 = arith.cmpi eq, %arg2, %c0_i32_22 : i32
    %32 = arith.andi %30, %31 : i1
    %33 = arith.extui %32 : i1 to i32
    %c0_i32_23 = arith.constant 0 : i32
    %34 = arith.cmpi ne, %33, %c0_i32_23 : i32
    scf.if %34 {
      %c0_24 = arith.constant 0 : index
      %c0_25 = arith.constant 0 : index
      %35 = vector.load %arg9[%c0_24, %c0_25] : memref<32x128xf32, #tpu.memory_space<vmem>>, vector<32x128xf32>
      %c0_26 = arith.constant 0 : index
      %c0_27 = arith.constant 0 : index
      %36 = vector.load %arg8[%c0_26, %c0_27] : memref<32x128xf32, #tpu.memory_space<vmem>>, vector<32x128xf32>
      tpu.vector_store %arg8[%c0_26, %c0_27], %35 {strides = array<i32>} : memref<32x128xf32, #tpu.memory_space<vmem>>, vector<32x128xf32>,
    } else {
    }
    return
  }
  func.func @transform_0(%arg0: i32, %arg1: i32, %arg2: i32) -> (i32, i32) {
    %c0_i32 = arith.constant 0 : i32
    %c0_i32_0 = arith.constant 0 : i32
    return %arg0, %c0_i32 : i32, i32
  }
  func.func @transform_1(%arg0: i32, %arg1: i32, %arg2: i32) -> (i32, i32, i32) {
    %c0_i32 = arith.constant 0 : i32
    %c0_i32_0 = arith.constant 0 : i32
    return %arg1, %c0_i32, %arg2 : i32, i32, i32
  }
  func.func @transform_2(%arg0: i32, %arg1: i32, %arg2: i32) -> (i32, i32, i32) {
    %c0_i32 = arith.constant 0 : i32
    %c0_i32_0 = arith.constant 0 : i32
    return %arg1, %c0_i32, %arg2 : i32, i32, i32
  }
  func.func @transform_3(%arg0: i32, %arg1: i32, %arg2: i32) -> (i32, i32, i32) {
    %c0_i32 = arith.constant 0 : i32
    %c0_i32_0 = arith.constant 0 : i32
    return %arg1, %arg2, %c0_i32 : i32, i32, i32
  }
  func.func @transform_4(%arg0: i32, %arg1: i32, %arg2: i32) -> (i32, i32, i32) {
    %c0_i32 = arith.constant 0 : i32
    %c0_i32_0 = arith.constant 0 : i32
    return %arg1, %arg0, %c0_i32 : i32, i32, i32
  }
  func.func @transform_5(%arg0: i32, %arg1: i32, %arg2: i32) -> (i32, i32) {
    %c0_i32 = arith.constant 0 : i32
    %c0_i32_0 = arith.constant 0 : i32
    return %arg0, %c0_i32 : i32, i32
  }
}

module attributes {stable_mosaic.version = 11 : i64} {
  func.func @_shared_combine_kernel(%arg0: i32, %arg1: i32, %arg2: i32, %arg3: memref<1x16x128xbf16, #tpu.memory_space<vmem>>, %arg4: memref<128x256xbf16, #tpu.memory_space<vmem>>, %arg5: memref<128x256xbf16, #tpu.memory_space<vmem>>, %arg6: memref<256x128xbf16, #tpu.memory_space<vmem>>, %arg7: memref<1x16x128xf32, #tpu.memory_space<vmem>>, %arg8: memref<1x16x128xf32, #tpu.memory_space<vmem>>, %arg9: memref<1x1x128xf32, #tpu.memory_space<vmem>>, %arg10: memref<1x16x128xf32, #tpu.memory_space<vmem>>, %arg11: memref<16x128xf32, #tpu.memory_space<vmem>>) attributes {dimension_semantics = [#tpu.dimension_semantics<parallel>, #tpu.dimension_semantics<parallel>, #tpu.dimension_semantics<arbitrary>], iteration_bounds = array<i64: 2, 1, 1>, scalar_prefetch = 0 : i64, scratch_operands = 1 : i64, tpu.core_type = #tpu.core_type<tc>, window_params = [{transform_indices = @transform_0, window_bounds = array<i64: 1, 16, 128>}, {transform_indices = @transform_1, window_bounds = array<i64: 128, 256>}, {transform_indices = @transform_2, window_bounds = array<i64: 128, 256>}, {transform_indices = @transform_3, window_bounds = array<i64: 256, 128>}, {transform_indices = @transform_4, window_bounds = array<i64: 1, 16, 128>}, {transform_indices = @transform_5, window_bounds = array<i64: 1, 16, 128>}, {transform_indices = @transform_6, window_bounds = array<i64: 1, 1, 128>}, {transform_indices = @transform_7, window_bounds = array<i64: 1, 16, 128>}]} {
    %c0_i32 = arith.constant 0 : i32
    %0 = arith.cmpi eq, %arg2, %c0_i32 : i32
    %1 = arith.extui %0 : i1 to i32
    %c0_i32_0 = arith.constant 0 : i32
    %2 = arith.cmpi ne, %1, %c0_i32_0 : i32
    scf.if %2 {
      %cst_18 = arith.constant 0.000000e+00 : f32
      %25 = vector.broadcast %cst_18 : f32 to vector<16x128xf32>
      %c0_19 = arith.constant 0 : index
      %c0_20 = arith.constant 0 : index
      %26 = vector.load %arg11[%c0_19, %c0_20] : memref<16x128xf32, #tpu.memory_space<vmem>>, vector<16x128xf32>
      tpu.vector_store %arg11[%c0_19, %c0_20], %25 {strides = array<i32>} : memref<16x128xf32, #tpu.memory_space<vmem>>, vector<16x128xf32>,
    } else {
    }
    %c0 = arith.constant 0 : index
    %c0_1 = arith.constant 0 : index
    %c0_2 = arith.constant 0 : index
    %3 = vector.load %arg3[%c0, %c0_1, %c0_2] : memref<1x16x128xbf16, #tpu.memory_space<vmem>>, vector<1x16x128xbf16>
    %4 = vector.shape_cast %3 : vector<1x16x128xbf16> to vector<16x128xbf16>
    %c0_3 = arith.constant 0 : index
    %c0_4 = arith.constant 0 : index
    %5 = vector.load %arg4[%c0_3, %c0_4] : memref<128x256xbf16, #tpu.memory_space<vmem>>, vector<128x256xbf16>
    %cst = arith.constant dense<0.000000e+00> : vector<16x256xf32>
    %6 = tpu.matmul %4, %5, %cst {dimension_numbers = #tpu.dot_dimension_numbers<[1], [0], [0], [1], [0, 0, 1, 1], [], []>} : vector<16x128xbf16>, vector<128x256xbf16>, vector<16x256xf32> -> vector<16x256xf32>
    %c0_5 = arith.constant 0 : index
    %c0_6 = arith.constant 0 : index
    %7 = vector.load %arg5[%c0_5, %c0_6] : memref<128x256xbf16, #tpu.memory_space<vmem>>, vector<128x256xbf16>
    %cst_7 = arith.constant dense<0.000000e+00> : vector<16x256xf32>
    %8 = tpu.matmul %4, %7, %cst_7 {dimension_numbers = #tpu.dot_dimension_numbers<[1], [0], [0], [1], [0, 0, 1, 1], [], []>} : vector<16x128xbf16>, vector<128x256xbf16>, vector<16x256xf32> -> vector<16x256xf32>
    %9 = arith.negf %6 : vector<16x256xf32>
    %10 = math.exp %9 : vector<16x256xf32>
    %cst_8 = arith.constant 1.000000e+00 : f32
    %11 = vector.broadcast %cst_8 : f32 to vector<16x256xf32>
    %12 = arith.addf %11, %10 : vector<16x256xf32>
    %13 = arith.divf %11, %12 : vector<16x256xf32>
    %14 = arith.mulf %6, %13 : vector<16x256xf32>
    %15 = arith.mulf %14, %8 : vector<16x256xf32>
    %16 = arith.truncf %15 : vector<16x256xf32> to vector<16x256xbf16>
    %c0_9 = arith.constant 0 : index
    %c0_10 = arith.constant 0 : index
    %17 = vector.load %arg11[%c0_9, %c0_10] : memref<16x128xf32, #tpu.memory_space<vmem>>, vector<16x128xf32>
    %c0_11 = arith.constant 0 : index
    %c0_12 = arith.constant 0 : index
    %18 = vector.load %arg6[%c0_11, %c0_12] : memref<256x128xbf16, #tpu.memory_space<vmem>>, vector<256x128xbf16>
    %cst_13 = arith.constant dense<0.000000e+00> : vector<16x128xf32>
    %19 = tpu.matmul %16, %18, %cst_13 {dimension_numbers = #tpu.dot_dimension_numbers<[1], [0], [0], [1], [0, 0, 1, 1], [], []>} : vector<16x256xbf16>, vector<256x128xbf16>, vector<16x128xf32> -> vector<16x128xf32>
    %20 = arith.addf %17, %19 : vector<16x128xf32>
    %c0_14 = arith.constant 0 : index
    %c0_15 = arith.constant 0 : index
    %21 = vector.load %arg11[%c0_14, %c0_15] : memref<16x128xf32, #tpu.memory_space<vmem>>, vector<16x128xf32>
    tpu.vector_store %arg11[%c0_14, %c0_15], %20 {strides = array<i32>} : memref<16x128xf32, #tpu.memory_space<vmem>>, vector<16x128xf32>,
    %c0_i32_16 = arith.constant 0 : i32
    %22 = arith.cmpi eq, %arg2, %c0_i32_16 : i32
    %23 = arith.extui %22 : i1 to i32
    %c0_i32_17 = arith.constant 0 : i32
    %24 = arith.cmpi ne, %23, %c0_i32_17 : i32
    scf.if %24 {
      %c0_18 = arith.constant 0 : index
      %c0_19 = arith.constant 0 : index
      %c0_20 = arith.constant 0 : index
      %25 = vector.load %arg8[%c0_18, %c0_19, %c0_20] : memref<1x16x128xf32, #tpu.memory_space<vmem>>, vector<1x16x128xf32>
      %26 = vector.shape_cast %25 : vector<1x16x128xf32> to vector<16x128xf32>
      %c0_21 = arith.constant 0 : index
      %c0_22 = arith.constant 0 : index
      %27 = vector.load %arg11[%c0_21, %c0_22] : memref<16x128xf32, #tpu.memory_space<vmem>>, vector<16x128xf32>
      %c0_23 = arith.constant 0 : index
      %c0_24 = arith.constant 0 : index
      %c0_25 = arith.constant 0 : index
      %28 = vector.load %arg7[%c0_23, %c0_24, %c0_25] : memref<1x16x128xf32, #tpu.memory_space<vmem>>, vector<1x16x128xf32>
      %29 = vector.shape_cast %28 : vector<1x16x128xf32> to vector<16x128xf32>
      %30 = arith.addf %27, %29 : vector<16x128xf32>
      %c0_26 = arith.constant 0 : index
      %c0_27 = arith.constant 0 : index
      %c0_28 = arith.constant 0 : index
      %31 = vector.load %arg9[%c0_26, %c0_27, %c0_28] : memref<1x1x128xf32, #tpu.memory_space<vmem>>, vector<1x1x128xf32>
      %32 = vector.shape_cast %31 : vector<1x1x128xf32> to vector<1x128xf32>
      %33 = vector.broadcast %32 : vector<1x128xf32> to vector<16x128xf32>
      %34 = arith.mulf %30, %33 : vector<16x128xf32>
      %35 = arith.addf %26, %34 : vector<16x128xf32>
      %c0_29 = arith.constant 0 : index
      %c0_30 = arith.constant 0 : index
      %c0_31 = arith.constant 0 : index
      %36 = vector.load %arg10[%c0_29, %c0_30, %c0_31] : memref<1x16x128xf32, #tpu.memory_space<vmem>>, vector<1x16x128xf32>
      %37 = vector.shape_cast %36 : vector<1x16x128xf32> to vector<16x128xf32>
      %38 = vector.shape_cast %35 : vector<16x128xf32> to vector<1x16x128xf32>
      tpu.vector_store %arg10[%c0_29, %c0_30, %c0_31], %38 {strides = array<i32>} : memref<1x16x128xf32, #tpu.memory_space<vmem>>, vector<1x16x128xf32>,
    } else {
    }
    return
  }
  func.func @transform_0(%arg0: i32, %arg1: i32, %arg2: i32) -> (i32, i32, i32) {
    %c0_i32 = arith.constant 0 : i32
    %c0_i32_0 = arith.constant 0 : i32
    return %arg0, %arg1, %c0_i32 : i32, i32, i32
  }
  func.func @transform_1(%arg0: i32, %arg1: i32, %arg2: i32) -> (i32, i32) {
    %c0_i32 = arith.constant 0 : i32
    %c0_i32_0 = arith.constant 0 : i32
    return %c0_i32, %arg2 : i32, i32
  }
  func.func @transform_2(%arg0: i32, %arg1: i32, %arg2: i32) -> (i32, i32) {
    %c0_i32 = arith.constant 0 : i32
    %c0_i32_0 = arith.constant 0 : i32
    return %c0_i32, %arg2 : i32, i32
  }
  func.func @transform_3(%arg0: i32, %arg1: i32, %arg2: i32) -> (i32, i32) {
    %c0_i32 = arith.constant 0 : i32
    %c0_i32_0 = arith.constant 0 : i32
    return %arg2, %c0_i32 : i32, i32
  }
  func.func @transform_4(%arg0: i32, %arg1: i32, %arg2: i32) -> (i32, i32, i32) {
    %c0_i32 = arith.constant 0 : i32
    %c0_i32_0 = arith.constant 0 : i32
    return %arg0, %arg1, %c0_i32 : i32, i32, i32
  }
  func.func @transform_5(%arg0: i32, %arg1: i32, %arg2: i32) -> (i32, i32, i32) {
    %c0_i32 = arith.constant 0 : i32
    %c0_i32_0 = arith.constant 0 : i32
    return %arg0, %arg1, %c0_i32 : i32, i32, i32
  }
  func.func @transform_6(%arg0: i32, %arg1: i32, %arg2: i32) -> (i32, i32, i32) {
    %c0_i32 = arith.constant 0 : i32
    %c0_i32_0 = arith.constant 0 : i32
    %c0_i32_1 = arith.constant 0 : i32
    return %arg0, %c0_i32, %c0_i32_0 : i32, i32, i32
  }
  func.func @transform_7(%arg0: i32, %arg1: i32, %arg2: i32) -> (i32, i32, i32) {
    %c0_i32 = arith.constant 0 : i32
    %c0_i32_0 = arith.constant 0 : i32
    return %arg0, %arg1, %c0_i32 : i32, i32, i32
  }
}

</mosaic_0001>

<bundles_post_ra>
// kernel: hd_block_single.7
= control target key start
LH: loop header
LB: loop body
LE: loop exit
PB: predicated region body
PF: predicated region fallthrough
CT: control target
= control target key end

     0   :  { %s661_s12 = smov 0   ;;  %s663_s13 = smov 0   ;;  %s755_s0 = inlined_call_operand.vmem [shape: f32[2,128], index: 0, kind: input, shape index: {}]   ;;  %s756_s1 = inlined_call_operand.vmem [shape: bf16[128,768], index: 1, kind: input, shape index: {}]   ;;  %s757_s2 = inlined_call_operand.vmem [shape: f32[1,768], index: 2, kind: input, shape index: {}]   ;;  %s758_s3 = inlined_call_operand.vmem [shape: f32[2,768], index: 3, kind: output, shape index: {}]  }
   0x1   :  { %s665_s14 = smov 0  }
   0x2 LB: > { %s530_s15 = sadd.s32 4294967295, %s638_s14   ;;  %s678_s16 = sadd.s32 1, %s638_s14   ;;  %s638_s14 = sphi %s665_s14, %s761_s14   ;;  %s634_s13 = sphi %s663_s13, %s760_s13   ;;  %s630_s12 = sphi %s661_s12, %s759_s12  }
   0x3   : > { %s38_s17 = ssub.s32 %s638_s14, %s678_s16  ;;  %s41_s18 = sadd.s32 1, %s634_s13 }
   0x4   : > { %p39_p0 = scmp.eq.s32.totalorder %s38_s17, 0  ;;  %p48_p1 = scmp.ne.s32.totalorder %s634_s13, %s630_s12 }
   0x5   : > { %p49_p2 = scmp.eq.s32.totalorder %s638_s14, 0  ;;  %p533_p4 = scmp.ge.s32.totalorder %s638_s14, 3 }
   0x6   : > { %s687_s19 = scalar_select %p39_p0, %s634_s13, %s41_s18  }
   0x7   : > { %p50_p3 = por %p49_p2, %p48_p1  ;;  %129 = sbr.rel (%p533_p4) target bundleno = 24 (0x18), region = 20 }
   0xc   : > { %132 = sbr.rel (!%p50_p3) target bundleno = 24 (0x18), region = 24  ;;  %s134_s20 = sand.u32 (%p50_p3), 1, %s634_s13  }
   0xd   : > { %s562_s21 = sshll.u32 (%p50_p3), %s638_s14, 3  ;;  %s534_s22 = sshll.u32 (%p50_p3), %s134_s20, 7 }
   0xe   : > { %s695_s25 = scalar_lea.vmem (%p50_p3), %s756_s1, %s562_s21  ;;  %s136_s26 = scalar_lea.vmem (%p50_p3), [#allocation2], %s534_s22 }
   0xf   : > { %v198_v0 = vld [vmem:[%s695_s25] sm:$0xff] (%p50_p3)  ;;  %v200_v1 = vld [vmem:[%s695_s25 + $0x18] sm:$0xff] (%p50_p3)  ;;  %v202_v2 = vld [vmem:[%s695_s25 + $0x30] sm:$0xff] (%p50_p3) }
  0x10   : > { %199 = vst [vmem:[%s136_s26] sm:$0xff] (%p50_p3), %v198_v0  ;;  %201 = vst [vmem:[%s136_s26 + $0x8] sm:$0xff] (%p50_p3), %v200_v1  ;;  %v204_v3 = vld [vmem:[%s695_s25 + $0x48] sm:$0xff] (%p50_p3)  ;;  %v206_v4 = vld [vmem:[%s695_s25 + $0x60] sm:$0xff] (%p50_p3) }
  0x11   : > { %203 = vst [vmem:[%s136_s26 + $0x10] sm:$0xff] %v202_v2  ;;  %v208_v5 = vld [vmem:[%s695_s25 + $0x78] sm:$0xff]  ;;  %205 = vst [vmem:[%s136_s26 + $0x18] sm:$0xff] %v204_v3  ;;  %v210_v6 = vld [vmem:[%s695_s25 + $0x90] sm:$0xff] }
  0x12   : > { %207 = vst [vmem:[%s136_s26 + $0x20] sm:$0xff] %v206_v4  ;;  %209 = vst [vmem:[%s136_s26 + $0x28] sm:$0xff] %v208_v5  ;;  %v212_v7 = vld [vmem:[%s695_s25 + $0xa8] sm:$0xff]  ;;  %v214_v8 = vld [vmem:[%s695_s25 + $0xc0] sm:$0xff] }
  0x13   : > { %211 = vst [vmem:[%s136_s26 + $0x30] sm:$0xff] %v210_v6  ;;  %213 = vst [vmem:[%s136_s26 + $0x38] sm:$0xff] %v212_v7  ;;  %v216_v9 = vld [vmem:[%s695_s25 + $0xd8] sm:$0xff]  ;;  %v218_v10 = vld [vmem:[%s695_s25 + $0xf0] sm:$0xff] }
  0x14   : > { %215 = vst [vmem:[%s136_s26 + $0x40] sm:$0xff] %v214_v8  ;;  %v220_v11 = vld [vmem:[%s695_s25 + $0x108] sm:$0xff]  ;;  %217 = vst [vmem:[%s136_s26 + $0x48] sm:$0xff] %v216_v9  ;;  %v222_v12 = vld [vmem:[%s695_s25 + $0x120] sm:$0xff] }
  0x15   : > { %219 = vst [vmem:[%s136_s26 + $0x50] sm:$0xff] %v218_v10  ;;  %221 = vst [vmem:[%s136_s26 + $0x58] sm:$0xff] %v220_v11  ;;  %v224_v13 = vld [vmem:[%s695_s25 + $0x138] sm:$0xff]  ;;  %v226_v14 = vld [vmem:[%s695_s25 + $0x150] sm:$0xff] }
  0x16   : > { %223 = vst [vmem:[%s136_s26 + $0x60] sm:$0xff] %v222_v12  ;;  %225 = vst [vmem:[%s136_s26 + $0x68] sm:$0xff] %v224_v13  ;;  %v228_v15 = vld [vmem:[%s695_s25 + $0x168] sm:$0xff] }
  0x17   : > { %227 = vst [vmem:[%s136_s26 + $0x70] sm:$0xff] %v226_v14  ;;  %229 = vst [vmem:[%s136_s26 + $0x78] sm:$0xff] %v228_v15 }
  0x18 PF: > { %p537_p5 = scmp.ge.s32.totalorder %s638_s14, 1  ;;  %p242_p6 = scmp.lt.s32.totalorder %s638_s14, 4 }
  0x1a   : > { %p243_p7 = pnand %p537_p5, %p242_p6 }
  0x1b   : > { %s249_s27 = sand.u32 (!%p243_p7), 1, %s630_s12   ;;  %s539_s5 = sshll.u32 (!%p243_p7), %s530_s15, 1 }
  0x1c   : > { %246 = sbr.rel (%p243_p7) target bundleno = 270 (0x10e), region = 66  ;;  %s538_s30 = sshll.u32 (!%p243_p7), %s249_s27, 7 }
  0x1d   : > { %s719_s4 = scalar_lea.vmem (!%p243_p7), [#allocation2], %s538_s30  ;;  %p278_p8 = scmp.lt.s32.totalorder (!%p243_p7), %s539_s5, 5 }
  0x21   : > { %v289_v16 = vld [vmem:[%s755_s0] sm:$0x3]  ;;  %v640_v17 = vmov 0   ;;  %v588_v19 = vld [vmem:[%s719_s4 + $0x74] ss:$8 sps:$4 sm:$0xff]   ;;  %v316_v40 = vlaneseq  ;;  %s763_s5 = smov (!%p278_p8, %s539_s5), 5 }
  0x22   : > { %438 = vmatprep.mubr.bf16.mxu0 %v640_v17  ;;  %v542_v18 = vmul.f32 -1.442695, %v289_v16  ;;  %v590_v20 = vld [vmem:[%s719_s4 + $0x70] ss:$8 sps:$4 sm:$0xff]   ;;  %406 = vmatprep.subr.bf16.mxu0 %v588_v19  ;;  %v591_v21 = vld [vmem:[%s719_s4 + $0x64] ss:$8 sps:$4 sm:$0xff]   ;;  %s280_s8 = scalar_lea.vmem %s757_s2, %s763_s5 }
  0x23   : > { %407 = vmatpush1.bf16.msra.mxu0 %v590_v20  ;;  %v593_v22 = vld [vmem:[%s719_s4 + $0x60] ss:$8 sps:$4 sm:$0xff]   ;;  %v594_v23 = vld [vmem:[%s719_s4 + $0x54] ss:$8 sps:$4 sm:$0xff]   ;;  %v596_v24 = vld [vmem:[%s719_s4 + $0x50] ss:$8 sps:$4 sm:$0xff]  }
  0x24   : > { %612 = vpow2.f32 %v542_v18  ;;  %408 = vmatprep.subr.bf16.mxu0 %v591_v21  ;;  %v597_v25 = vld [vmem:[%s719_s4 + $0x44] ss:$8 sps:$4 sm:$0xff]   ;;  %v599_v26 = vld [vmem:[%s719_s4 + $0x40] ss:$8 sps:$4 sm:$0xff]   ;;  %v600_v27 = vld [vmem:[%s719_s4 + $0x34] ss:$8 sps:$4 sm:$0xff]  }
  0x25   : > { %v602_v30 = vld [vmem:[%s719_s4 + $0x30] ss:$8 sps:$4 sm:$0xff]   ;;  %v603_v31 = vld [vmem:[%s719_s4 + $0x24] ss:$8 sps:$4 sm:$0xff]   ;;  %v605_v32 = vld [vmem:[%s719_s4 + $0x20] ss:$8 sps:$4 sm:$0xff]  }
  0x26   : > { %v606_v33 = vld [vmem:[%s719_s4 + $0x14] ss:$8 sps:$4 sm:$0xff]   ;;  %v608_v34 = vld [vmem:[%s719_s4 + $0x10] ss:$8 sps:$4 sm:$0xff]   ;;  %v609_v35 = vld [vmem:[%s719_s4 + $0x4] ss:$8 sps:$4 sm:$0xff]  }
  0x27   : > { %409 = vmatpush1.bf16.msra.mxu0 %v593_v22  ;;  %v611_v36 = vld [vmem:[%s719_s4] ss:$8 sps:$4 sm:$0xff]   ;;  %v317_v41 = vshrl.u32 %v316_v40, 7  ;;  %s541_s9 = sshll.u32 %s763_s5, 1 }
  0x28   : > { %410 = vmatprep.subr.bf16.mxu0 %v594_v23  ;;  %v314_v44 = vld [vmem:[%s280_s8] sm:$0x3]  ;;  %s286_s12 = scalar_lea.vmem %s758_s3, %s541_s9 }
  0x29   : > { %v318_v42 = vsub.s32 0, %v317_v41  ;;  %v322_v43 = vsub.s32 1, %v317_v41 }
  0x2b   : > { %411 = vmatpush1.bf16.msra.mxu0 %v596_v24  ;;  %v319_v45 = vrot.slane %v314_v44, %v318_v42  ;;  %v323_v46 = vrot.slane %v314_v44, %v322_v43 }
  0x2c   : > { %412 = vmatprep.subr.bf16.mxu0 %v597_v25 }
  0x2f   : > { %413 = vmatpush1.bf16.msra.mxu0 %v599_v26 }
  0x30   : > { %414 = vmatprep.subr.bf16.mxu0 %v600_v27 }
  0x31   : > { %v613_v28 = vpop.eup %612 }
  0x32   : > { %v293_v29 = vadd.f32 1.0, %v613_v28 }
  0x33   : > { %415 = vmatpush1.bf16.msra.mxu0 %v602_v30 }
  0x34   : > { %614 = vrcp.f32 %v293_v29  ;;  %416 = vmatprep.subr.bf16.mxu0 %v603_v31 }
  0x37   : > { %417 = vmatpush1.bf16.msra.mxu0 %v605_v32 }
  0x38   : > { %418 = vmatprep.subr.bf16.mxu0 %v606_v33 }
  0x3b   : > { %419 = vmatpush1.bf16.msra.mxu0 %v608_v34 }
  0x3c   : > { %420 = vmatprep.subr.bf16.mxu0 %v609_v35 }
  0x3f   : > { %421 = vmatpush1.bf16.msra.mxu0 %v611_v36 }
  0x41   : > { %v615_v37 = vpop.eup %614 }
  0x42   : > { %v296_v38 = vmul.f32 %v615_v37, %v289_v16 }
  0x44   : > { %v297_v39 = vpack.c.bf16 %v296_v38, %v296_v38 }
  0x46   : > { %439 = vmatmul.mubr.bf16.vlgmr.msra.gmra.mxu0 %v297_v39 }
 0x106   : > { %v440_v47 = vpop.f32.mrf.mxu0 }
 0x107   : > { %v441_v49 = vadd.f32 %v440_v47, %v319_v45 }
 0x108   : > { %v442_v48 = vpop.f32.mrf.mxu0 }
 0x109   : > { %v443_v50 = vadd.f32 %v442_v48, %v323_v46 }
 0x10a   : > { %v444_v51 = vpop.f32.mrf.mxu0 }
 0x10b   : > { %v449_v52 = vcombine.low %v441_v49, %v443_v50 }
 0x10c   : > { %v445_v53 = vpop.f32.mrf.mxu0 }
 0x10d   : > { %559 = vst.sshfl [vmem:[%s286_s12] sm:$0x33 pattern:$0x76325410] %v449_v52 }
 0x10e PF: > { %p10_p9 = scmp.ge.s32.totalorder %s678_s16, 5   ;;  %s759_s12 = smov %s634_s13 }
 0x10f   : > { %s760_s13 = smov %s687_s19  ;;  %s761_s14 = smov %s678_s16 }
 0x110   :  { %12 = sbr.rel (!%p10_p9) target bundleno = 2 (0x2), region = 108 }

// kernel: hd_block_single.8
= control target key start
LH: loop header
LB: loop body
LE: loop exit
PB: predicated region body
PF: predicated region fallthrough
CT: control target
= control target key end

     0   :  { %s1102_s21 = smov 0   ;;  %s1104_s22 = smov 0   ;;  %s1245_s0 = inlined_call_operand.vmem [shape: f32[2,16,128], index: 0, kind: input, shape index: {}]   ;;  %s1246_s1 = inlined_call_operand.vmem [shape: f32[2,1,128], index: 1, kind: input, shape index: {}]   ;;  %s1247_s2 = inlined_call_operand.vmem [shape: f32[2,1,128], index: 2, kind: input, shape index: {}]   ;;  %s1248_s3 = inlined_call_operand.vmem [shape: bf16[128,384], index: 3, kind: input, shape index: {}]   ;;  %s1249_s4 = inlined_call_operand.vmem [shape: f32[1,384], index: 4, kind: input, shape index: {}]   ;;  %s1250_s5 = inlined_call_operand.vmem [shape: f32[3,1,128], index: 5, kind: input, shape index: {}]   ;;  %s1251_s6 = inlined_call_operand.vmem [shape: bf16[3,2,16,128], index: 6, kind: output, shape index: {}]  }
   0x1   :  { %s1106_s23 = smov 0   ;;  %s1108_s24 = smov 0  }
   0x2   :  { %s1110_s25 = smov 0   ;;  %s1112_s26 = smov 0  }
   0x3   :  { %s1114_s27 = smov 0  }
   0x4 LB: > { %s31_s28 = sadd.s32 1, %s1055_s25  ;;  %s35_s29 = sadd.s32 1, %s1059_s26  ;;  %s1063_s27 = sphi %s1114_s27, %s16_s27   ;;  %s1059_s26 = sphi %s1112_s26, %s1257_s26   ;;  %s1055_s25 = sphi %s1110_s25, %s1256_s25   ;;  %s1051_s24 = sphi %s1108_s24, %s1255_s24   ;;  %s1047_s23 = sphi %s1106_s23, %s1254_s23   ;;  %s1043_s22 = sphi %s1104_s22, %s1253_s22   ;;  %s1039_s21 = sphi %s1102_s21, %s1252_s21  }
   0x5   : > { %p33_p0 = scmp.ge.s32.totalorder %s31_s28, 2  ;;  %p129_p1 = scmp.ne.s32.totalorder %s1043_s22, %s1039_s21 }
   0x6   : > { %p130_p2 = scmp.eq.s32.totalorder %s1063_s27, 0  ;;  %s122_s7 = sadd.s32 1, %s1043_s22 }
   0x7   : > { %s1259_s28 = smov (%p33_p0, %s31_s28), 0  ;;  %s1261_s29 = smov (!%p33_p0, %s35_s29), %s1059_s26 }
   0x8   : > { %p131_p3 = por %p130_p2, %p129_p1  ;;  %p37_p4 = scmp.ge.s32.totalorder %s1261_s29, 3 }
   0x9   : > { %p862_p6 = scmp.ge.s32.totalorder %s1063_s27, 6 }
   0xa   : > { %s1263_s29 = smov (%p37_p4, %s1261_s29), 0 }
   0xb   : > { %s119_s30 = ssub.s32 %s1059_s26, %s1263_s29  ;;  %237 = sbr.rel (%p862_p6) target bundleno = 30 (0x1e), region = 16 }
   0xc   : > { %p120_p5 = scmp.eq.s32.totalorder %s119_s30, 0 }
   0xe   : > { %s1151_s8 = scalar_select %p120_p5, %s1043_s22, %s122_s7  }
  0x10   : > { %265 = sbr.rel (!%p131_p3) target bundleno = 30 (0x1e), region = 32  ;;  %s267_s9 = sand.u32 (%p131_p3), 1, %s1043_s22  }
  0x11   : > { %s864_s10 = sshll.u32 (%p131_p3), %s1059_s26, 2  ;;  %s863_s11 = sshll.u32 (%p131_p3), %s267_s9, 6 }
  0x12   : > { %s1159_s14 = scalar_lea.vmem (%p131_p3), %s1248_s3, %s864_s10  ;;  %s269_s15 = scalar_lea.vmem (%p131_p3), [#allocation2], %s863_s11 }
  0x13   : > { %v288_v0 = vld [vmem:[%s1159_s14] sm:$0xf] (%p131_p3)  ;;  %v290_v1 = vld [vmem:[%s1159_s14 + $0xc] sm:$0xf] (%p131_p3)  ;;  %v292_v2 = vld [vmem:[%s1159_s14 + $0x18] sm:$0xf] (%p131_p3) }
  0x14   : > { %289 = vst [vmem:[%s269_s15] sm:$0xf] (%p131_p3), %v288_v0  ;;  %291 = vst [vmem:[%s269_s15 + $0x4] sm:$0xf] (%p131_p3), %v290_v1  ;;  %v294_v3 = vld [vmem:[%s1159_s14 + $0x24] sm:$0xf] (%p131_p3) }
  0x15   : > { %v296_v4 = vld [vmem:[%s1159_s14 + $0x30] sm:$0xf]  ;;  %293 = vst [vmem:[%s269_s15 + $0x8] sm:$0xf] %v292_v2  ;;  %295 = vst [vmem:[%s269_s15 + $0xc] sm:$0xf] %v294_v3 }
  0x16   : > { %297 = vst [vmem:[%s269_s15 + $0x10] sm:$0xf] %v296_v4  ;;  %v298_v5 = vld [vmem:[%s1159_s14 + $0x3c] sm:$0xf]  ;;  %v300_v6 = vld [vmem:[%s1159_s14 + $0x48] sm:$0xf] }
  0x17   : > { %v302_v7 = vld [vmem:[%s1159_s14 + $0x54] sm:$0xf]  ;;  %299 = vst [vmem:[%s269_s15 + $0x14] sm:$0xf] %v298_v5  ;;  %301 = vst [vmem:[%s269_s15 + $0x18] sm:$0xf] %v300_v6 }
  0x18   : > { %303 = vst [vmem:[%s269_s15 + $0x1c] sm:$0xf] %v302_v7  ;;  %v304_v8 = vld [vmem:[%s1159_s14 + $0x60] sm:$0xf]  ;;  %v306_v9 = vld [vmem:[%s1159_s14 + $0x6c] sm:$0xf] }
  0x19   : > { %v308_v10 = vld [vmem:[%s1159_s14 + $0x78] sm:$0xf]  ;;  %305 = vst [vmem:[%s269_s15 + $0x20] sm:$0xf] %v304_v8  ;;  %307 = vst [vmem:[%s269_s15 + $0x24] sm:$0xf] %v306_v9 }
  0x1a   : > { %309 = vst [vmem:[%s269_s15 + $0x28] sm:$0xf] %v308_v10  ;;  %v310_v11 = vld [vmem:[%s1159_s14 + $0x84] sm:$0xf]  ;;  %v312_v12 = vld [vmem:[%s1159_s14 + $0x90] sm:$0xf] }
  0x1b   : > { %v314_v13 = vld [vmem:[%s1159_s14 + $0x9c] sm:$0xf]  ;;  %311 = vst [vmem:[%s269_s15 + $0x2c] sm:$0xf] %v310_v11  ;;  %313 = vst [vmem:[%s269_s15 + $0x30] sm:$0xf] %v312_v12 }
  0x1c   : > { %315 = vst [vmem:[%s269_s15 + $0x34] sm:$0xf] %v314_v13  ;;  %v316_v14 = vld [vmem:[%s1159_s14 + $0xa8] sm:$0xf]  ;;  %v318_v15 = vld [vmem:[%s1159_s14 + $0xb4] sm:$0xf] }
  0x1d   : > { %317 = vst [vmem:[%s269_s15 + $0x38] sm:$0xf] %v316_v14  ;;  %319 = vst [vmem:[%s269_s15 + $0x3c] sm:$0xf] %v318_v15 }
  0x1e PF: > { %p865_p7 = scmp.ge.s32.totalorder %s1063_s27, 1  ;;  %p386_p8 = scmp.lt.s32.totalorder %s1063_s27, 7 }
  0x20   : > { %p387_p9 = pnand %p865_p7, %p386_p8 }
  0x21   : > { %p452_p10 = scmp.lt.s32.totalorder (!%p387_p9), %s1047_s23, 1  ;;  %s393_s20 = sand.u32 (!%p387_p9), 1, %s1039_s21  }
  0x22   : > { %390 = sbr.rel (%p387_p9) target bundleno = 733 (0x2dd), region = 81  ;;  %s866_s30 = sshll.u32 (!%p387_p9), %s393_s20, 6 }
  0x23   : > { %s395_s7 = scalar_lea.vmem (!%p387_p9), [#allocation2], %s866_s30  ;;  %p467_p11 = scmp.lt.s32.totalorder (!%p387_p9), %s1051_s24, 2 }
  0x24   : > { %p882_p12 = scmp.ge.s32.totalorder (!%p387_p9), %s1051_s24, 2 }
  0x27   : > { %s1265_s23 = smov (!%p452_p10, %s1047_s23), 1  ;;  %v1065_v18 = vmov 0.0   ;;  %v993_v27 = vld [vmem:[%s395_s7 + $0x38] sm:$0xff]   ;;  %v994_v28 = vld [vmem:[%s395_s7 + $0x30] sm:$0xff]   ;;  %v995_v29 = vld [vmem:[%s395_s7 + $0x28] sm:$0xff]   ;;  %vm1066_vm0 = vmmov 0   ;;  %v516_v41 = vlaneseq }
  0x28   : > { %s891_s16 = sshll.u32 %s1265_s23, 4  ;;  %915 = vmatprep.subr.bf16.mxu0 %v1065_v18  ;;  %v996_v30 = vld [vmem:[%s395_s7 + $0x20] sm:$0xff]   ;;  %931 = vmatprep.mubr.msk.bf16.mxu0 %vm1066_vm0, %v1065_v18  ;;  %v997_v31 = vld [vmem:[%s395_s7 + $0x18] sm:$0xff]   ;;  %v998_v32 = vld [vmem:[%s395_s7 + $0x10] sm:$0xff]   ;;  %s869_s9 = sshll.u32 %s1265_s23, 1 }
  0x29   : > { %s459_s19 = scalar_lea.vmem %s1245_s0, %s891_s16  ;;  %916 = vmatpush3.bf16.msra.mxu0 %v993_v27  ;;  %v999_v33 = vld [vmem:[%s395_s7 + $0x8] sm:$0xff]   ;;  %v1000_v34 = vld [vmem:[%s395_s7] sm:$0xff]   ;;  %s463_s30 = scalar_lea.vmem %s1246_s1, %s1265_s23  ;;  %v517_v42 = vshrl.u32 %v516_v41, 7 }
  0x2a   : > { %v488_v16 = vld [vmem:[%s459_s19] sm:$0xff]  ;;  %v489_v17 = vld [vmem:[%s459_s19 + $0x8] sm:$0xff]  ;;  %917 = vmatprep.subr.bf16.mxu0 %v1065_v18  ;;  %s1190_s21 = scalar_select %p467_p11, %s1051_s24, 2 }
  0x2b   : > { %490 = vadd.xlane.f32.xlu0 %v488_v16  ;;  %v513_v43 = vld [vmem:[%s463_s30] sm:$0x1]  ;;  %v518_v45 = vsub.s32 0, %v517_v42  ;;  %s466_s10 = scalar_lea.vmem %s1247_s2, %s1265_s23 }
  0x2c   : > { %s472_s12 = scalar_lea.vmem %s1250_s5, %s1190_s21  ;;  %s870_s13 = sshll.u32 %s1190_s21, 2  ;;  %v514_v44 = vadd.f32 1.0, %v513_v43  ;;  %v872_v52 = vld [vmem:[%s466_s10] ss:$0 sm:$0xff] }
  0x2d   : > { %918 = vmatpush3.bf16.msra.mxu0 %v994_v28  ;;  %s483_s14 = sadd.s32 %s870_s13, %s869_s9 }
  0x2e   : > { %919 = vmatprep.subr.bf16.mxu0 %v1065_v18  ;;  %s871_s15 = sshll.u32 %s483_s14, 2  ;;  %v519_v48 = vrot.slane %v514_v44, %v518_v45  ;;  %s469_s14 = scalar_lea.vmem %s1249_s4, %s1190_s21 }
  0x2f   : > { %492 = vadd.xlane.f32.xlu0 %v489_v17  ;;  %s1201_s18 = scalar_lea.vmem %s1251_s6, %s871_s15  ;;  %v873_v57 = vld [vmem:[%s469_s14] ss:$0 sm:$0xff] }
  0x31   : > { %920 = vmatpush3.bf16.msra.mxu0 %v995_v29 }
  0x32   : > { %921 = vmatprep.subr.bf16.mxu0 %v1065_v18 }
  0x35   : > { %922 = vmatpush3.bf16.msra.mxu0 %v996_v30 }
  0x36   : > { %923 = vmatprep.subr.bf16.mxu0 %v1065_v18 }
  0x39   : > { %924 = vmatpush3.bf16.msra.mxu0 %v997_v31 }
  0x3a   : > { %925 = vmatprep.subr.bf16.mxu0 %v1065_v18 }
  0x3d   : > { %926 = vmatpush3.bf16.msra.mxu0 %v998_v32 }
  0x3e   : > { %927 = vmatprep.subr.bf16.mxu0 %v1065_v18 }
  0x41   : > { %928 = vmatpush3.bf16.msra.mxu0 %v999_v33 }
  0x42   : > { %929 = vmatprep.subr.bf16.mxu0 %v1065_v18 }
  0x45   : > { %930 = vmatpush3.bf16.msra.mxu0 %v1000_v34 }
  0xb4   : > { %v491_v19 = vpop.xlane.xlu0 %490 }
  0xb5   : > { %v495_v20 = vmul.f32 0.0078125, %v491_v19 }
  0xb7   : > { %v497_v21 = vsub.f32 %v488_v16, %v495_v20 }
  0xb8   : > { %v493_v22 = vpop.xlane.xlu0 %492 }
  0xb9   : > { %v496_v23 = vmul.f32 0.0078125, %v493_v22  ;;  %v499_v24 = vmul.f32 %v497_v21, %v497_v21 }
  0xbb   : > { %v498_v25 = vsub.f32 %v489_v17, %v496_v23  ;;  %501 = vadd.xlane.f32.xlu1 %v499_v24 }
  0xbd   : > { %v500_v26 = vmul.f32 %v498_v25, %v498_v25 }
  0xbf   : > { %503 = vadd.xlane.f32.xlu1 %v500_v26 }
 0x144   : > { %v502_v35 = vpop.xlane.xlu1 %501 }
 0x145   : > { %v505_v36 = vmul.f32 0.0078125, %v502_v35 }
 0x147   : > { %v507_v37 = vadd.f32 1e-06, %v505_v36 }
 0x148   : > { %v504_v38 = vpop.xlane.xlu1 %503 }
 0x149   : > { %1001 = vrsqrt.f32 %v507_v37  ;;  %v506_v39 = vmul.f32 0.0078125, %v504_v38 }
 0x14b   : > { %v508_v40 = vadd.f32 1e-06, %v506_v39 }
 0x14d   : > { %1003 = vrsqrt.f32 %v508_v40 }
 0x156   : > { %v1002_v46 = vpop.eup %1001 }
 0x157   : > { %v511_v47 = vmul.f32 %v1002_v46, %v497_v21 }
 0x159   : > { %v521_v51 = vmul.f32 %v519_v48, %v511_v47 }
 0x15a   : > { %v1004_v49 = vpop.eup %1003 }
 0x15b   : > { %v512_v50 = vmul.f32 %v1004_v49, %v498_v25  ;;  %v530_v54 = vadd.f32 %v872_v52, %v521_v51 }
 0x15d   : > { %v522_v53 = vmul.f32 %v519_v48, %v512_v50 }
 0x15f   : > { %v531_v55 = vadd.f32 %v872_v52, %v522_v53 }
 0x161   : > { %v532_v56 = vpack.c.bf16 %v531_v55, %v530_v54 }
 0x163   : > { %932 = vmatmul.mubr.bf16.vlgmr.msra.gmra.mxu0 %v532_v56 }
 0x223   : > { %v638_v58 = vpop.f32.mrf.mxu0 }
 0x224   : > { %v639_v59 = vadd.f32 %v873_v57, %v638_v58 }
 0x225   : > { %v933_v60 = vpop.f32.mrf.mxu0  ;;  %648 = sbr.rel (%p882_p12) target bundleno = 723 (0x2d3), region = 89 }
 0x227   : > { %v641_v61 = vpop.f32.mrf.mxu0 }
 0x228   : > { %v642_v62 = vadd.f32 %v873_v57, %v641_v61 }
 0x229   : > { %v934_v63 = vpop.f32.mrf.mxu0 }
 0x22a   : > { %v649_v0 = vmul.f32 %v639_v59, %v639_v59  ;;  %v650_v1 = vmul.f32 %v642_v62, %v642_v62  ;;  %v883_v11 = vld [vmem:[%s472_s12] ss:$0 sm:$0xff] }
 0x22c   : > { %651 = vadd.xlane.f32.xlu0 %v649_v0 }
 0x230   : > { %653 = vadd.xlane.f32.xlu0 %v650_v1 }
 0x2b5   : > { %v652_v2 = vpop.xlane.xlu0 %651 }
 0x2b6   : > { %v655_v3 = vmul.f32 0.0078125, %v652_v2 }
 0x2b8   : > { %v657_v4 = vadd.f32 1e-05, %v655_v3 }
 0x2b9   : > { %v654_v5 = vpop.xlane.xlu0 %653 }
 0x2ba   : > { %1005 = vrsqrt.f32 %v657_v4  ;;  %v656_v6 = vmul.f32 0.0078125, %v654_v5 }
 0x2bc   : > { %v658_v7 = vadd.f32 1e-05, %v656_v6 }
 0x2be   : > { %1007 = vrsqrt.f32 %v658_v7 }
 0x2c7   : > { %v1006_v8 = vpop.eup %1005 }
 0x2c8   : > { %v661_v9 = vmul.f32 %v1006_v8, %v639_v59 }
 0x2ca   : > { %v670_v13 = vmul.f32 %v883_v11, %v661_v9 }
 0x2cb   : > { %v1008_v10 = vpop.eup %1007 }
 0x2cc   : > { %v662_v12 = vmul.f32 %v1008_v10, %v642_v62 }
 0x2ce   : > { %v671_v14 = vmul.f32 %v883_v11, %v662_v12 }
 0x2d0   : > { %v899_v15 = vpack.c.bf16 %v671_v14, %v670_v13 }
 0x2d2   : > { %900 = vst [vmem:[%s1201_s18] sm:$0xff] %v899_v15  }
 0x2d3 PF: > { %p886_p13 = scmp.ne.s32.totalorder %s1051_s24, 2 }
 0x2d5   : > { %685 = sbr.rel (%p886_p13) target bundleno = 733 (0x2dd), region = 93 }
 0x2da   : > { %v904_v16 = vpack.c.bf16 %v642_v62, %v639_v59 }
 0x2dc   : > { %905 = vst [vmem:[%s1201_s18] sm:$0xff] %v904_v16  }
 0x2dd PF: > { %s16_s27 = sadd.s32 1, %s1063_s27   ;;  %s1252_s21 = smov %s1043_s22 }
 0x2de   : > { %p13_p0 = scmp.ge.s32.totalorder %s16_s27, 8   ;;  %s1253_s22 = smov %s1151_s8 }
 0x2df   : > { %s1254_s23 = smov %s1055_s25  ;;  %s1255_s24 = smov %s1059_s26 }
 0x2e0   : > { %s1256_s25 = smov %s1259_s28  ;;  %s1257_s26 = smov %s1263_s29 }
 0x2e1   :  { %15 = sbr.rel (!%p13_p0) target bundleno = 4 (0x4), region = 143 }

// kernel: squeeze.11
= control target key start
LH: loop header
LB: loop body
LE: loop exit
PB: predicated region body
PF: predicated region fallthrough
CT: control target
= control target key end

     0   :  { %vm67_vm0 = vcmask 261120   ;;  %s563_s10 = smov 96   ;;  %s564_s11 = smov 32   ;;  %v565_v29 = vmov 0.0   ;;  %s742_s0 = inlined_call_operand.vmem [shape: bf16[1,2,16,128], index: 0, kind: input, shape index: {}]   ;;  %s743_s1 = inlined_call_operand.vmem [shape: bf16[2,16,4,32], index: 1, kind: output, shape index: {}]  }
   0x1   :  { %v524_v0 = vld [vmem:[%s742_s0] sm:$0xff]   ;;  %v527_v1 = vld [vmem:[%s742_s0 + $0x8] sm:$0xff]   ;;  %s562_s0 = smov 64  }
   0x2   :  { %v525_v2 = vunpack.c.l.bf16 %v524_v0  ;;  %v526_v3 = vunpack.c.h.bf16 %v524_v0  ;;  %v521_v4 = vunpack.c.l.bf16 %v527_v1  ;;  %v522_v5 = vunpack.c.h.bf16 %v527_v1 }
   0x4   :  { %v542_v6 = vpack.i.bf16 %v526_v3, %v525_v2  ;;  %74 = vst.msk [vmem:[#allocation0 + $0x40] ss:$8 sm:$0xf] %vm67_vm0, %v526_v3   ;;  %76 = vst.msk [vmem:[#allocation0 + $0x40] ss:$8 sm:$0xf0] %vm67_vm0, %v526_v3   ;;  %v547_v7 = vpack.i.bf16 %v522_v5, %v521_v4 }
   0x5   :  { %68 = vst.msk [vmem:[#allocation0] ss:$8 sm:$0xf] %vm67_vm0, %v525_v2   ;;  %69 = vst.msk [vmem:[#allocation0] ss:$8 sm:$0xf0] %vm67_vm0, %v525_v2  }
   0x6   :  { %88 = vst.msk [vmem:[#allocation0 + $0xc0] ss:$8 sm:$0xf] %vm67_vm0, %v522_v5   ;;  %90 = vst.msk [vmem:[#allocation0 + $0xc0] ss:$8 sm:$0xf0] %vm67_vm0, %v522_v5   ;;  %543 = vrot.lane.b32.xlu1 %v542_v6, %s562_s0  ;;  %533 = vrot.lane.b32.xlu0 %v542_v6, %s563_s10 }
   0x7   :  { %81 = vst.msk [vmem:[#allocation0 + $0x80] ss:$8 sm:$0xf] %vm67_vm0, %v521_v4   ;;  %83 = vst.msk [vmem:[#allocation0 + $0x80] ss:$8 sm:$0xf0] %vm67_vm0, %v521_v4  }
   0xa   :  { %548 = vrot.lane.b32.xlu1 %v547_v7, %s562_s0  ;;  %538 = vrot.lane.b32.xlu0 %v547_v7, %s563_s10 }
   0xe   :  { %558 = vrot.lane.b32.xlu1 %v547_v7, %s564_s11  ;;  %553 = vrot.lane.b32.xlu0 %v542_v6, %s564_s11 }
  0x78   :  { %v544_v8 = vpop.permute.xlu1 %543  ;;  %v534_v9 = vpop.permute.xlu0 %533 }
  0x79   :  { %v546_v10 = vunpack.i.h.bf16 %v544_v8  ;;  %v545_v11 = vunpack.i.l.bf16 %v544_v8  ;;  %v536_v12 = vunpack.i.h.bf16 %v534_v9  ;;  %v535_v13 = vunpack.i.l.bf16 %v534_v9 }
  0x7b   :  { %140 = vst.msk [vmem:[#allocation0 + $0x42] ss:$8 sm:$0xf] %vm67_vm0, %v546_v10   ;;  %142 = vst.msk [vmem:[#allocation0 + $0x42] ss:$8 sm:$0xf0] %vm67_vm0, %v546_v10  }
  0x7c   :  { %131 = vst.msk [vmem:[#allocation0 + $0x2] ss:$8 sm:$0xf] %vm67_vm0, %v545_v11   ;;  %133 = vst.msk [vmem:[#allocation0 + $0x2] ss:$8 sm:$0xf0] %vm67_vm0, %v545_v11   ;;  %v549_v14 = vpop.permute.xlu1 %548  ;;  %v539_v15 = vpop.permute.xlu0 %538 }
  0x7d   :  { %105 = vst.msk [vmem:[#allocation0 + $0x41] ss:$8 sm:$0xf] %vm67_vm0, %v536_v12   ;;  %107 = vst.msk [vmem:[#allocation0 + $0x41] ss:$8 sm:$0xf0] %vm67_vm0, %v536_v12   ;;  %v551_v16 = vunpack.i.h.bf16 %v549_v14  ;;  %v550_v17 = vunpack.i.l.bf16 %v549_v14  ;;  %v541_v18 = vunpack.i.h.bf16 %v539_v15  ;;  %v540_v19 = vunpack.i.l.bf16 %v539_v15 }
  0x7e   :  { %96 = vst.msk [vmem:[#allocation0 + $0x1] ss:$8 sm:$0xf] %vm67_vm0, %v535_v13   ;;  %98 = vst.msk [vmem:[#allocation0 + $0x1] ss:$8 sm:$0xf0] %vm67_vm0, %v535_v13  }
  0x7f   :  { %158 = vst.msk [vmem:[#allocation0 + $0xc2] ss:$8 sm:$0xf] %vm67_vm0, %v551_v16   ;;  %160 = vst.msk [vmem:[#allocation0 + $0xc2] ss:$8 sm:$0xf0] %vm67_vm0, %v551_v16  }
  0x80   :  { %149 = vst.msk [vmem:[#allocation0 + $0x82] ss:$8 sm:$0xf] %vm67_vm0, %v550_v17   ;;  %151 = vst.msk [vmem:[#allocation0 + $0x82] ss:$8 sm:$0xf0] %vm67_vm0, %v550_v17   ;;  %v559_v20 = vpop.permute.xlu1 %558  ;;  %v554_v21 = vpop.permute.xlu0 %553 }
  0x81   :  { %123 = vst.msk [vmem:[#allocation0 + $0xc1] ss:$8 sm:$0xf] %vm67_vm0, %v541_v18   ;;  %125 = vst.msk [vmem:[#allocation0 + $0xc1] ss:$8 sm:$0xf0] %vm67_vm0, %v541_v18   ;;  %v561_v22 = vunpack.i.h.bf16 %v559_v20  ;;  %v560_v23 = vunpack.i.l.bf16 %v559_v20  ;;  %v556_v24 = vunpack.i.h.bf16 %v554_v21  ;;  %v555_v25 = vunpack.i.l.bf16 %v554_v21 }
  0x82   :  { %114 = vst.msk [vmem:[#allocation0 + $0x81] ss:$8 sm:$0xf] %vm67_vm0, %v540_v19   ;;  %116 = vst.msk [vmem:[#allocation0 + $0x81] ss:$8 sm:$0xf0] %vm67_vm0, %v540_v19  }
  0x83   :  { %193 = vst.msk [vmem:[#allocation0 + $0xc3] ss:$8 sm:$0xf] %vm67_vm0, %v561_v22   ;;  %195 = vst.msk [vmem:[#allocation0 + $0xc3] ss:$8 sm:$0xf0] %vm67_vm0, %v561_v22  }
  0x84   :  { %184 = vst.msk [vmem:[#allocation0 + $0x83] ss:$8 sm:$0xf] %vm67_vm0, %v560_v23   ;;  %186 = vst.msk [vmem:[#allocation0 + $0x83] ss:$8 sm:$0xf0] %vm67_vm0, %v560_v23  }
  0x85   :  { %175 = vst.msk [vmem:[#allocation0 + $0x43] ss:$8 sm:$0xf] %vm67_vm0, %v556_v24   ;;  %177 = vst.msk [vmem:[#allocation0 + $0x43] ss:$8 sm:$0xf0] %vm67_vm0, %v556_v24  }
  0x86   :  { %166 = vst.msk [vmem:[#allocation0 + $0x3] ss:$8 sm:$0xf] %vm67_vm0, %v555_v25   ;;  %168 = vst.msk [vmem:[#allocation0 + $0x3] ss:$8 sm:$0xf0] %vm67_vm0, %v555_v25  }
  0x8a   :  { %v390_v41 = vld [vmem:[#allocation0 + $0xc0] sm:$0xf]  ;;  %v398_v45 = vld [vmem:[#allocation0 + $0xc8] sm:$0xf]  ;;  %v406_v46 = vld [vmem:[#allocation0 + $0xd0] sm:$0xf] }
  0x8b   :  { %v326_v26 = vld [vmem:[#allocation0 + $0x80] sm:$0xf]  ;;  %v334_v27 = vld [vmem:[#allocation0 + $0x88] sm:$0xf]  ;;  %v342_v28 = vld [vmem:[#allocation0 + $0x90] sm:$0xf]  ;;  %v391_v44 = vpack.c.bf16 %v565_v29, %v390_v41  ;;  %v399_v48 = vpack.c.bf16 %v565_v29, %v398_v45  ;;  %v407_v49 = vpack.c.bf16 %v565_v29, %v406_v46 }
  0x8c   :  { %v327_v30 = vpack.c.bf16 %v565_v29, %v326_v26  ;;  %v335_v31 = vpack.c.bf16 %v565_v29, %v334_v27  ;;  %v343_v32 = vpack.c.bf16 %v565_v29, %v342_v28  ;;  %v350_v33 = vld [vmem:[#allocation0 + $0x98] sm:$0xf]  ;;  %v358_v34 = vld [vmem:[#allocation0 + $0xa0] sm:$0xf]  ;;  %v366_v35 = vld [vmem:[#allocation0 + $0xa8] sm:$0xf] }
  0x8d   :  { %v351_v36 = vpack.c.bf16 %v565_v29, %v350_v33  ;;  %v359_v37 = vpack.c.bf16 %v565_v29, %v358_v34  ;;  %v367_v38 = vpack.c.bf16 %v565_v29, %v366_v35  ;;  %v374_v39 = vld [vmem:[#allocation0 + $0xb0] sm:$0xf]  ;;  %v382_v40 = vld [vmem:[#allocation0 + $0xb8] sm:$0xf]  ;;  %v422_v51 = vld [vmem:[#allocation0 + $0xe0] sm:$0xf] }
  0x8e   :  { %503 = vst [vmem:[%s743_s1 + $0x20] sm:$0x3] %v327_v30  ;;  %504 = vst [vmem:[%s743_s1 + $0x22] sm:$0x3] %v335_v31  ;;  %v375_v42 = vpack.c.bf16 %v565_v29, %v374_v39  ;;  %v383_v43 = vpack.c.bf16 %v565_v29, %v382_v40  ;;  %v414_v47 = vld [vmem:[#allocation0 + $0xd8] sm:$0xf]  ;;  %v423_v54 = vpack.c.bf16 %v565_v29, %v422_v51 }
  0x8f   :  { %505 = vst [vmem:[%s743_s1 + $0x24] sm:$0x3] %v343_v32  ;;  %506 = vst [vmem:[%s743_s1 + $0x26] sm:$0x3] %v351_v36  ;;  %v415_v50 = vpack.c.bf16 %v565_v29, %v414_v47  ;;  %v430_v52 = vld [vmem:[#allocation0 + $0xe8] sm:$0xf] }
  0x90   :  { %507 = vst [vmem:[%s743_s1 + $0x28] sm:$0x3] %v359_v37  ;;  %508 = vst [vmem:[%s743_s1 + $0x2a] sm:$0x3] %v367_v38  ;;  %v438_v53 = vld [vmem:[#allocation0 + $0xf0] sm:$0xf]  ;;  %v431_v55 = vpack.c.bf16 %v565_v29, %v430_v52 }
  0x91   :  { %509 = vst [vmem:[%s743_s1 + $0x2c] sm:$0x3] %v375_v42  ;;  %510 = vst [vmem:[%s743_s1 + $0x2e] sm:$0x3] %v383_v43  ;;  %v439_v56 = vpack.c.bf16 %v565_v29, %v438_v53  ;;  %v446_v57 = vld [vmem:[#allocation0 + $0xf8] sm:$0xf] }
  0x92   :  { %511 = vst [vmem:[%s743_s1 + $0x30] sm:$0x3] %v391_v44  ;;  %v262_v58 = vld [vmem:[#allocation0 + $0x40] sm:$0xf]  ;;  %v270_v59 = vld [vmem:[#allocation0 + $0x48] sm:$0xf]  ;;  %v447_v60 = vpack.c.bf16 %v565_v29, %v446_v57 }
  0x93   :  { %512 = vst [vmem:[%s743_s1 + $0x32] sm:$0x3] %v399_v48  ;;  %513 = vst [vmem:[%s743_s1 + $0x34] sm:$0x3] %v407_v49  ;;  %v263_v61 = vpack.c.bf16 %v565_v29, %v262_v58  ;;  %v271_v62 = vpack.c.bf16 %v565_v29, %v270_v59  ;;  %v278_v63 = vld [vmem:[#allocation0 + $0x50] sm:$0xf] }
  0x94   :  { %514 = vst [vmem:[%s743_s1 + $0x36] sm:$0x3] %v415_v50  ;;  %v286_v0 = vld [vmem:[#allocation0 + $0x58] sm:$0xf]  ;;  %v294_v1 = vld [vmem:[#allocation0 + $0x60] sm:$0xf]  ;;  %v279_v2 = vpack.c.bf16 %v565_v29, %v278_v63 }
  0x95   :  { %515 = vst [vmem:[%s743_s1 + $0x38] sm:$0x3] %v423_v54  ;;  %516 = vst [vmem:[%s743_s1 + $0x3a] sm:$0x3] %v431_v55  ;;  %v287_v3 = vpack.c.bf16 %v565_v29, %v286_v0  ;;  %v295_v4 = vpack.c.bf16 %v565_v29, %v294_v1  ;;  %v302_v5 = vld [vmem:[#allocation0 + $0x68] sm:$0xf] }
  0x96   :  { %517 = vst [vmem:[%s743_s1 + $0x3c] sm:$0x3] %v439_v56  ;;  %v310_v6 = vld [vmem:[#allocation0 + $0x70] sm:$0xf]  ;;  %v318_v7 = vld [vmem:[#allocation0 + $0x78] sm:$0xf]  ;;  %v303_v8 = vpack.c.bf16 %v565_v29, %v302_v5 }
  0x97   :  { %518 = vst [vmem:[%s743_s1 + $0x3e] sm:$0x3] %v447_v60  ;;  %495 = vst [vmem:[%s743_s1 + $0x10] sm:$0x3] %v263_v61  ;;  %v311_v9 = vpack.c.bf16 %v565_v29, %v310_v6  ;;  %v319_v10 = vpack.c.bf16 %v565_v29, %v318_v7  ;;  %v201_v11 = vld [vmem:[#allocation0] sm:$0xf] }
  0x98   :  { %496 = vst [vmem:[%s743_s1 + $0x12] sm:$0x3] %v271_v62  ;;  %v207_v12 = vld [vmem:[#allocation0 + $0x8] sm:$0xf]  ;;  %v214_v13 = vld [vmem:[#allocation0 + $0x10] sm:$0xf]  ;;  %v202_v14 = vpack.c.bf16 %v565_v29, %v201_v11 }
  0x99   :  { %497 = vst [vmem:[%s743_s1 + $0x14] sm:$0x3] %v279_v2  ;;  %498 = vst [vmem:[%s743_s1 + $0x16] sm:$0x3] %v287_v3  ;;  %v208_v15 = vpack.c.bf16 %v565_v29, %v207_v12  ;;  %v215_v16 = vpack.c.bf16 %v565_v29, %v214_v13  ;;  %v222_v17 = vld [vmem:[#allocation0 + $0x18] sm:$0xf] }
  0x9a   :  { %499 = vst [vmem:[%s743_s1 + $0x18] sm:$0x3] %v295_v4  ;;  %v230_v18 = vld [vmem:[#allocation0 + $0x20] sm:$0xf]  ;;  %v238_v19 = vld [vmem:[#allocation0 + $0x28] sm:$0xf]  ;;  %v223_v20 = vpack.c.bf16 %v565_v29, %v222_v17 }
  0x9b   :  { %500 = vst [vmem:[%s743_s1 + $0x1a] sm:$0x3] %v303_v8  ;;  %501 = vst [vmem:[%s743_s1 + $0x1c] sm:$0x3] %v311_v9  ;;  %v231_v21 = vpack.c.bf16 %v565_v29, %v230_v18  ;;  %v239_v22 = vpack.c.bf16 %v565_v29, %v238_v19  ;;  %v246_v23 = vld [vmem:[#allocation0 + $0x30] sm:$0xf] }
  0x9c   :  { %502 = vst [vmem:[%s743_s1 + $0x1e] sm:$0x3] %v319_v10  ;;  %v254_v24 = vld [vmem:[#allocation0 + $0x38] sm:$0xf]  ;;  %205 = vst [vmem:[%s743_s1] sm:$0x3] %v202_v14  ;;  %v247_v25 = vpack.c.bf16 %v565_v29, %v246_v23 }
  0x9d   :  { %488 = vst [vmem:[%s743_s1 + $0x2] sm:$0x3] %v208_v15  ;;  %489 = vst [vmem:[%s743_s1 + $0x4] sm:$0x3] %v215_v16  ;;  %v255_v26 = vpack.c.bf16 %v565_v29, %v254_v24 }
  0x9e   :  { %490 = vst [vmem:[%s743_s1 + $0x6] sm:$0x3] %v223_v20  ;;  %491 = vst [vmem:[%s743_s1 + $0x8] sm:$0x3] %v231_v21 }
  0x9f   :  { %492 = vst [vmem:[%s743_s1 + $0xa] sm:$0x3] %v239_v22  ;;  %493 = vst [vmem:[%s743_s1 + $0xc] sm:$0x3] %v247_v25 }
  0xa0   :  { %494 = vst [vmem:[%s743_s1 + $0xe] sm:$0x3] %v255_v26 }

// kernel: hd_block_single.10
= control target key start
LH: loop header
LB: loop body
LE: loop exit
PB: predicated region body
PF: predicated region fallthrough
CT: control target
= control target key end

     0   :  { %s711_s18 = smov 0   ;;  %s713_s19 = smov 0   ;;  %s782_s0 = inlined_call_operand.vmem [shape: bf16[2,16,128], index: 0, kind: input, shape index: {}]   ;;  %s783_s1 = inlined_call_operand.vmem [shape: bf16[128,128], index: 1, kind: input, shape index: {}]   ;;  %s784_s2 = inlined_call_operand.vmem [shape: f32[1,128], index: 2, kind: input, shape index: {}]   ;;  %s785_s3 = inlined_call_operand.vmem [shape: f32[2,16,128], index: 3, kind: input, shape index: {}]   ;;  %s786_s4 = inlined_call_operand.vmem [shape: f32[2,1,128], index: 4, kind: input, shape index: {}]   ;;  %s787_s5 = inlined_call_operand.vmem [shape: f32[2,16,128], index: 5, kind: output, shape index: {}]  }
   0x1   :  { %s715_s20 = smov 0  }
   0x2 LB: > { %s27_s21 = sadd.s32 1, %s673_s19  ;;  %p568_p0 = scmp.ge.s32.totalorder %s677_s20, 1  ;;  %s677_s20 = sphi %s715_s20, %s15_s20   ;;  %s673_s19 = sphi %s713_s19, %s789_s19   ;;  %s669_s18 = sphi %s711_s18, %s788_s18  }
   0x3   : > { %p29_p1 = scmp.ge.s32.totalorder %s27_s21, 2  ;;  %p233_p2 = scmp.lt.s32.totalorder %s677_s20, 3 }
   0x5   : > { %s791_s21 = smov (%p29_p1, %s27_s21), 0  ;;  %p234_p3 = pnand %p568_p0, %p233_p2 }
   0x6   : > { %p282_p4 = scmp.lt.s32.totalorder (!%p234_p3), %s669_s18, 1 }
   0x7   : > { %237 = sbr.rel (%p234_p3) target bundleno = 249 (0xf9), region = 40 }
   0xc   : > { %v646_v0 = vld [vmem:[%s783_s1 + $0x38] sm:$0xff]   ;;  %v679_v1 = vmov 0.0   ;;  %v647_v2 = vld [vmem:[%s783_s1 + $0x30] sm:$0xff]   ;;  %vm680_vm0 = vmmov 0   ;;  %s793_s18 = smov (!%p282_p4, %s669_s18), 1  ;;  %v648_v3 = vld [vmem:[%s783_s1 + $0x28] sm:$0xff]  }
   0xd   : > { %600 = vmatprep.subr.bf16.mxu0 %v679_v1  ;;  %616 = vmatprep.mubr.msk.bf16.mxu0 %vm680_vm0, %v679_v1  ;;  %s588_s28 = sshll.u32 %s793_s18, 3  ;;  %v649_v4 = vld [vmem:[%s783_s1 + $0x20] sm:$0xff]   ;;  %v650_v5 = vld [vmem:[%s783_s1 + $0x18] sm:$0xff]   ;;  %v651_v6 = vld [vmem:[%s783_s1 + $0x10] sm:$0xff]   ;;  %s589_s17 = sshll.u32 %s793_s18, 4 }
   0xe   : > { %601 = vmatpush3.bf16.msra.mxu0 %v646_v0  ;;  %s289_s6 = scalar_lea.vmem %s782_s0, %s588_s28  ;;  %v652_v7 = vld [vmem:[%s783_s1 + $0x8] sm:$0xff]   ;;  %v653_v8 = vld [vmem:[%s783_s1] sm:$0xff]   ;;  %s303_s24 = scalar_lea.vmem %s786_s4, %s793_s18 }
   0xf   : > { %602 = vmatprep.subr.bf16.mxu0 %v679_v1  ;;  %v654_v9 = vld [vmem:[%s289_s6] sm:$0xff]   ;;  %s299_s29 = scalar_lea.vmem %s785_s3, %s589_s17  ;;  %s312_s7 = scalar_lea.vmem %s787_s5, %s589_s17 }
  0x10   : > { %v575_v10 = vld [vmem:[%s784_s2] ss:$0 sm:$0xff]  ;;  %v436_v20 = vld [vmem:[%s299_s29 + $0x8] sm:$0xff] }
  0x11   : > { %v585_v12 = vld [vmem:[%s303_s24] ss:$0 sm:$0xff] }
  0x12   : > { %603 = vmatpush3.bf16.msra.mxu0 %v647_v2  ;;  %v435_v14 = vld [vmem:[%s299_s29] sm:$0xff] }
  0x13   : > { %604 = vmatprep.subr.bf16.mxu0 %v679_v1 }
  0x16   : > { %605 = vmatpush3.bf16.msra.mxu0 %v648_v3 }
  0x17   : > { %606 = vmatprep.subr.bf16.mxu0 %v679_v1 }
  0x1a   : > { %607 = vmatpush3.bf16.msra.mxu0 %v649_v4 }
  0x1b   : > { %608 = vmatprep.subr.bf16.mxu0 %v679_v1 }
  0x1e   : > { %609 = vmatpush3.bf16.msra.mxu0 %v650_v5 }
  0x1f   : > { %610 = vmatprep.subr.bf16.mxu0 %v679_v1 }
  0x22   : > { %611 = vmatpush3.bf16.msra.mxu0 %v651_v6 }
  0x23   : > { %612 = vmatprep.subr.bf16.mxu0 %v679_v1 }
  0x26   : > { %613 = vmatpush3.bf16.msra.mxu0 %v652_v7 }
  0x27   : > { %614 = vmatprep.subr.bf16.mxu0 %v679_v1 }
  0x2a   : > { %615 = vmatpush3.bf16.msra.mxu0 %v653_v8 }
  0x2d   : > { %617 = vmatmul.mubr.bf16.vlgmr.msra.gmra.mxu0 %v654_v9 }
  0xed   : > { %v428_v11 = vpop.f32.mrf.mxu0 }
  0xee   : > { %v429_v13 = vadd.f32 %v575_v10, %v428_v11 }
  0xef   : > { %v618_v15 = vpop.f32.mrf.mxu0 }
  0xf0   : > { %v444_v16 = vmul.f32 %v585_v12, %v429_v13 }
  0xf1   : > { %v431_v17 = vpop.f32.mrf.mxu0 }
  0xf2   : > { %v446_v18 = vadd.f32 %v444_v16, %v435_v14  ;;  %v432_v19 = vadd.f32 %v575_v10, %v431_v17 }
  0xf3   : > { %v619_v21 = vpop.f32.mrf.mxu0 }
  0xf4   : > { %448 = vst [vmem:[%s312_s7] sm:$0xff] %v446_v18  ;;  %v445_v22 = vmul.f32 %v585_v12, %v432_v19 }
  0xf6   : > { %v447_v23 = vadd.f32 %v445_v22, %v436_v20 }
  0xf8   : > { %449 = vst [vmem:[%s312_s7 + $0x8] sm:$0xff] %v447_v23 }
  0xf9 PF: > { %s15_s20 = sadd.s32 1, %s677_s20   ;;  %s788_s18 = smov %s673_s19 }
  0xfa   : > { %p12_p5 = scmp.ge.s32.totalorder %s15_s20, 4   ;;  %s789_s19 = smov %s791_s21 }
  0xfc   :  { %14 = sbr.rel (!%p12_p5) target bundleno = 2 (0x2), region = 76 }

// kernel: hd_block_single.9
= control target key start
LH: loop header
LB: loop body
LE: loop exit
PB: predicated region body
PF: predicated region fallthrough
CT: control target
= control target key end

     0   :  { %s911_s12 = smov 0   ;;  %s913_s13 = smov 0   ;;  %s993_s0 = inlined_call_operand.vmem [shape: bf16[2,4,16,32], index: 0, kind: input, shape index: {}]   ;;  %s994_s1 = inlined_call_operand.vmem [shape: bf16[2,4,16,32], index: 1, kind: input, shape index: {}]   ;;  %s995_s2 = inlined_call_operand.vmem [shape: bf16[2,4,16,32], index: 2, kind: input, shape index: {}]   ;;  %s996_s3 = inlined_call_operand.vmem [shape: bf16[2,4,16,32], index: 3, kind: output, shape index: {}]  }
   0x1   :  { %s915_s14 = smov 0   ;;  %s917_s15 = smov 0  }
   0x2   :  { %s919_s16 = smov 0  }
   0x3 LB: > { %s35_s17 = sadd.s32 1, %s877_s14  ;;  %s39_s18 = sadd.s32 1, %s881_s15  ;;  %s885_s16 = sphi %s919_s16, %s13_s16   ;;  %s881_s15 = sphi %s917_s15, %s1000_s15   ;;  %s877_s14 = sphi %s915_s14, %s999_s14   ;;  %s873_s13 = sphi %s913_s13, %s998_s13   ;;  %s869_s12 = sphi %s911_s12, %s997_s12  }
   0x4   : > { %p37_p0 = scmp.ge.s32.totalorder %s35_s17, 4  ;;  %p746_p1 = scmp.ge.s32.totalorder %s885_s16, 1 }
   0x5   : > { %p226_p2 = scmp.lt.s32.totalorder %s885_s16, 9 }
   0x6   : > { %s1002_s17 = smov (%p37_p0, %s35_s17), 0  ;;  %s1004_s18 = smov (!%p37_p0, %s39_s18), %s881_s15 }
   0x7   : > { %p227_p3 = pnand %p746_p1, %p226_p2  ;;  %p41_p4 = scmp.ge.s32.totalorder %s1004_s18, 2 }
   0x8   : > { %p293_p5 = scmp.lt.s32.totalorder (!%p227_p3), %s873_s13, 1  ;;  %p295_p6 = scmp.lt.s32.totalorder (!%p227_p3), %s869_s12, 3 }
   0x9   : > { %s1006_s18 = smov (%p41_p4, %s1004_s18), 0  ;;  %230 = sbr.rel (%p227_p3) target bundleno = 800 (0x320), region = 32 }
   0xe   : > { %vm358_vm0 = vcmask 261120   ;;  %v887_v0 = vmov 0.0   ;;  %vm888_vm1 = vmmov 0   ;;  %s1008_s13 = smov (!%p293_p5, %s873_s13), 1  ;;  %s1010_s12 = smov (!%p295_p6, %s869_s12), 3  ;;  %vm353_vm2 = vcmask 7168  }
   0xf   : > { %774 = vmatprep.subr.bf16.mxu0 %v887_v0  ;;  %359 = vst.msk [vmem:[#allocation4] sm:$0xff] %vm358_vm0, %v887_v0  ;;  %360 = vst.msk [vmem:[#allocation4 + $0x8] sm:$0xff] %vm358_vm0, %v887_v0  ;;  %776 = vmatprep.mubr.msk.bf16.mxu0 %vm888_vm1, %v887_v0  ;;  %s748_s19 = sshll.u32 %s1008_s13, 3  ;;  %s747_s20 = sshll.u32 %s1010_s12, 1  ;;  %v889_v4 = vmov -inf   ;;  %vm427_vm3 = vcmask 130048  }
  0x10   : > { %780 = vmatprep.subr.bf16.mxu1 %v887_v0  ;;  %782 = vmatprep.mubr.msk.bf16.mxu1 %vm888_vm1, %v887_v0  ;;  %s302_s21 = sadd.s32 %s748_s19, %s747_s20  ;;  %354 = vst.msk [vmem:[#allocation2] sm:$0xff] %vm353_vm2, %v889_v4  ;;  %355 = vst.msk [vmem:[#allocation2 + $0x8] sm:$0xff] %vm353_vm2, %v889_v4  ;;  %v890_v11 = vmov 0   ;;  %vm573_vm4 = vcmask 257024  }
  0x11   : > { %s943_s22 = sshll.u32 %s302_s21, 2  ;;  %356 = vst.msk [vmem:[#allocation3] sm:$0xff] %vm353_vm2, %v887_v0  ;;  %357 = vst.msk [vmem:[#allocation3 + $0x8] sm:$0xff] %vm353_vm2, %v887_v0  ;;  %830 = vset.pattern.permute.xlu1 %v890_v11  ;;  %831 = vset.pattern.permute.xlu0 %v890_v11 }
  0x12   : > { %s318_s25 = scalar_lea.vmem %s994_s1, %s943_s22  ;;  %s304_s28 = scalar_lea.vmem %s993_s0, %s943_s22 }
  0x13   : > { %v832_v1 = vld [vmem:[%s318_s25] sm:$0xff]   ;;  %s332_s4 = scalar_lea.vmem %s995_s2, %s943_s22  ;;  %s346_s7 = scalar_lea.vmem %s996_s3, %s943_s22 }
  0x14   : > { %v382_v2 = vsel %vm358_vm0, %v832_v1, 0  ;;  %v833_v3 = vld [vmem:[%s304_s28] sm:$0xff]  }
  0x15   : > { %775 = vmatpush3.bf16.xpose.msra.mxu0 %v382_v2  ;;  %v834_v20 = vld [vmem:[%s332_s4] sm:$0xff]  }
  0x16   : > { %781 = vmatpush3.bf16.msra.mxu1 %v834_v20  ;;  %v473_v48 = vld [vmem:[#allocation4] sm:$0xff]  ;;  %v474_v51 = vld [vmem:[#allocation4 + $0x8] sm:$0xff] }
  0x17   : > { %v425_v12 = vld [vmem:[#allocation2] sm:$0xff]  ;;  %v426_v15 = vld [vmem:[#allocation2 + $0x8] sm:$0xff] }
  0x18   : > { %v458_v36 = vld [vmem:[#allocation3] sm:$0xff]  ;;  %v459_v39 = vld [vmem:[#allocation3 + $0x8] sm:$0xff] }
  0x1c   : > { %777 = vmatmul.mubr.msk.bf16.vlgmr.msra.gmra.mxu0 %vm358_vm0, %v833_v3 }
  0xdc   : > { %v418_v5 = vpop.f32.mrf.mxu0 }
  0xdd   : > { %v428_v6 = vsel %vm427_vm3, %v418_v5, -inf }
  0xde   : > { %429 = vmax.xlane.f32.xlu0 %v428_v6  ;;  %v778_v7 = vpop.f32.mrf.mxu0 }
  0xe0   : > { %v421_v8 = vpop.f32.mrf.mxu0 }
  0xe1   : > { %v431_v9 = vsel %vm427_vm3, %v421_v8, -inf }
  0xe2   : > { %432 = vmax.xlane.f32.xlu0 %v431_v9  ;;  %v779_v10 = vpop.f32.mrf.mxu0 }
 0x167   : > { %v430_v13 = vpop.xlane.xlu0 %429 }
 0x168   : > { %v434_v14 = vmax.f32 %v425_v12, %v430_v13 }
 0x16a   : > { %v436_v16 = vsub.f32 %v425_v12, %v434_v14  ;;  %542 = vst.msk [vmem:[#allocation2] sm:$0xff] %vm353_vm2, %v434_v14  ;;  %444 = vperm.xlu1 %830, %v434_v14  }
 0x16b   : > { %v433_v17 = vpop.xlane.xlu0 %432 }
 0x16c   : > { %v435_v18 = vmax.f32 %v426_v15, %v433_v17  ;;  %v438_v33 = vmul.f32 1.442695, %v436_v16 }
 0x16e   : > { %v437_v19 = vsub.f32 %v426_v15, %v435_v18  ;;  %543 = vst.msk [vmem:[#allocation2 + $0x8] sm:$0xff] %vm353_vm2, %v435_v18  ;;  %449 = vperm.xlu1 %830, %v435_v18  }
 0x170   : > { %v440_v30 = vmul.f32 1.442695, %v437_v19 }
 0x1e5   : > { %v445_v21 = vpop.permute.xlu1 %444 }
 0x1e6   : > { %v452_v22 = vsub.f32 %v418_v5, %v445_v21 }
 0x1e8   : > { %v454_v23 = vmul.f32 1.442695, %v452_v22 }
 0x1e9   : > { %v450_v24 = vpop.permute.xlu1 %449 }
 0x1ea   : > { %835 = vpow2.f32 %v454_v23  ;;  %v453_v25 = vsub.f32 %v421_v8, %v450_v24 }
 0x1ec   : > { %v456_v26 = vmul.f32 1.442695, %v453_v25 }
 0x1ee   : > { %837 = vpow2.f32 %v456_v26 }
 0x1ef   : > { %839 = vpow2.f32 %v440_v30 }
 0x1f0   : > { %841 = vpow2.f32 %v438_v33 }
 0x1f7   : > { %v836_v27 = vpop.eup %835 }
 0x1f8   : > { %v462_v28 = vsel %vm427_vm3, %v836_v27, 0.0 }
 0x1f9   : > { %463 = vadd.xlane.f32.xlu0 %v462_v28 }
 0x1fb   : > { %v838_v29 = vpop.eup %837 }
 0x1fc   : > { %v465_v31 = vsel %vm427_vm3, %v838_v29, 0.0  ;;  %v487_v32 = vpack.c.bf16 %v838_v29, %v836_v27  ;;  %v840_v34 = vpop.eup %839 }
 0x1fd   : > { %466 = vadd.xlane.f32.xlu1 %v465_v31  ;;  %v842_v35 = vpop.eup %841  ;;  %v461_v41 = vmul.f32 %v840_v34, %v459_v39 }
 0x1fe   : > { %783 = vmatmul.mubr.msk.bf16.vlgmr.msra.gmra.mxu1 %vm427_vm3, %v487_v32  ;;  %v460_v37 = vmul.f32 %v842_v35, %v458_v36 }
 0x20e   : > { %482 = vperm.xlu1 %830, %v840_v34  }
 0x20f   : > { %477 = vperm.xlu0 %831, %v842_v35  }
 0x282   : > { %v464_v38 = vpop.xlane.xlu0 %463 }
 0x283   : > { %v468_v40 = vadd.f32 %v464_v38, %v460_v37 }
 0x285   : > { %471 = vst.msk [vmem:[#allocation3] sm:$0xff] %vm353_vm2, %v468_v40 }
 0x286   : > { %v467_v42 = vpop.xlane.xlu1 %466 }
 0x287   : > { %v469_v43 = vadd.f32 %v467_v42, %v461_v41 }
 0x289   : > { %472 = vst.msk [vmem:[#allocation3 + $0x8] sm:$0xff] %vm353_vm2, %v469_v43 }
 0x28a   : > { %v478_v49 = vpop.permute.xlu0 %477  ;;  %v483_v52 = vpop.permute.xlu1 %482 }
 0x28b   : > { %v485_v50 = vmul.f32 %v478_v49, %v473_v48  ;;  %v486_v56 = vmul.f32 %v483_v52, %v474_v51 }
 0x28c   : > { %v549_v44 = vld [vmem:[#allocation3] sm:$0xff] }
 0x28d   : > { %843 = vrcp.f32 %v549_v44 }
 0x290   : > { %v550_v45 = vld [vmem:[#allocation3 + $0x8] sm:$0xff] }
 0x291   : > { %845 = vrcp.f32 %v550_v45 }
 0x29a   : > { %v844_v46 = vpop.eup %843 }
 0x29b   : > { %555 = vperm.xlu0 %831, %v844_v46  }
 0x29e   : > { %v846_v47 = vpop.eup %845 }
 0x29f   : > { %560 = vperm.xlu0 %831, %v846_v47  }
 0x2be   : > { %v531_v53 = vpop.f32.mrf.mxu1 }
 0x2bf   : > { %v538_v54 = vadd.f32 %v531_v53, %v485_v50 }
 0x2c0   : > { %v784_v55 = vpop.f32.mrf.mxu1 }
 0x2c1   : > { %540 = vst.msk [vmem:[#allocation4] sm:$0xff] %vm358_vm0, %v538_v54 }
 0x2c2   : > { %v534_v57 = vpop.f32.mrf.mxu1 }
 0x2c3   : > { %v539_v58 = vadd.f32 %v534_v57, %v486_v56 }
 0x2c4   : > { %v785_v59 = vpop.f32.mrf.mxu1 }
 0x2c5   : > { %541 = vst.msk [vmem:[#allocation4 + $0x8] sm:$0xff] %vm358_vm0, %v539_v58 }
 0x2c8   : > { %v547_v60 = vld [vmem:[#allocation4] sm:$0xff] }
 0x2cc   : > { %v548_v0 = vld [vmem:[#allocation4 + $0x8] sm:$0xff] }
 0x316   : > { %v556_v61 = vpop.permute.xlu0 %555 }
 0x317   : > { %v563_v62 = vmul.f32 %v556_v61, %v547_v60 }
 0x319   : > { %v768_v63 = vpack.c.bf16 %v563_v62, %v563_v62 }
 0x31a   : > { %v561_v1 = vpop.permute.xlu0 %560 }
 0x31b   : > { %574 = vst.msk [vmem:[%s346_s7] sm:$0xf] %vm573_vm4, %v768_v63  ;;  %v564_v2 = vmul.f32 %v561_v1, %v548_v0 }
 0x31d   : > { %v769_v3 = vpack.c.bf16 %v564_v2, %v564_v2 }
 0x31f   : > { %575 = vst.msk [vmem:[%s346_s7 + $0x4] sm:$0xf] %vm573_vm4, %v769_v3 }
 0x320 PF: > { %s13_s16 = sadd.s32 1, %s885_s16   ;;  %s997_s12 = smov %s877_s14 }
 0x321   : > { %p10_p7 = scmp.ge.s32.totalorder %s13_s16, 10   ;;  %s998_s13 = smov %s881_s15 }
 0x322   : > { %s999_s14 = smov %s1002_s17  ;;  %s1000_s15 = smov %s1006_s18 }
 0x323   :  { %12 = sbr.rel (!%p10_p7) target bundleno = 3 (0x3), region = 76 }

// kernel: hd_block_single.11
= control target key start
LH: loop header
LB: loop body
LE: loop exit
PB: predicated region body
PF: predicated region fallthrough
CT: control target
= control target key end

     0   :  { %s821_s18 = smov 0   ;;  %s823_s19 = smov 0   ;;  %s903_s0 = inlined_call_operand.vmem [shape: f32[2,16,128], index: 0, kind: input, shape index: {}]   ;;  %s904_s1 = inlined_call_operand.vmem [shape: f32[2,1,128], index: 1, kind: input, shape index: {}]   ;;  %s905_s2 = inlined_call_operand.vmem [shape: f32[2,1,128], index: 2, kind: input, shape index: {}]   ;;  %s906_s3 = inlined_call_operand.vmem [shape: bf16[128,4], index: 3, kind: input, shape index: {}]   ;;  %s907_s4 = inlined_call_operand.vmem [shape: bf16[2,16,128], index: 4, kind: output, shape index: {0}]   ;;  %s908_s5 = inlined_call_operand.vmem [shape: f32[2,16,4], index: 5, kind: output, shape index: {1}]  }
   0x1   :  { %s825_s20 = smov 0  }
   0x2 LB: > { %s28_s21 = sadd.s32 1, %s783_s19  ;;  %p660_p0 = scmp.ge.s32.totalorder %s787_s20, 1  ;;  %s787_s20 = sphi %s825_s20, %s16_s20   ;;  %s783_s19 = sphi %s823_s19, %s910_s19   ;;  %s779_s18 = sphi %s821_s18, %s909_s18  }
   0x3   : > { %p30_p1 = scmp.ge.s32.totalorder %s28_s21, 2  ;;  %p229_p2 = scmp.lt.s32.totalorder %s787_s20, 3 }
   0x5   : > { %s912_s21 = smov (%p30_p1, %s28_s21), 0  ;;  %p230_p3 = pnand %p660_p0, %p229_p2 }
   0x6   : > { %p281_p4 = scmp.lt.s32.totalorder (!%p230_p3), %s779_s18, 1 }
   0x7   : > { %233 = sbr.rel (%p230_p3) target bundleno = 838 (0x346), region = 36 }
   0xc   : > { %s914_s18 = smov (!%p281_p4, %s779_s18), 1  ;;  %v745_v2 = vld [vmem:[%s906_s3 + $0x38] sm:$0xff]   ;;  %v789_v3 = vmov 0.0   ;;  %v746_v12 = vld [vmem:[%s906_s3 + $0x30] sm:$0xff]   ;;  %v747_v13 = vld [vmem:[%s906_s3 + $0x28] sm:$0xff]   ;;  %vm790_vm0 = vmmov 0   ;;  %v345_v25 = vlaneseq }
   0xd   : > { %s680_s22 = sshll.u32 %s914_s18, 4  ;;  %699 = vmatprep.subr.bf16.mxu0 %v789_v3  ;;  %v748_v14 = vld [vmem:[%s906_s3 + $0x20] sm:$0xff]   ;;  %715 = vmatprep.mubr.msk.bf16.mxu0 %vm790_vm0, %v789_v3  ;;  %v749_v15 = vld [vmem:[%s906_s3 + $0x18] sm:$0xff]   ;;  %v750_v16 = vld [vmem:[%s906_s3 + $0x10] sm:$0xff]   ;;  %s292_s24 = scalar_lea.vmem %s904_s1, %s914_s18  ;;  %vm476_vm1 = vcmask 31744  }
   0xe   : > { %s288_s25 = scalar_lea.vmem %s903_s0, %s680_s22  ;;  %700 = vmatpush3.bf16.msra.mxu0 %v745_v2  ;;  %v751_v17 = vld [vmem:[%s906_s3 + $0x8] sm:$0xff]   ;;  %v752_v18 = vld [vmem:[%s906_s3] sm:$0xff]   ;;  %v346_v26 = vshrl.u32 %v345_v25, 7  ;;  %s295_s27 = scalar_lea.vmem %s905_s2, %s914_s18 }
   0xf   : > { %v317_v0 = vld [vmem:[%s288_s25] sm:$0xff]  ;;  %v318_v1 = vld [vmem:[%s288_s25 + $0x8] sm:$0xff]  ;;  %701 = vmatprep.subr.bf16.mxu0 %v789_v3  ;;  %s681_s28 = sshll.u32 %s914_s18, 3  ;;  %s314_s9 = scalar_lea.vmem %s908_s5, %s680_s22 }
  0x10   : > { %319 = vadd.xlane.f32.xlu0 %v317_v0  ;;  %v342_v27 = vld [vmem:[%s292_s24] sm:$0x1]  ;;  %v347_v29 = vsub.s32 0, %v346_v26  ;;  %s304_s6 = scalar_lea.vmem %s907_s4, %s681_s28 }
  0x11   : > { %v343_v28 = vadd.f32 1.0, %v342_v27  ;;  %v667_v36 = vld [vmem:[%s295_s27] ss:$0 sm:$0xff] }
  0x12   : > { %702 = vmatpush3.bf16.msra.mxu0 %v746_v12 }
  0x13   : > { %703 = vmatprep.subr.bf16.mxu0 %v789_v3  ;;  %v348_v32 = vrot.slane %v343_v28, %v347_v29 }
  0x14   : > { %321 = vadd.xlane.f32.xlu0 %v318_v1 }
  0x16   : > { %704 = vmatpush3.bf16.msra.mxu0 %v747_v13 }
  0x17   : > { %705 = vmatprep.subr.bf16.mxu0 %v789_v3 }
  0x1a   : > { %706 = vmatpush3.bf16.msra.mxu0 %v748_v14 }
  0x1b   : > { %707 = vmatprep.subr.bf16.mxu0 %v789_v3 }
  0x1e   : > { %708 = vmatpush3.bf16.msra.mxu0 %v749_v15 }
  0x1f   : > { %709 = vmatprep.subr.bf16.mxu0 %v789_v3 }
  0x22   : > { %710 = vmatpush3.bf16.msra.mxu0 %v750_v16 }
  0x23   : > { %711 = vmatprep.subr.bf16.mxu0 %v789_v3 }
  0x26   : > { %712 = vmatpush3.bf16.msra.mxu0 %v751_v17 }
  0x27   : > { %713 = vmatprep.subr.bf16.mxu0 %v789_v3 }
  0x2a   : > { %714 = vmatpush3.bf16.msra.mxu0 %v752_v18 }
  0x99   : > { %v320_v4 = vpop.xlane.xlu0 %319 }
  0x9a   : > { %v324_v5 = vmul.f32 0.0078125, %v320_v4 }
  0x9c   : > { %v326_v6 = vsub.f32 %v317_v0, %v324_v5 }
  0x9d   : > { %v322_v7 = vpop.xlane.xlu0 %321 }
  0x9e   : > { %v325_v8 = vmul.f32 0.0078125, %v322_v7  ;;  %v328_v9 = vmul.f32 %v326_v6, %v326_v6 }
  0xa0   : > { %v327_v10 = vsub.f32 %v318_v1, %v325_v8  ;;  %330 = vadd.xlane.f32.xlu1 %v328_v9 }
  0xa2   : > { %v329_v11 = vmul.f32 %v327_v10, %v327_v10 }
  0xa4   : > { %332 = vadd.xlane.f32.xlu1 %v329_v11 }
 0x129   : > { %v331_v19 = vpop.xlane.xlu1 %330 }
 0x12a   : > { %v334_v20 = vmul.f32 0.0078125, %v331_v19 }
 0x12c   : > { %v336_v21 = vadd.f32 1e-06, %v334_v20 }
 0x12d   : > { %v333_v22 = vpop.xlane.xlu1 %332 }
 0x12e   : > { %753 = vrsqrt.f32 %v336_v21  ;;  %v335_v23 = vmul.f32 0.0078125, %v333_v22 }
 0x130   : > { %v337_v24 = vadd.f32 1e-06, %v335_v23 }
 0x132   : > { %755 = vrsqrt.f32 %v337_v24 }
 0x13b   : > { %v754_v30 = vpop.eup %753 }
 0x13c   : > { %v340_v31 = vmul.f32 %v754_v30, %v326_v6 }
 0x13e   : > { %v350_v35 = vmul.f32 %v348_v32, %v340_v31 }
 0x13f   : > { %v756_v33 = vpop.eup %755 }
 0x140   : > { %v341_v34 = vmul.f32 %v756_v33, %v327_v10  ;;  %v359_v38 = vadd.f32 %v667_v36, %v350_v35 }
 0x142   : > { %v351_v37 = vmul.f32 %v348_v32, %v341_v34 }
 0x144   : > { %v360_v39 = vadd.f32 %v667_v36, %v351_v37 }
 0x146   : > { %v361_v40 = vpack.c.bf16 %v360_v39, %v359_v38 }
 0x148   : > { %689 = vst [vmem:[%s304_s6] sm:$0xff] %v361_v40   ;;  %716 = vmatmul.mubr.bf16.vlgmr.msra.gmra.mxu0 %v361_v40 }
 0x208   : > { %v469_v41 = vpop.f32.mrf.mxu0 }
 0x209   : > { %v477_v42 = vsel %vm476_vm1, %v469_v41, -inf }
 0x20a   : > { %478 = vmax.xlane.f32.xlu0 %v477_v42  ;;  %v717_v43 = vpop.f32.mrf.mxu0 }
 0x20c   : > { %v472_v44 = vpop.f32.mrf.mxu0 }
 0x20d   : > { %v480_v45 = vsel %vm476_vm1, %v472_v44, -inf }
 0x20e   : > { %481 = vmax.xlane.f32.xlu1 %v480_v45  ;;  %v718_v46 = vpop.f32.mrf.mxu0 }
 0x293   : > { %v479_v47 = vpop.xlane.xlu0 %478 }
 0x294   : > { %v483_v48 = vsub.f32 %v469_v41, %v479_v47 }
 0x296   : > { %v485_v49 = vmul.f32 1.442695, %v483_v48 }
 0x297   : > { %v482_v50 = vpop.xlane.xlu1 %481 }
 0x298   : > { %757 = vpow2.f32 %v485_v49  ;;  %v484_v51 = vsub.f32 %v472_v44, %v482_v50 }
 0x29a   : > { %v487_v52 = vmul.f32 1.442695, %v484_v51 }
 0x29c   : > { %759 = vpow2.f32 %v487_v52 }
 0x2a5   : > { %v758_v53 = vpop.eup %757 }
 0x2a6   : > { %v489_v54 = vsel %vm476_vm1, %v758_v53, 0.0 }
 0x2a7   : > { %490 = vadd.xlane.f32.xlu0 %v489_v54 }
 0x2a9   : > { %v760_v55 = vpop.eup %759 }
 0x2aa   : > { %v492_v56 = vsel %vm476_vm1, %v760_v55, 0.0 }
 0x2ab   : > { %493 = vadd.xlane.f32.xlu1 %v492_v56 }
 0x330   : > { %v491_v57 = vpop.xlane.xlu0 %490 }
 0x331   : > { %761 = vrcp.f32 %v491_v57 }
 0x334   : > { %v494_v58 = vpop.xlane.xlu1 %493 }
 0x335   : > { %763 = vrcp.f32 %v494_v58 }
 0x33e   : > { %v762_v59 = vpop.eup %761 }
 0x33f   : > { %v496_v60 = vmul.f32 %v762_v59, %v758_v53 }
 0x341   : > { %499 = vst.msk [vmem:[%s314_s9] sm:$0xff] %vm476_vm1, %v496_v60 }
 0x342   : > { %v764_v61 = vpop.eup %763 }
 0x343   : > { %v498_v62 = vmul.f32 %v764_v61, %v760_v55 }
 0x345   : > { %500 = vst.msk [vmem:[%s314_s9 + $0x8] sm:$0xff] %vm476_vm1, %v498_v62 }
 0x346 PF: > { %s16_s20 = sadd.s32 1, %s787_s20   ;;  %s909_s18 = smov %s783_s19 }
 0x347   : > { %p13_p5 = scmp.ge.s32.totalorder %s16_s20, 4   ;;  %s910_s19 = smov %s912_s21 }
 0x349   :  { %15 = sbr.rel (!%p13_p5) target bundleno = 2 (0x2), region = 84 }

// kernel: hd_block_single.13
= control target key start
LH: loop header
LB: loop body
LE: loop exit
PB: predicated region body
PF: predicated region fallthrough
CT: control target
= control target key end

     0   :  { %12 = vsyncpa [#allocation4], 0  ;;  %s1817_s0 = inlined_call_operand.vmem [shape: bf16[2,16,128], index: 0, kind: input, shape index: {}]   ;;  %s1818_s1 = inlined_call_operand.vmem [shape: bf16[128,256], index: 1, kind: input, shape index: {}]   ;;  %s1819_s2 = inlined_call_operand.vmem [shape: bf16[128,256], index: 2, kind: input, shape index: {}]   ;;  %s1820_s3 = inlined_call_operand.vmem [shape: bf16[256,128], index: 3, kind: input, shape index: {}]   ;;  %s1821_s4 = inlined_call_operand.vmem [shape: f32[2,16,128], index: 4, kind: input, shape index: {}]   ;;  %s1822_s5 = inlined_call_operand.vmem [shape: f32[2,16,128], index: 5, kind: input, shape index: {}]   ;;  %s1823_s6 = inlined_call_operand.vmem [shape: f32[2,1,128], index: 6, kind: input, shape index: {}]   ;;  %s1824_s7 = inlined_call_operand.hbm [shape: f32[2,16,128], index: 7, kind: output, shape index: {}]  }
   0x1   :  { %14 = vsyncpa [#allocation4 + $0x1], 0  ;;  %s1542_s24 = smov 0   ;;  %s1544_s25 = smov 0  }
   0x2   :  { %s1546_s26 = smov 0   ;;  %s1548_s27 = smov 0  }
   0x3   :  { %s1550_s28 = smov 0   ;;  %s1552_s29 = smov 0  }
   0x4 LB: > { %s1181_s30 = sadd.s32 4294967295, %s1496_s29   ;;  %s1182_s8 = sadd.s32 4294967294, %s1496_s29   ;;  %s1496_s29 = sphi %s1552_s29, %s20_s29   ;;  %s1492_s28 = sphi %s1550_s28, %s1831_s28   ;;  %s1488_s27 = sphi %s1548_s27, %s1830_s27   ;;  %s1484_s26 = sphi %s1546_s26, %s1829_s26   ;;  %s1480_s25 = sphi %s1544_s25, %s1828_s25   ;;  %s1476_s24 = sphi %s1542_s24, %s1827_s24  }
   0x5   : > { %s39_s9 = sadd.s32 1, %s1492_s28  ;;  %s236_s10 = sadd.s32 1, %s1484_s26 }
   0x6   : > { %p41_p0 = scmp.ge.s32.totalorder %s39_s9, 2  ;;  %p246_p1 = scmp.ne.s32.totalorder %s1484_s26, %s1480_s25 }
   0x7   : > { %p247_p2 = scmp.eq.s32.totalorder %s1181_s30, 1  ;;  %p252_p3 = scmp.ne.s32.totalorder %s1480_s25, %s1476_s24 }
   0x8   : > { %s1833_s9 = smov (%p41_p0, %s39_s9), 0  ;;  %p253_p5 = scmp.eq.s32.totalorder %s1182_s8, 1 }
   0x9   : > { %p1582_p4 = por %p247_p2, %p246_p1  ;;  %s231_s12 = ssub.s32 %s1492_s28, %s1833_s9 }
   0xa   : > { %p1188_p6 = scmp.ge.s32.totalorder %s1496_s29, 1  ;;  %p234_p7 = scmp.eq.s32.totalorder %s231_s12, 0 }
   0xb   : > { %p1589_p8 = por %p253_p5, %p252_p3  ;;  %p343_p9 = scmp.lt.s32.totalorder %s1496_s29, 3 }
   0xc   : > { %s1595_s14 = scalar_select %p234_p7, %s1484_s26, %s236_s10  }
   0xd   : > { %p344_p10 = pnand %p1188_p6, %p343_p9 }
   0xe   : > { %p416_p11 = scmp.lt.s32.totalorder (!%p344_p10), %s1488_s27, 1  ;;  %s412_s18 = sand.u32 (!%p344_p10), 1, %s1480_s25  }
   0xf   : > { %347 = sbr.rel (%p344_p10) target bundleno = 513 (0x201), region = 48  ;;  %s1189_s22 = sshll.u32 (!%p344_p10), %s412_s18, 4 }
  0x14   : > { %v1339_v0 = vld [vmem:[%s1818_s1 + $0x74] ss:$8 sps:$4 sm:$0xff]   ;;  %v1341_v1 = vld [vmem:[%s1818_s1 + $0x70] ss:$8 sps:$4 sm:$0xff]   ;;  %v1498_v2 = vmov 0   ;;  %s1614_s8 = scalar_select %p416_p11, %s1488_s27, 1 }
  0x15   : > { %610 = vmatprep.mubr.bf16.mxu0 %v1498_v2  ;;  %749 = vmatprep.mubr.bf16.mxu1 %v1498_v2  ;;  %v1342_v3 = vld [vmem:[%s1818_s1 + $0x64] ss:$8 sps:$4 sm:$0xff]   ;;  %v1344_v4 = vld [vmem:[%s1818_s1 + $0x60] ss:$8 sps:$4 sm:$0xff]   ;;  %v1345_v5 = vld [vmem:[%s1818_s1 + $0x54] ss:$8 sps:$4 sm:$0xff]  }
  0x16   : > { %578 = vmatprep.subr.bf16.mxu0 %v1339_v0  ;;  %v1347_v6 = vld [vmem:[%s1818_s1 + $0x50] ss:$8 sps:$4 sm:$0xff]   ;;  %v1348_v7 = vld [vmem:[%s1818_s1 + $0x44] ss:$8 sps:$4 sm:$0xff]   ;;  %s1255_s17 = sshll.u32 %s1614_s8, 3  ;;  %s1256_s23 = sshll.u32 %s1614_s8, 4 }
  0x17   : > { %579 = vmatpush1.bf16.msra.mxu0 %v1341_v1  ;;  %v1350_v8 = vld [vmem:[%s1818_s1 + $0x40] ss:$8 sps:$4 sm:$0xff]   ;;  %v1362_v9 = vld [vmem:[%s1819_s2 + $0x74] ss:$8 sps:$4 sm:$0xff]   ;;  %v1365_v10 = vld [vmem:[%s1819_s2 + $0x70] ss:$8 sps:$4 sm:$0xff]   ;;  %s1635_s12 = scalar_lea.vmem %s1817_s0, %s1255_s17  ;;  %s451_s30 = scalar_lea.vmem %s1821_s4, %s1256_s23 }
  0x18   : > { %580 = vmatprep.subr.bf16.mxu0 %v1342_v3  ;;  %v1351_v11 = vld [vmem:[%s1818_s1 + $0x34] ss:$8 sps:$4 sm:$0xff]   ;;  %717 = vmatprep.subr.bf16.mxu1 %v1362_v9  ;;  %v1367_v12 = vld [vmem:[%s1819_s2 + $0x64] ss:$8 sps:$4 sm:$0xff]   ;;  %v1369_v13 = vld [vmem:[%s1819_s2 + $0x60] ss:$8 sps:$4 sm:$0xff]   ;;  %s465_s16 = scalar_lea.vmem %s1823_s6, %s1614_s8  ;;  %s461_s21 = scalar_lea.vmem %s1822_s5, %s1256_s23 }
  0x19   : > { %718 = vmatpush1.bf16.msra.mxu1 %v1365_v10  ;;  %v1353_v14 = vld [vmem:[%s1818_s1 + $0x30] ss:$8 sps:$4 sm:$0xff]   ;;  %v1370_v15 = vld [vmem:[%s1819_s2 + $0x54] ss:$8 sps:$4 sm:$0xff]   ;;  %v1354_v16 = vld [vmem:[%s1818_s1 + $0x24] ss:$8 sps:$4 sm:$0xff]  }
  0x1a   : > { %719 = vmatprep.subr.bf16.mxu1 %v1367_v12  ;;  %v1372_v17 = vld [vmem:[%s1819_s2 + $0x50] ss:$8 sps:$4 sm:$0xff]   ;;  %v1356_v18 = vld [vmem:[%s1818_s1 + $0x20] ss:$8 sps:$4 sm:$0xff]   ;;  %v1373_v19 = vld [vmem:[%s1819_s2 + $0x44] ss:$8 sps:$4 sm:$0xff]  }
  0x1b   : > { %581 = vmatpush1.bf16.msra.mxu0 %v1344_v4  ;;  %v1357_v20 = vld [vmem:[%s1818_s1 + $0x14] ss:$8 sps:$4 sm:$0xff]   ;;  %v1359_v21 = vld [vmem:[%s1818_s1 + $0x10] ss:$8 sps:$4 sm:$0xff]   ;;  %v1375_v22 = vld [vmem:[%s1819_s2 + $0x40] ss:$8 sps:$4 sm:$0xff]  }
  0x1c   : > { %582 = vmatprep.subr.bf16.mxu0 %v1345_v5  ;;  %v1360_v23 = vld [vmem:[%s1818_s1 + $0x4] ss:$8 sps:$4 sm:$0xff]   ;;  %v1376_v24 = vld [vmem:[%s1819_s2 + $0x34] ss:$8 sps:$4 sm:$0xff]   ;;  %v1378_v25 = vld [vmem:[%s1819_s2 + $0x30] ss:$8 sps:$4 sm:$0xff]  }
  0x1d   : > { %720 = vmatpush1.bf16.msra.mxu1 %v1369_v13  ;;  %v1364_v26 = vld [vmem:[%s1818_s1] ss:$8 sps:$4 sm:$0xff]   ;;  %v1379_v27 = vld [vmem:[%s1819_s2 + $0x24] ss:$8 sps:$4 sm:$0xff]   ;;  %v1382_v30 = vld [vmem:[%s1819_s2 + $0x14] ss:$8 sps:$4 sm:$0xff]  }
  0x1e   : > { %721 = vmatprep.subr.bf16.mxu1 %v1370_v15  ;;  %v1366_v28 = vld [vmem:[%s1635_s12] sm:$0xff]   ;;  %v1384_v31 = vld [vmem:[%s1819_s2 + $0x10] ss:$8 sps:$4 sm:$0xff]   ;;  %v1392_v38 = vld [vmem:[%s1820_s3 + $0x68] sm:$0xff]   ;;  %s1258_s8 = sshll.u32 %s1488_s27, 8  ;;  %s414_s12 = scalar_lea.vmem [#allocation3], %s1189_s22 }
  0x1f   : > { %583 = vmatpush1.bf16.msra.mxu0 %v1347_v6  ;;  %v1381_v29 = vld [vmem:[%s1819_s2 + $0x20] ss:$8 sps:$4 sm:$0xff]   ;;  %v1385_v32 = vld [vmem:[%s1819_s2 + $0x4] ss:$8 sps:$4 sm:$0xff]   ;;  %v1388_v34 = vld [vmem:[%s1820_s3 + $0x78] sm:$0xff]   ;;  %s1009_s17 = sshll.u32 %s414_s12, 4  ;;  %s1768_s15 = scalar_lea.hbm %s1824_s7, %s1258_s8  ;;  %s1770_s17 = int_to_ptr.vmem [resolvable:$true] %s1009_s17 }
  0x20   : > { %584 = vmatprep.subr.bf16.mxu0 %v1348_v7  ;;  %v1387_v33 = vld [vmem:[%s1819_s2] ss:$8 sps:$4 sm:$0xff]   ;;  %v1389_v35 = vld [vmem:[%s1820_s3 + $0x38] sm:$0xff]   ;;  %v1390_v36 = vld [vmem:[%s1820_s3 + $0x70] sm:$0xff]   ;;  %s1420_s27 = scalar_lea.vmem %s1770_s17, 256 }
  0x21   : > { %722 = vmatpush1.bf16.msra.mxu1 %v1372_v17  ;;  %v1391_v37 = vld [vmem:[%s1820_s3 + $0x30] sm:$0xff]   ;;  %v1393_v39 = vld [vmem:[%s1820_s3 + $0x28] sm:$0xff]   ;;  %v1394_v40 = vld [vmem:[%s1820_s3 + $0x60] sm:$0xff]   ;;  %p1421_p12 = scmp.ne.s32.totalorder %s1770_s17, %s1420_s27 }
  0x22   : > { %723 = vmatprep.subr.bf16.mxu1 %v1373_v19  ;;  %v1395_v41 = vld [vmem:[%s1820_s3 + $0x20] sm:$0xff]   ;;  %v1396_v42 = vld [vmem:[%s1820_s3 + $0x58] sm:$0xff]   ;;  %v1398_v44 = vld [vmem:[%s1820_s3 + $0x50] sm:$0xff]  }
  0x23   : > { %585 = vmatpush1.bf16.msra.mxu0 %v1350_v8  ;;  %v1397_v43 = vld [vmem:[%s1820_s3 + $0x18] sm:$0xff]   ;;  %v1399_v45 = vld [vmem:[%s1820_s3 + $0x10] sm:$0xff]   ;;  %v1400_v46 = vld [vmem:[%s1820_s3 + $0x48] sm:$0xff]   ;;  %p1422_p13 = pnand %p1421_p12, %p1582_p4 }
  0x24   : > { %586 = vmatprep.subr.bf16.mxu0 %v1351_v11  ;;  %v1401_v47 = vld [vmem:[%s1820_s3 + $0x8] sm:$0xff]   ;;  %v1402_v48 = vld [vmem:[%s1820_s3 + $0x40] sm:$0xff]  }
  0x25   : > { %724 = vmatpush1.bf16.msra.mxu1 %v1375_v22  ;;  %v1403_v49 = vld [vmem:[%s1820_s3] sm:$0xff]   ;;  %p1423_p0 = pneg %p1422_p13 }
  0x26   : > { %725 = vmatprep.subr.bf16.mxu1 %v1376_v24  ;;  %v976_v22 = vld [vmem:[%s451_s30] sm:$0xff] }
  0x27   : > { %587 = vmatpush1.bf16.msra.mxu0 %v1353_v14  ;;  %v1249_v24 = vld [vmem:[%s465_s16] ss:$0 sm:$0xff]  ;;  %s1499_s16 = smov [#allocation3]  }
  0x28   : > { %588 = vmatprep.subr.bf16.mxu0 %v1354_v16  ;;  %s1424_s19 = sshll.u32 %s1499_s16, 4  ;;  %s1425_s19 = int_to_ptr.vmem [resolvable:$false] %s1424_s19 }
  0x29   : > { %726 = vmatpush1.bf16.msra.mxu1 %v1378_v25  ;;  %s1426_s20 = scalar_lea.vmem %s1425_s19, 512  ;;  %p1427_p1 = scmp.lt.s32.totalorder %s1770_s17, %s1425_s19 }
  0x2a   : > { %727 = vmatprep.subr.bf16.mxu1 %v1379_v27  ;;  %v972_v27 = vld [vmem:[%s461_s21] sm:$0xff]  ;;  %p1428_p2 = scmp.lt.s32.totalorder %s1426_s20, %s1420_s27 }
  0x2b   : > { %589 = vmatpush1.bf16.msra.mxu0 %v1356_v18 }
  0x2c   : > { %590 = vmatprep.subr.bf16.mxu0 %v1357_v20  ;;  %p1429_p3 = por %p1428_p2, %p1427_p1 }
  0x2d   : > { %728 = vmatpush1.bf16.msra.mxu1 %v1381_v29  ;;  %v977_v29 = vld [vmem:[%s451_s30 + $0x8] sm:$0xff]  ;;  %s1772_s30 = scalar_lea.sflag [#allocation4], %s412_s18 }
  0x2e   : > { %729 = vmatprep.subr.bf16.mxu1 %v1382_v30  ;;  %p1430_p5 = pnand %p1429_p3, %p1423_p0 }
  0x2f   : > { %591 = vmatpush1.bf16.msra.mxu0 %v1359_v21 }
  0x30   : > { %592 = vmatprep.subr.bf16.mxu0 %v1360_v23 }
  0x31   : > { %730 = vmatpush1.bf16.msra.mxu1 %v1384_v31 }
  0x32   : > { %731 = vmatprep.subr.bf16.mxu1 %v1385_v32 }
  0x33   : > { %593 = vmatpush1.bf16.msra.mxu0 %v1364_v26 }
  0x34   : > { %1259 = vmatprep.subr.bf16.mxu0 %v1388_v34  ;;  %v973_v34 = vld [vmem:[%s461_s21 + $0x8] sm:$0xff] }
  0x35   : > { %732 = vmatpush1.bf16.msra.mxu1 %v1387_v33 }
  0x36   : > { %611 = vmatmul.mubr.bf16.vlgmr.msra.gmra.mxu0 %v1366_v28 }
  0x37   : > { %1260 = vmatpush3.bf16.msra.mxu0 %v1389_v35 }
  0x38   : > { %750 = vmatmul.mubr.bf16.vlgmr.msra.gmra.mxu1 %v1366_v28  ;;  %1261 = vmatprep.subr.bf16.mxu0 %v1390_v36 }
  0x3b   : > { %1262 = vmatpush3.bf16.msra.mxu0 %v1391_v37 }
  0x3c   : > { %1263 = vmatprep.subr.bf16.mxu0 %v1392_v38 }
  0x3f   : > { %1264 = vmatpush3.bf16.msra.mxu0 %v1393_v39 }
  0x40   : > { %1265 = vmatprep.subr.bf16.mxu0 %v1394_v40 }
  0x43   : > { %1266 = vmatpush3.bf16.msra.mxu0 %v1395_v41 }
  0x44   : > { %1267 = vmatprep.subr.bf16.mxu0 %v1396_v42 }
  0x47   : > { %1268 = vmatpush3.bf16.msra.mxu0 %v1397_v43 }
  0x48   : > { %1269 = vmatprep.subr.bf16.mxu0 %v1398_v44 }
  0x4b   : > { %1270 = vmatpush3.bf16.msra.mxu0 %v1399_v45 }
  0x4c   : > { %1271 = vmatprep.subr.bf16.mxu0 %v1400_v46 }
  0x4f   : > { %1272 = vmatpush3.bf16.msra.mxu0 %v1401_v47 }
  0x50   : > { %1273 = vmatprep.subr.bf16.mxu0 %v1402_v48 }
  0x53   : > { %1274 = vmatpush3.bf16.msra.mxu0 %v1403_v49 }
  0xf6   : > { %v612_v50 = vpop.f32.mrf.mxu0 }
  0xf7   : > { %v1229_v51 = vmul.f32 -1.442695, %v612_v50 }
  0xf8   : > { %v614_v52 = vpop.f32.mrf.mxu0  ;;  %v751_v2 = vpop.f32.mrf.mxu1 }
  0xf9   : > { %1404 = vpow2.f32 %v1229_v51  ;;  %v1230_v53 = vmul.f32 -1.442695, %v614_v52 }
  0xfa   : > { %v616_v54 = vpop.f32.mrf.mxu0  ;;  %v753_v3 = vpop.f32.mrf.mxu1 }
  0xfb   : > { %1406 = vpow2.f32 %v1230_v53  ;;  %v1231_v55 = vmul.f32 -1.442695, %v616_v54 }
  0xfc   : > { %v618_v56 = vpop.f32.mrf.mxu0  ;;  %v755_v7 = vpop.f32.mrf.mxu1 }
  0xfd   : > { %1408 = vpow2.f32 %v1231_v55  ;;  %v1232_v57 = vmul.f32 -1.442695, %v618_v56 }
  0xfe   : > { %v757_v14 = vpop.f32.mrf.mxu1 }
  0xff   : > { %1410 = vpow2.f32 %v1232_v57 }
 0x106   : > { %v1405_v58 = vpop.eup %1404 }
 0x107   : > { %v772_v60 = vadd.f32 1.0, %v1405_v58 }
 0x108   : > { %v1407_v59 = vpop.eup %1406 }
 0x109   : > { %v773_v61 = vadd.f32 1.0, %v1407_v59 }
 0x10a   : > { %v1409_v62 = vpop.eup %1408 }
 0x10b   : > { %1412 = vrcp.f32 %v773_v61  ;;  %v774_v63 = vadd.f32 1.0, %v1409_v62 }
 0x10c   : > { %v1411_v0 = vpop.eup %1410  ;;  %1414 = vrcp.f32 %v772_v60 }
 0x10d   : > { %1416 = vrcp.f32 %v774_v63  ;;  %v775_v1 = vadd.f32 1.0, %v1411_v0 }
 0x10f   : > { %1418 = vrcp.f32 %v775_v1 }
 0x118   : > { %v1413_v4 = vpop.eup %1412 }
 0x119   : > { %v1415_v5 = vpop.eup %1414  ;;  %v785_v8 = vmul.f32 %v1413_v4, %v614_v52 }
 0x11a   : > { %v1417_v6 = vpop.eup %1416  ;;  %v784_v11 = vmul.f32 %v1415_v5, %v612_v50 }
 0x11b   : > { %v786_v9 = vmul.f32 %v1417_v6, %v616_v54  ;;  %v789_v15 = vmul.f32 %v785_v8, %v753_v3 }
 0x11c   : > { %v1419_v10 = vpop.eup %1418  ;;  %v788_v17 = vmul.f32 %v784_v11, %v751_v2 }
 0x11d   : > { %v787_v12 = vmul.f32 %v1419_v10, %v618_v56  ;;  %v790_v13 = vmul.f32 %v786_v9, %v755_v7 }
 0x11f   : > { %v791_v16 = vmul.f32 %v787_v12, %v757_v14  ;;  %v792_v19 = vpack.c.bf16 %v790_v13, %v788_v17 }
 0x121   : > { %v793_v18 = vpack.c.bf16 %v791_v16, %v789_v15 }
 0x123   : > { %956 = vmatprep.mubr.bf16.mxu0 %v793_v18 }
 0x124   : > { %957 = vmatmul.mubr.bf16.vlgmr.msra.gmra.mxu0 %v792_v19 }
 0x1e4   : > { %v1275_v20 = vpop.f32.mrf.mxu0 }
 0x1e6   : > { %v1276_v21 = vpop.f32.mrf.mxu0 }
 0x1e7   : > { %v1277_v23 = vadd.f32 %v1276_v21, %v1275_v20 }
 0x1e8   : > { %v1278_v25 = vpop.f32.mrf.mxu0 }
 0x1e9   : > { %v978_v26 = vadd.f32 %v1277_v23, %v976_v22 }
 0x1ea   : > { %v1279_v28 = vpop.f32.mrf.mxu0 }
 0x1eb   : > { %v987_v30 = vmul.f32 %v1249_v24, %v978_v26  ;;  %v1280_v31 = vadd.f32 %v1279_v28, %v1278_v25 }
 0x1ed   : > { %v989_v32 = vadd.f32 %v987_v30, %v972_v27  ;;  %v979_v33 = vadd.f32 %v1280_v31, %v977_v29 }
 0x1ef   : > { %991 = vst [vmem:[%s414_s12] sm:$0xff] %v989_v32  ;;  %v988_v35 = vmul.f32 %v1249_v24, %v979_v33 }
 0x1f1   : > { %v990_v36 = vadd.f32 %v988_v35, %v973_v34 }
 0x1f3   : > { %992 = vst [vmem:[%s414_s12 + $0x8] sm:$0xff] %v990_v36 }
 0x1f4   : > { %1433 = shalt.err (!%p1430_p5)
}
 0x1f5   : > { %s1434_s18 = scalar_lea.hbm %s1768_s15, 256  ;;  %s1438_s8 = scalar_lea.hbm %s1824_s7, 512 }
 0x1f6   : > { %p1435_p6 = scmp.ne.s32.totalorder %s1768_s15, %s1434_s18  ;;  %p1439_p10 = scmp.lt.s32.totalorder %s1768_s15, %s1824_s7 }
 0x1f7   : > { %p1440_p11 = scmp.lt.s32.totalorder %s1438_s8, %s1434_s18 }
 0x1f8   : > { %p1436_p7 = pnand %p1435_p6, %p1582_p4 }
 0x1f9   : > { %p1441_p12 = por %p1440_p11, %p1439_p10 }
 0x1fa   : > { %p1437_p9 = pneg %p1436_p7 }
 0x1fc   : > { %p1442_p13 = pnand %p1441_p12, %p1437_p9 }
 0x1fe   : > { %1445 = shalt.err (!%p1442_p13)
}
 0x1ff   : > { %s1500_s10 = smov 128   ;;  %s1501_s27 = smov 8  }
 0x200   : > { %1281 = dma.vmem_to_hbm [thread:$0]  (%p1582_p4), %s1770_s17, 256, %s1768_s15, %s1772_s30, %s1500_s10, %s1500_s10, %s1501_s27  }
 0x201 PF: > { %p1287_p0 = scmp.ge.s32.totalorder %s1496_s29, 2  ;;  %s1024_s16 = sand.u32 1, %s1476_s24  }
 0x202   : > { %s1025_s19 = scalar_lea.sflag [#allocation4], %s1024_s16 }
 0x203   : > { %p1284_p1 = pnand %p1287_p0, %p1589_p8 }
 0x205   : > { %p1285_p2 = pneg %p1284_p1 }
 0x207   : > { %1471 = dma.done.wait (%p1285_p2), %s1025_s19, 256  }
 0x208   : > { %1473 = vsyncadd (%p1285_p2), %s1025_s19, 4294967040  ;;  %s20_s29 = sadd.s32 1, %s1496_s29   ;;  %s1827_s24 = smov %s1480_s25 }
 0x209   : > { %p17_p3 = scmp.ge.s32.totalorder %s20_s29, 4   ;;  %s1828_s25 = smov %s1484_s26 }
 0x20a   : > { %s1829_s26 = smov %s1595_s14  ;;  %s1830_s27 = smov %s1492_s28 }
 0x20b   : > { %s1831_s28 = smov %s1833_s9  ;;  %19 = sbr.rel (!%p17_p3) target bundleno = 4 (0x4), region = 109 }
 0x210   :  { %1030 = vsyncpa [#allocation4], 1 }
 0x211   :  { %1032 = vsyncpa [#allocation4 + $0x1], 1 }

// kernel: hd_block_single.12
= control target key start
LH: loop header
LB: loop body
LE: loop exit
PB: predicated region body
PF: predicated region fallthrough
CT: control target
= control target key end

     0   :  { %s2182_s18 = smov 0   ;;  %s2184_s19 = smov 0   ;;  %s2441_s0 = inlined_call_operand.vmem [shape: bf16[32,128], index: 0, kind: input, shape index: {}]   ;;  %s2442_s1 = inlined_call_operand.vmem [shape: bf16[4,128,512], index: 1, kind: input, shape index: {}]   ;;  %s2443_s2 = inlined_call_operand.vmem [shape: bf16[4,128,512], index: 2, kind: input, shape index: {}]   ;;  %s2444_s3 = inlined_call_operand.vmem [shape: bf16[4,512,128], index: 3, kind: input, shape index: {}]   ;;  %s2445_s4 = inlined_call_operand.vmem [shape: f32[4,32,1], index: 4, kind: input, shape index: {}]   ;;  %s2446_s5 = inlined_call_operand.vmem [shape: f32[32,128], index: 5, kind: output, shape index: {}]  }
   0x1   :  { %s2186_s20 = smov 0  }
   0x2 LB: > { %s30_s21 = sadd.s32 1, %s2144_s19  ;;  %p1713_p0 = scmp.ge.s32.totalorder %s2148_s20, 1  ;;  %s2148_s20 = sphi %s2186_s20, %s15_s20   ;;  %s2144_s19 = sphi %s2184_s19, %s2448_s19   ;;  %s2140_s18 = sphi %s2182_s18, %s2447_s18  }
   0x3   : > { %p32_p1 = scmp.ge.s32.totalorder %s30_s21, 4  ;;  %p275_p2 = scmp.lt.s32.totalorder %s2148_s20, 5 }
   0x5   : > { %s2450_s21 = smov (%p32_p1, %s30_s21), 0  ;;  %p276_p3 = pnand %p1713_p0, %p275_p2 }
   0x6   : > { %p346_p4 = scmp.lt.s32.totalorder (!%p276_p3), %s2140_s18, 3  ;;  %p392_p5 = scmp.eq.s32.totalorder (!%p276_p3), %s2140_s18, 0 }
   0x7   : > { %279 = sbr.rel (%p276_p3) target bundleno = 516 (0x204), region = 40 }
   0xc   : > { %s347_s22 = scalar_select %p346_p4, %s2140_s18, 3  ;;  %v2150_v0 = vmov (%p392_p5), 0.0  }
   0xd   : > { %397 = sbr.rel (!%p392_p5) target bundleno = 18 (0x12), region = 44  ;;  %398 = vst [vmem:[#allocation2 + $0x10] sm:$0xff] (%p392_p5), %v2150_v0  ;;  %399 = vst [vmem:[#allocation2] sm:$0xff] (%p392_p5), %v2150_v0 }
   0xe   : > { %s1842_s23 = sshll.u32 %s347_s22, 8  ;;  %s1845_s24 = sshll.u32 %s347_s22, 5  ;;  %400 = vst [vmem:[#allocation2 + $0x18] sm:$0xff] (%p392_p5), %v2150_v0  ;;  %401 = vst [vmem:[#allocation2 + $0x8] sm:$0xff] (%p392_p5), %v2150_v0 }
   0xf   : > { %s2208_s27 = scalar_lea.vmem %s2442_s1, %s1842_s23  ;;  %s2213_s30 = scalar_lea.vmem %s2443_s2, %s1842_s23 }
  0x10   : > { %s2218_s8 = scalar_lea.vmem %s2444_s3, %s1842_s23  ;;  %s2223_s11 = scalar_lea.vmem %s2445_s4, %s1845_s24 }
  0x12 PF: > { %v1932_v1 = vld [vmem:[%s2208_s27 + $0xe4] ss:$16 sps:$4 sm:$0xff]   ;;  %v1934_v2 = vld [vmem:[%s2208_s27 + $0xec] ss:$16 sps:$4 sm:$0xff]   ;;  %v2151_v3 = vmov 0   ;;  %p1556_p6 = scmp.eq.s32.totalorder %s2140_s18, 3 }
  0x13   : > { %642 = vmatprep.mubr.bf16.mxu0 %v2151_v3  ;;  %695 = vmatprep.mubr.bf16.mxu1 %v2151_v3  ;;  %v1936_v4 = vld [vmem:[%s2208_s27 + $0xe0] ss:$16 sps:$4 sm:$0xff]   ;;  %v1937_v5 = vld [vmem:[%s2208_s27 + $0xe8] ss:$16 sps:$4 sm:$0xff]   ;;  %v1938_v6 = vld [vmem:[%s2208_s27 + $0xc4] ss:$16 sps:$4 sm:$0xff]  }
  0x14   : > { %610 = vmatprep.subr.bf16.mxu0 %v1932_v1  ;;  %1930 = vset.pattern.permute.xlu0 %v2151_v3  ;;  %v1940_v7 = vld [vmem:[%s2208_s27 + $0xcc] ss:$16 sps:$4 sm:$0xff]   ;;  %v1942_v8 = vld [vmem:[%s2208_s27 + $0xc0] ss:$16 sps:$4 sm:$0xff]   ;;  %v1943_v9 = vld [vmem:[%s2208_s27 + $0xc8] ss:$16 sps:$4 sm:$0xff]  }
  0x15   : > { %663 = vmatprep.subr.bf16.mxu1 %v1934_v2  ;;  %1931 = vset.pattern.permute.xlu1 %v2151_v3  ;;  %v1944_v10 = vld [vmem:[%s2208_s27 + $0xa4] ss:$16 sps:$4 sm:$0xff]   ;;  %v1946_v11 = vld [vmem:[%s2208_s27 + $0xac] ss:$16 sps:$4 sm:$0xff]   ;;  %v1948_v12 = vld [vmem:[%s2208_s27 + $0xa0] ss:$16 sps:$4 sm:$0xff]  }
  0x16   : > { %611 = vmatpush1.bf16.msra.mxu0 %v1936_v4  ;;  %664 = vmatpush1.bf16.msra.mxu1 %v1937_v5  ;;  %v1949_v13 = vld [vmem:[%s2208_s27 + $0xa8] ss:$16 sps:$4 sm:$0xff]   ;;  %v1950_v14 = vld [vmem:[%s2208_s27 + $0x84] ss:$16 sps:$4 sm:$0xff]   ;;  %v1952_v15 = vld [vmem:[%s2208_s27 + $0x8c] ss:$16 sps:$4 sm:$0xff]  }
  0x17   : > { %612 = vmatprep.subr.bf16.mxu0 %v1938_v6  ;;  %665 = vmatprep.subr.bf16.mxu1 %v1940_v7  ;;  %v1954_v16 = vld [vmem:[%s2208_s27 + $0x80] ss:$16 sps:$4 sm:$0xff]   ;;  %v1955_v17 = vld [vmem:[%s2208_s27 + $0x88] ss:$16 sps:$4 sm:$0xff]   ;;  %v1956_v18 = vld [vmem:[%s2208_s27 + $0x64] ss:$16 sps:$4 sm:$0xff]  }
  0x18   : > { %v1958_v19 = vld [vmem:[%s2208_s27 + $0x6c] ss:$16 sps:$4 sm:$0xff]   ;;  %v1960_v20 = vld [vmem:[%s2208_s27 + $0x60] ss:$16 sps:$4 sm:$0xff]   ;;  %v1961_v21 = vld [vmem:[%s2208_s27 + $0x68] ss:$16 sps:$4 sm:$0xff]  }
  0x19   : > { %v1962_v22 = vld [vmem:[%s2208_s27 + $0x44] ss:$16 sps:$4 sm:$0xff]   ;;  %v1964_v23 = vld [vmem:[%s2208_s27 + $0x4c] ss:$16 sps:$4 sm:$0xff]   ;;  %v1966_v24 = vld [vmem:[%s2208_s27 + $0x40] ss:$16 sps:$4 sm:$0xff]  }
  0x1a   : > { %613 = vmatpush1.bf16.msra.mxu0 %v1942_v8  ;;  %666 = vmatpush1.bf16.msra.mxu1 %v1943_v9  ;;  %v1967_v25 = vld [vmem:[%s2208_s27 + $0x48] ss:$16 sps:$4 sm:$0xff]   ;;  %v1968_v26 = vld [vmem:[%s2208_s27 + $0x24] ss:$16 sps:$4 sm:$0xff]   ;;  %v1970_v27 = vld [vmem:[%s2208_s27 + $0x2c] ss:$16 sps:$4 sm:$0xff]  }
  0x1b   : > { %614 = vmatprep.subr.bf16.mxu0 %v1944_v10  ;;  %667 = vmatprep.subr.bf16.mxu1 %v1946_v11  ;;  %v1972_v28 = vld [vmem:[%s2208_s27 + $0x20] ss:$16 sps:$4 sm:$0xff]   ;;  %v1973_v29 = vld [vmem:[%s2208_s27 + $0x28] ss:$16 sps:$4 sm:$0xff]   ;;  %v1974_v30 = vld [vmem:[%s2208_s27 + $0x4] ss:$16 sps:$4 sm:$0xff]  }
  0x1c   : > { %v1976_v31 = vld [vmem:[%s2208_s27 + $0xc] ss:$16 sps:$4 sm:$0xff]   ;;  %v1978_v32 = vld [vmem:[%s2208_s27] ss:$16 sps:$4 sm:$0xff]   ;;  %v1979_v33 = vld [vmem:[%s2208_s27 + $0x8] ss:$16 sps:$4 sm:$0xff]  }
  0x1d   : > { %v1983_v34 = vld [vmem:[%s2213_s30 + $0xe4] ss:$16 sps:$4 sm:$0xff]   ;;  %v1986_v35 = vld [vmem:[%s2213_s30 + $0xec] ss:$16 sps:$4 sm:$0xff]   ;;  %v1981_v37 = vld [vmem:[%s2213_s30 + $0xe0] ss:$16 sps:$4 sm:$0xff]  }
  0x1e   : > { %615 = vmatpush1.bf16.msra.mxu0 %v1948_v12  ;;  %668 = vmatpush1.bf16.msra.mxu1 %v1949_v13  ;;  %v2266_v36 = vld [vmem:[%s2441_s0] sm:$0xff]   ;;  %v1984_v38 = vld [vmem:[%s2213_s30 + $0xe8] ss:$16 sps:$4 sm:$0xff]   ;;  %v1992_v40 = vld [vmem:[%s2213_s30 + $0xcc] ss:$16 sps:$4 sm:$0xff]  }
  0x1f   : > { %616 = vmatprep.subr.bf16.mxu0 %v1950_v14  ;;  %669 = vmatprep.subr.bf16.mxu1 %v1952_v15  ;;  %v1989_v39 = vld [vmem:[%s2213_s30 + $0xc4] ss:$16 sps:$4 sm:$0xff]   ;;  %v1987_v41 = vld [vmem:[%s2213_s30 + $0xc0] ss:$16 sps:$4 sm:$0xff]   ;;  %v1990_v42 = vld [vmem:[%s2213_s30 + $0xc8] ss:$16 sps:$4 sm:$0xff]  }
  0x20   : > { %v1996_v43 = vld [vmem:[%s2213_s30 + $0xa4] ss:$16 sps:$4 sm:$0xff]   ;;  %v1999_v44 = vld [vmem:[%s2213_s30 + $0xac] ss:$16 sps:$4 sm:$0xff]   ;;  %v1994_v46 = vld [vmem:[%s2213_s30 + $0xa0] ss:$16 sps:$4 sm:$0xff]  }
  0x21   : > { %v2283_v45 = vld [vmem:[%s2441_s0 + $0x8] sm:$0xff]   ;;  %v2002_v48 = vld [vmem:[%s2213_s30 + $0x84] ss:$16 sps:$4 sm:$0xff]   ;;  %v2000_v50 = vld [vmem:[%s2213_s30 + $0x80] ss:$16 sps:$4 sm:$0xff]  }
  0x22   : > { %617 = vmatpush1.bf16.msra.mxu0 %v1954_v16  ;;  %670 = vmatpush1.bf16.msra.mxu1 %v1955_v17  ;;  %v1997_v47 = vld [vmem:[%s2213_s30 + $0xa8] ss:$16 sps:$4 sm:$0xff]   ;;  %v2005_v49 = vld [vmem:[%s2213_s30 + $0x8c] ss:$16 sps:$4 sm:$0xff]   ;;  %v1142_v52 = vld [vmem:[%s2223_s11] sm:$0xff] }
  0x23   : > { %618 = vmatprep.subr.bf16.mxu0 %v1956_v18  ;;  %671 = vmatprep.subr.bf16.mxu1 %v1958_v19  ;;  %v2003_v51 = vld [vmem:[%s2213_s30 + $0x88] ss:$16 sps:$4 sm:$0xff]   ;;  %v2008_v53 = vld [vmem:[%s2213_s30 + $0x64] ss:$16 sps:$4 sm:$0xff]   ;;  %v2011_v54 = vld [vmem:[%s2213_s30 + $0x6c] ss:$16 sps:$4 sm:$0xff]  }
  0x24   : > { %v1144_v55 = vld [vmem:[%s2223_s11 + $0x10] sm:$0xff]  ;;  %v2009_v57 = vld [vmem:[%s2213_s30 + $0x68] ss:$16 sps:$4 sm:$0xff]   ;;  %v2017_v61 = vld [vmem:[%s2213_s30 + $0x4c] ss:$16 sps:$4 sm:$0xff]   ;;  %1148 = vperm.xlu0 %1930, %v1142_v52  }
  0x25   : > { %v2006_v56 = vld [vmem:[%s2213_s30 + $0x60] ss:$16 sps:$4 sm:$0xff]   ;;  %v1143_v58 = vld [vmem:[%s2223_s11 + $0x8] sm:$0xff]  ;;  %v1145_v59 = vld [vmem:[%s2223_s11 + $0x18] sm:$0xff]  ;;  %1158 = vperm.xlu1 %1931, %v1144_v55  }
  0x26   : > { %619 = vmatpush1.bf16.msra.mxu0 %v1960_v20  ;;  %672 = vmatpush1.bf16.msra.mxu1 %v1961_v21  ;;  %v2014_v60 = vld [vmem:[%s2213_s30 + $0x44] ss:$16 sps:$4 sm:$0xff]   ;;  %v2012_v62 = vld [vmem:[%s2213_s30 + $0x40] ss:$16 sps:$4 sm:$0xff]   ;;  %v2015_v63 = vld [vmem:[%s2213_s30 + $0x48] ss:$16 sps:$4 sm:$0xff]  }
  0x27   : > { %620 = vmatprep.subr.bf16.mxu0 %v1962_v22  ;;  %673 = vmatprep.subr.bf16.mxu1 %v1964_v23  ;;  %v2020_v0 = vld [vmem:[%s2213_s30 + $0x24] ss:$16 sps:$4 sm:$0xff]   ;;  %v2023_v1 = vld [vmem:[%s2213_s30 + $0x2c] ss:$16 sps:$4 sm:$0xff]   ;;  %v2018_v2 = vld [vmem:[%s2213_s30 + $0x20] ss:$16 sps:$4 sm:$0xff]  }
  0x28   : > { %1153 = vperm.xlu0 %1930, %v1143_v58   ;;  %v2021_v4 = vld [vmem:[%s2213_s30 + $0x28] ss:$16 sps:$4 sm:$0xff]   ;;  %v2026_v5 = vld [vmem:[%s2213_s30 + $0x4] ss:$16 sps:$4 sm:$0xff]   ;;  %v2029_v6 = vld [vmem:[%s2213_s30 + $0xc] ss:$16 sps:$4 sm:$0xff]  }
  0x29   : > { %1163 = vperm.xlu1 %1931, %v1145_v59   ;;  %v2024_v7 = vld [vmem:[%s2213_s30] ss:$16 sps:$4 sm:$0xff]   ;;  %v2027_v8 = vld [vmem:[%s2213_s30 + $0x8] ss:$16 sps:$4 sm:$0xff]  }
  0x2a   : > { %621 = vmatpush1.bf16.msra.mxu0 %v1966_v24  ;;  %674 = vmatpush1.bf16.msra.mxu1 %v1967_v25  ;;  %v2030_v9 = vld [vmem:[%s2218_s8 + $0x78] sm:$0xff]   ;;  %v2034_v13 = vld [vmem:[%s2218_s8 + $0x70] sm:$0xff]   ;;  %v2038_v16 = vld [vmem:[%s2218_s8 + $0x68] sm:$0xff]  }
  0x2b   : > { %622 = vmatprep.subr.bf16.mxu0 %v1968_v26  ;;  %675 = vmatprep.subr.bf16.mxu1 %v1970_v27  ;;  %v2031_v10 = vld [vmem:[%s2218_s8 + $0xf8] sm:$0xff]   ;;  %v2035_v14 = vld [vmem:[%s2218_s8 + $0xf0] sm:$0xff]   ;;  %v2039_v17 = vld [vmem:[%s2218_s8 + $0xe8] sm:$0xff]  }
  0x2c   : > { %v2032_v11 = vld [vmem:[%s2218_s8 + $0x38] sm:$0xff]   ;;  %v2037_v15 = vld [vmem:[%s2218_s8 + $0xb0] sm:$0xff]   ;;  %v2040_v18 = vld [vmem:[%s2218_s8 + $0x28] sm:$0xff]  }
  0x2d   : > { %v2033_v12 = vld [vmem:[%s2218_s8 + $0xb8] sm:$0xff]   ;;  %v2041_v19 = vld [vmem:[%s2218_s8 + $0xa8] sm:$0xff]   ;;  %v2042_v20 = vld [vmem:[%s2218_s8 + $0x60] sm:$0xff]  }
  0x2e   : > { %623 = vmatpush1.bf16.msra.mxu0 %v1972_v28  ;;  %676 = vmatpush1.bf16.msra.mxu1 %v1973_v29  ;;  %v2043_v21 = vld [vmem:[%s2218_s8 + $0xe0] sm:$0xff]   ;;  %v2046_v24 = vld [vmem:[%s2218_s8 + $0x58] sm:$0xff]   ;;  %v2050_v28 = vld [vmem:[%s2218_s8 + $0x50] sm:$0xff]  }
  0x2f   : > { %624 = vmatprep.subr.bf16.mxu0 %v1974_v30  ;;  %677 = vmatprep.subr.bf16.mxu1 %v1976_v31  ;;  %v2044_v22 = vld [vmem:[%s2218_s8 + $0x20] sm:$0xff]   ;;  %v2047_v25 = vld [vmem:[%s2218_s8 + $0xd8] sm:$0xff]   ;;  %v2051_v29 = vld [vmem:[%s2218_s8 + $0xd0] sm:$0xff]  }
  0x30   : > { %v2045_v23 = vld [vmem:[%s2218_s8 + $0xa0] sm:$0xff]   ;;  %v2048_v26 = vld [vmem:[%s2218_s8 + $0x18] sm:$0xff]   ;;  %v2052_v30 = vld [vmem:[%s2218_s8 + $0x10] sm:$0xff]  }
  0x31   : > { %v2049_v27 = vld [vmem:[%s2218_s8 + $0x98] sm:$0xff]   ;;  %v2053_v31 = vld [vmem:[%s2218_s8 + $0x90] sm:$0xff]  }
  0x32   : > { %625 = vmatpush1.bf16.msra.mxu0 %v1978_v32  ;;  %678 = vmatpush1.bf16.msra.mxu1 %v1979_v33  ;;  %v2054_v32 = vld [vmem:[%s2218_s8 + $0x48] sm:$0xff]  }
  0x33   : > { %908 = vmatprep.subr.bf16.mxu0 %v1983_v34  ;;  %961 = vmatprep.subr.bf16.mxu1 %v1986_v35  ;;  %v2055_v33 = vld [vmem:[%s2218_s8 + $0xc8] sm:$0xff]  }
  0x34   : > { %v2056_v34 = vld [vmem:[%s2218_s8 + $0x8] sm:$0xff]  }
  0x35   : > { %643 = vmatmul.mubr.bf16.vlgmr.msra.gmra.mxu0 %v2266_v36  ;;  %696 = vmatmul.mubr.bf16.vlgmr.msra.gmra.mxu1 %v2266_v36  ;;  %v2057_v35 = vld [vmem:[%s2218_s8 + $0x88] sm:$0xff]  }
  0x36   : > { %909 = vmatpush1.bf16.msra.mxu0 %v1981_v37  ;;  %962 = vmatpush1.bf16.msra.mxu1 %v1984_v38  ;;  %v2059_v37 = vld [vmem:[%s2218_s8 + $0xc0] sm:$0xff]  }
  0x37   : > { %910 = vmatprep.subr.bf16.mxu0 %v1989_v39  ;;  %963 = vmatprep.subr.bf16.mxu1 %v1992_v40  ;;  %v2060_v38 = vld [vmem:[%s2218_s8] sm:$0xff]  }
  0x38   : > { %652 = vmatprep.mubr.bf16.mxu0 %v2151_v3  ;;  %705 = vmatprep.mubr.bf16.mxu1 %v2151_v3  ;;  %v2061_v39 = vld [vmem:[%s2218_s8 + $0x80] sm:$0xff]  }
  0x3a   : > { %911 = vmatpush1.bf16.msra.mxu0 %v1987_v41  ;;  %964 = vmatpush1.bf16.msra.mxu1 %v1990_v42 }
  0x3b   : > { %912 = vmatprep.subr.bf16.mxu0 %v1996_v43  ;;  %965 = vmatprep.subr.bf16.mxu1 %v1999_v44 }
  0x3d   : > { %653 = vmatmul.mubr.bf16.gmra.mxu0 %v2283_v45  ;;  %706 = vmatmul.mubr.bf16.gmra.mxu1 %v2283_v45 }
  0x3e   : > { %913 = vmatpush1.bf16.msra.mxu0 %v1994_v46  ;;  %966 = vmatpush1.bf16.msra.mxu1 %v1997_v47 }
  0x3f   : > { %914 = vmatprep.subr.bf16.mxu0 %v2002_v48  ;;  %967 = vmatprep.subr.bf16.mxu1 %v2005_v49 }
  0x40   : > { %940 = vmatprep.mubr.bf16.mxu0 %v2151_v3  ;;  %993 = vmatprep.mubr.bf16.mxu1 %v2151_v3 }
  0x42   : > { %915 = vmatpush1.bf16.msra.mxu0 %v2000_v50  ;;  %968 = vmatpush1.bf16.msra.mxu1 %v2003_v51 }
  0x43   : > { %916 = vmatprep.subr.bf16.mxu0 %v2008_v53  ;;  %969 = vmatprep.subr.bf16.mxu1 %v2011_v54 }
  0x46   : > { %917 = vmatpush1.bf16.msra.mxu0 %v2006_v56  ;;  %970 = vmatpush1.bf16.msra.mxu1 %v2009_v57 }
  0x47   : > { %918 = vmatprep.subr.bf16.mxu0 %v2014_v60  ;;  %971 = vmatprep.subr.bf16.mxu1 %v2017_v61 }
  0x4a   : > { %919 = vmatpush1.bf16.msra.mxu0 %v2012_v62  ;;  %972 = vmatpush1.bf16.msra.mxu1 %v2015_v63 }
  0x4b   : > { %920 = vmatprep.subr.bf16.mxu0 %v2020_v0  ;;  %973 = vmatprep.subr.bf16.mxu1 %v2023_v1 }
  0x4e   : > { %921 = vmatpush1.bf16.msra.mxu0 %v2018_v2  ;;  %974 = vmatpush1.bf16.msra.mxu1 %v2021_v4 }
  0x4f   : > { %922 = vmatprep.subr.bf16.mxu0 %v2026_v5  ;;  %975 = vmatprep.subr.bf16.mxu1 %v2029_v6 }
  0x52   : > { %923 = vmatpush1.bf16.msra.mxu0 %v2024_v7  ;;  %976 = vmatpush1.bf16.msra.mxu1 %v2027_v8 }
  0x53   : > { %1848 = vmatprep.subr.bf16.mxu0 %v2030_v9  ;;  %1876 = vmatprep.subr.bf16.mxu1 %v2031_v10 }
  0x55   : > { %941 = vmatmul.mubr.bf16.vlgmr.msra.gmra.mxu0 %v2266_v36  ;;  %994 = vmatmul.mubr.bf16.vlgmr.msra.gmra.mxu1 %v2266_v36  ;;  %v2058_v36 = vld [vmem:[%s2218_s8 + $0x40] sm:$0xff]  }
  0x56   : > { %950 = vmatprep.mubr.bf16.mxu0 %v2151_v3  ;;  %1003 = vmatprep.mubr.bf16.mxu1 %v2151_v3  ;;  %v2036_v3 = vld [vmem:[%s2218_s8 + $0x30] sm:$0xff]  }
  0x57   : > { %1849 = vmatpush3.bf16.msra.mxu0 %v2032_v11  ;;  %1877 = vmatpush3.bf16.msra.mxu1 %v2033_v12 }
  0x58   : > { %1850 = vmatprep.subr.bf16.mxu0 %v2034_v13  ;;  %1878 = vmatprep.subr.bf16.mxu1 %v2035_v14 }
  0x5b   : > { %1851 = vmatpush3.bf16.msra.mxu0 %v2036_v3  ;;  %1879 = vmatpush3.bf16.msra.mxu1 %v2037_v15 }
  0x5c   : > { %1852 = vmatprep.subr.bf16.mxu0 %v2038_v16  ;;  %1880 = vmatprep.subr.bf16.mxu1 %v2039_v17 }
  0x5d   : > { %951 = vmatmul.mubr.bf16.gmra.mxu0 %v2283_v45  ;;  %1004 = vmatmul.mubr.bf16.gmra.mxu1 %v2283_v45 }
  0x5f   : > { %1853 = vmatpush3.bf16.msra.mxu0 %v2040_v18  ;;  %1881 = vmatpush3.bf16.msra.mxu1 %v2041_v19 }
  0x60   : > { %1854 = vmatprep.subr.bf16.mxu0 %v2042_v20  ;;  %1882 = vmatprep.subr.bf16.mxu1 %v2043_v21 }
  0x63   : > { %1855 = vmatpush3.bf16.msra.mxu0 %v2044_v22  ;;  %1883 = vmatpush3.bf16.msra.mxu1 %v2045_v23 }
  0x64   : > { %1856 = vmatprep.subr.bf16.mxu0 %v2046_v24  ;;  %1884 = vmatprep.subr.bf16.mxu1 %v2047_v25 }
  0x67   : > { %1857 = vmatpush3.bf16.msra.mxu0 %v2048_v26  ;;  %1885 = vmatpush3.bf16.msra.mxu1 %v2049_v27 }
  0x68   : > { %1858 = vmatprep.subr.bf16.mxu0 %v2050_v28  ;;  %1886 = vmatprep.subr.bf16.mxu1 %v2051_v29 }
  0x6b   : > { %1859 = vmatpush3.bf16.msra.mxu0 %v2052_v30  ;;  %1887 = vmatpush3.bf16.msra.mxu1 %v2053_v31 }
  0x6c   : > { %1860 = vmatprep.subr.bf16.mxu0 %v2054_v32  ;;  %1888 = vmatprep.subr.bf16.mxu1 %v2055_v33 }
  0x6f   : > { %1861 = vmatpush3.bf16.msra.mxu0 %v2056_v34  ;;  %1889 = vmatpush3.bf16.msra.mxu1 %v2057_v35 }
  0x70   : > { %1862 = vmatprep.subr.bf16.mxu0 %v2058_v36  ;;  %1890 = vmatprep.subr.bf16.mxu1 %v2059_v37 }
  0x73   : > { %1863 = vmatpush3.bf16.msra.mxu0 %v2060_v38  ;;  %1891 = vmatpush3.bf16.msra.mxu1 %v2061_v39 }
  0xf5   : > { %v2353_v40 = vpop.f32.mrf.mxu0  ;;  %v2355_v41 = vpop.f32.mrf.mxu1 }
  0xf6   : > { %v1789_v42 = vmul.f32 -1.442695, %v2353_v40  ;;  %v1791_v43 = vmul.f32 -1.442695, %v2355_v41 }
  0xf7   : > { %v2359_v44 = vpop.f32.mrf.mxu0  ;;  %v2361_v45 = vpop.f32.mrf.mxu1 }
  0xf8   : > { %2062 = vpow2.f32 %v1789_v42  ;;  %v1790_v46 = vmul.f32 -1.442695, %v2359_v44  ;;  %v1792_v47 = vmul.f32 -1.442695, %v2361_v45 }
  0xf9   : > { %2064 = vpow2.f32 %v1791_v43  ;;  %v2365_v48 = vpop.f32.mrf.mxu0  ;;  %v2367_v49 = vpop.f32.mrf.mxu1 }
  0xfa   : > { %2066 = vpow2.f32 %v1790_v46  ;;  %v1793_v50 = vmul.f32 -1.442695, %v2365_v48  ;;  %v1795_v51 = vmul.f32 -1.442695, %v2367_v49 }
  0xfb   : > { %2068 = vpow2.f32 %v1792_v47  ;;  %v2371_v52 = vpop.f32.mrf.mxu0  ;;  %v2373_v53 = vpop.f32.mrf.mxu1 }
  0xfc   : > { %2070 = vpow2.f32 %v1793_v50  ;;  %v1794_v54 = vmul.f32 -1.442695, %v2371_v52  ;;  %v1796_v55 = vmul.f32 -1.442695, %v2373_v53 }
  0xfd   : > { %2072 = vpow2.f32 %v1795_v51  ;;  %v2377_v56 = vpop.f32.mrf.mxu0  ;;  %v2379_v57 = vpop.f32.mrf.mxu1 }
  0xfe   : > { %2074 = vpow2.f32 %v1794_v54  ;;  %v1797_v58 = vmul.f32 -1.442695, %v2377_v56  ;;  %v1799_v59 = vmul.f32 -1.442695, %v2379_v57 }
  0xff   : > { %2076 = vpow2.f32 %v1796_v55  ;;  %v2383_v60 = vpop.f32.mrf.mxu0  ;;  %v2385_v61 = vpop.f32.mrf.mxu1 }
 0x100   : > { %2078 = vpow2.f32 %v1797_v58  ;;  %v1798_v62 = vmul.f32 -1.442695, %v2383_v60  ;;  %v1800_v63 = vmul.f32 -1.442695, %v2385_v61 }
 0x101   : > { %2080 = vpow2.f32 %v1799_v59  ;;  %v2389_v0 = vpop.f32.mrf.mxu0  ;;  %v2391_v1 = vpop.f32.mrf.mxu1 }
 0x102   : > { %2082 = vpow2.f32 %v1798_v62  ;;  %v1801_v2 = vmul.f32 -1.442695, %v2389_v0  ;;  %v1803_v4 = vmul.f32 -1.442695, %v2391_v1  ;;  %v1149_v59 = vpop.permute.xlu0 %1148 }
 0x103   : > { %2084 = vpow2.f32 %v1800_v63  ;;  %v2395_v5 = vpop.f32.mrf.mxu0  ;;  %v2397_v6 = vpop.f32.mrf.mxu1 }
 0x104   : > { %2086 = vpow2.f32 %v1801_v2  ;;  %v1802_v7 = vmul.f32 -1.442695, %v2395_v5  ;;  %v1804_v8 = vmul.f32 -1.442695, %v2397_v6 }
 0x105   : > { %v2063_v9 = vpop.eup %2062  ;;  %2088 = vpow2.f32 %v1803_v4 }
 0x106   : > { %v2065_v10 = vpop.eup %2064  ;;  %v1062_v11 = vadd.f32 1.0, %v2063_v9  ;;  %2090 = vpow2.f32 %v1802_v7 }
 0x107   : > { %v2067_v12 = vpop.eup %2066  ;;  %v1064_v13 = vadd.f32 1.0, %v2065_v10  ;;  %2092 = vpow2.f32 %v1804_v8 }
 0x108   : > { %v2069_v14 = vpop.eup %2068  ;;  %2094 = vrcp.f32 %v1062_v11  ;;  %v1063_v3 = vadd.f32 1.0, %v2067_v12 }
 0x109   : > { %v2071_v15 = vpop.eup %2070  ;;  %2096 = vrcp.f32 %v1064_v13  ;;  %v1065_v16 = vadd.f32 1.0, %v2069_v14 }
 0x10a   : > { %v2073_v17 = vpop.eup %2072  ;;  %2098 = vrcp.f32 %v1063_v3  ;;  %v1066_v18 = vadd.f32 1.0, %v2071_v15 }
 0x10b   : > { %v2075_v19 = vpop.eup %2074  ;;  %2100 = vrcp.f32 %v1065_v16  ;;  %v1068_v20 = vadd.f32 1.0, %v2073_v17 }
 0x10c   : > { %v2077_v21 = vpop.eup %2076  ;;  %2102 = vrcp.f32 %v1066_v18  ;;  %v1067_v22 = vadd.f32 1.0, %v2075_v19 }
 0x10d   : > { %v2079_v23 = vpop.eup %2078  ;;  %2104 = vrcp.f32 %v1068_v20  ;;  %v1069_v24 = vadd.f32 1.0, %v2077_v21 }
 0x10e   : > { %v2081_v25 = vpop.eup %2080  ;;  %2106 = vrcp.f32 %v1067_v22  ;;  %v1070_v26 = vadd.f32 1.0, %v2079_v23  ;;  %v1154_v22 = vpop.permute.xlu0 %1153 }
 0x10f   : > { %v2083_v27 = vpop.eup %2082  ;;  %2108 = vrcp.f32 %v1069_v24  ;;  %v1072_v28 = vadd.f32 1.0, %v2081_v25 }
 0x110   : > { %v2085_v29 = vpop.eup %2084  ;;  %2110 = vrcp.f32 %v1070_v26  ;;  %v1071_v30 = vadd.f32 1.0, %v2083_v27 }
 0x111   : > { %v2087_v31 = vpop.eup %2086  ;;  %2112 = vrcp.f32 %v1072_v28  ;;  %v1073_v32 = vadd.f32 1.0, %v2085_v29 }
 0x112   : > { %v2089_v33 = vpop.eup %2088  ;;  %2114 = vrcp.f32 %v1071_v30  ;;  %v1074_v34 = vadd.f32 1.0, %v2087_v31 }
 0x113   : > { %v2091_v35 = vpop.eup %2090  ;;  %2116 = vrcp.f32 %v1073_v32  ;;  %v1076_v36 = vadd.f32 1.0, %v2089_v33  ;;  %v1159_v32 = vpop.permute.xlu1 %1158 }
 0x114   : > { %v2093_v37 = vpop.eup %2092  ;;  %2118 = vrcp.f32 %v1074_v34  ;;  %v1075_v38 = vadd.f32 1.0, %v2091_v35 }
 0x115   : > { %v2095_v39 = vpop.eup %2094  ;;  %2120 = vrcp.f32 %v1076_v36  ;;  %v1077_v42 = vadd.f32 1.0, %v2093_v37  ;;  %v942_v43 = vpop.f32.mrf.mxu0 }
 0x116   : > { %v995_v46 = vpop.f32.mrf.mxu1  ;;  %v2097_v47 = vpop.eup %2096  ;;  %2122 = vrcp.f32 %v1075_v38  ;;  %v1110_v63 = vmul.f32 %v2095_v39, %v2353_v40 }
 0x117   : > { %v2099_v50 = vpop.eup %2098  ;;  %2124 = vrcp.f32 %v1077_v42  ;;  %v944_v51 = vpop.f32.mrf.mxu0  ;;  %v1112_v9 = vmul.f32 %v2097_v47, %v2355_v41 }
 0x118   : > { %v997_v54 = vpop.f32.mrf.mxu1  ;;  %v2101_v55 = vpop.eup %2100  ;;  %v1111_v58 = vmul.f32 %v2099_v50, %v2359_v44  ;;  %v1126_v17 = vmul.f32 %v1110_v63, %v942_v43 }
 0x119   : > { %v2103_v62 = vpop.eup %2102  ;;  %v1113_v2 = vmul.f32 %v2101_v55, %v2361_v45  ;;  %v946_v4 = vpop.f32.mrf.mxu0 }
 0x11a   : > { %v999_v7 = vpop.f32.mrf.mxu1  ;;  %v2105_v8 = vpop.eup %2104  ;;  %v1114_v10 = vmul.f32 %v2103_v62, %v2365_v48  ;;  %v1127_v15 = vmul.f32 %v1111_v58, %v944_v51  ;;  %v1128_v48 = vmul.f32 %v1112_v9, %v995_v46  ;;  %v1166_v35 = vmul.f32 %v1149_v59, %v1126_v17 }
 0x11b   : > { %v2107_v11 = vpop.eup %2106  ;;  %v1116_v12 = vmul.f32 %v2105_v8, %v2367_v49  ;;  %v948_v13 = vpop.f32.mrf.mxu0  ;;  %v1129_v18 = vmul.f32 %v1113_v2, %v997_v54 }
 0x11c   : > { %v1001_v14 = vpop.f32.mrf.mxu1  ;;  %v2109_v3 = vpop.eup %2108  ;;  %v1115_v44 = vmul.f32 %v2107_v11, %v2371_v52  ;;  %v1130_v16 = vmul.f32 %v1114_v10, %v946_v4  ;;  %v1168_v43 = vmul.f32 %v1149_v59, %v1128_v48 }
 0x11d   : > { %v2111_v40 = vpop.eup %2110  ;;  %v1117_v45 = vmul.f32 %v2109_v3, %v2373_v53  ;;  %v1132_v19 = vmul.f32 %v1116_v12, %v999_v7  ;;  %v952_v20 = vpop.f32.mrf.mxu0  ;;  %v1167_v53 = vmul.f32 %v1149_v59, %v1127_v15  ;;  %v1169_v36 = vmul.f32 %v1149_v59, %v1129_v18 }
 0x11e   : > { %v1005_v41 = vpop.f32.mrf.mxu1  ;;  %v2113_v21 = vpop.eup %2112  ;;  %v1131_v23 = vmul.f32 %v1115_v44, %v948_v13  ;;  %v1118_v24 = vmul.f32 %v2111_v40, %v2377_v56  ;;  %v1170_v25 = vmul.f32 %v1154_v22, %v1130_v16 }
 0x11f   : > { %v2115_v49 = vpop.eup %2114  ;;  %v1133_v26 = vmul.f32 %v1117_v45, %v1001_v14  ;;  %v954_v52 = vpop.f32.mrf.mxu0  ;;  %v1172_v30 = vmul.f32 %v1154_v22, %v1132_v19  ;;  %v1120_v56 = vmul.f32 %v2113_v21, %v2379_v57 }
 0x120   : > { %v1007_v27 = vpop.f32.mrf.mxu1  ;;  %v2117_v28 = vpop.eup %2116  ;;  %v1119_v29 = vmul.f32 %v2115_v49, %v2383_v60  ;;  %v1171_v31 = vmul.f32 %v1154_v22, %v1131_v23  ;;  %v1182_v51 = vpack.c.bf16 %v1170_v25, %v1166_v35  ;;  %v1134_v54 = vmul.f32 %v1118_v24, %v952_v20 }
 0x121   : > { %v2119_v33 = vpop.eup %2118  ;;  %v1121_v34 = vmul.f32 %v2117_v28, %v2385_v61  ;;  %v1173_v37 = vmul.f32 %v1154_v22, %v1133_v26  ;;  %v956_v38 = vpop.f32.mrf.mxu0  ;;  %v1184_v62 = vpack.c.bf16 %v1172_v30, %v1168_v43  ;;  %v1136_v7 = vmul.f32 %v1120_v56, %v1005_v41  ;;  %v1190_v22 = vld [vmem:[#allocation2 + $0x10] sm:$0xff] }
 0x122   : > { %v2121_v39 = vpop.eup %2120  ;;  %v1122_v42 = vmul.f32 %v2119_v33, %v2389_v0  ;;  %v1009_v46 = vpop.f32.mrf.mxu1  ;;  %v1183_v47 = vpack.c.bf16 %v1171_v31, %v1167_v53  ;;  %v1135_v63 = vmul.f32 %v1119_v29, %v954_v52  ;;  %v1174_v14 = vmul.f32 %v1159_v32, %v1134_v54  ;;  %v1191_v29 = vld [vmem:[#allocation2] sm:$0xff] }
 0x123   : > { %v2123_v60 = vpop.eup %2122  ;;  %v1124_v50 = vmul.f32 %v2121_v39, %v2391_v1  ;;  %v1185_v55 = vpack.c.bf16 %v1173_v37, %v1169_v36  ;;  %v1137_v4 = vmul.f32 %v1121_v34, %v1007_v27  ;;  %v958_v59 = vpop.f32.mrf.mxu0  ;;  %v1192_v37 = vld [vmem:[#allocation2 + $0x18] sm:$0xff] }
 0x124   : > { %v2125_v58 = vpop.eup %2124  ;;  %v1123_v61 = vmul.f32 %v2123_v60, %v2395_v5  ;;  %v1138_v2 = vmul.f32 %v1122_v42, %v956_v38  ;;  %1482 = vmatprep.mubr.bf16.mxu0 %v1183_v47  ;;  %v1164_v8 = vpop.permute.xlu1 %1163  ;;  %v1175_v5 = vmul.f32 %v1159_v32, %v1135_v63  ;;  %v1193_v60 = vld [vmem:[#allocation2 + $0x8] sm:$0xff] }
 0x125   : > { %v1125_v57 = vmul.f32 %v2125_v58, %v2397_v6  ;;  %v1140_v0 = vmul.f32 %v1124_v50, %v1009_v46  ;;  %1531 = vmatprep.mubr.bf16.mxu1 %v1185_v55  ;;  %1483 = vmatmul.mubr.bf16.vlgmr.msra.gmra.mxu0 %v1182_v51  ;;  %v1011_v9 = vpop.f32.mrf.mxu1  ;;  %v1177_v3 = vmul.f32 %v1159_v32, %v1137_v4 }
 0x126   : > { %v1139_v1 = vmul.f32 %v1123_v61, %v958_v59  ;;  %1532 = vmatmul.mubr.bf16.vlgmr.msra.gmra.mxu1 %v1184_v62  ;;  %v1178_v10 = vmul.f32 %v1164_v8, %v1138_v2  ;;  %v1176_v6 = vmul.f32 %v1159_v32, %v1136_v7 }
 0x127   : > { %v1141_v11 = vmul.f32 %v1125_v57, %v1011_v9  ;;  %v1180_v12 = vmul.f32 %v1164_v8, %v1140_v0 }
 0x128   : > { %v1179_v13 = vmul.f32 %v1164_v8, %v1139_v1  ;;  %v1186_v40 = vpack.c.bf16 %v1178_v10, %v1174_v14 }
 0x129   : > { %v1181_v44 = vmul.f32 %v1164_v8, %v1141_v11  ;;  %v1188_v45 = vpack.c.bf16 %v1180_v12, %v1176_v6 }
 0x12a   : > { %v1187_v15 = vpack.c.bf16 %v1179_v13, %v1175_v5 }
 0x12b   : > { %v1189_v16 = vpack.c.bf16 %v1181_v44, %v1177_v3 }
 0x12c   : > { %1490 = vmatprep.mubr.bf16.mxu0 %v1187_v15 }
 0x12d   : > { %1539 = vmatprep.mubr.bf16.mxu1 %v1189_v16  ;;  %1491 = vmatmul.mubr.bf16.gmra.mxu0 %v1186_v40 }
 0x12e   : > { %1540 = vmatmul.mubr.bf16.gmra.mxu1 %v1188_v45 }
 0x1e5   : > { %v1864_v17 = vpop.f32.mrf.mxu0 }
 0x1e6   : > { %v1892_v18 = vpop.f32.mrf.mxu1 }
 0x1e7   : > { %v1865_v19 = vpop.f32.mrf.mxu0 }
 0x1e8   : > { %v1866_v20 = vadd.f32 %v1865_v19, %v1864_v17  ;;  %v1893_v41 = vpop.f32.mrf.mxu1 }
 0x1e9   : > { %v1894_v21 = vadd.f32 %v1893_v41, %v1892_v18  ;;  %v1867_v48 = vpop.f32.mrf.mxu0 }
 0x1ea   : > { %v1895_v23 = vpop.f32.mrf.mxu1 }
 0x1eb   : > { %v1534_v49 = vadd.f32 %v1894_v21, %v1866_v20  ;;  %v1868_v24 = vpop.f32.mrf.mxu0 }
 0x1ec   : > { %v1869_v25 = vadd.f32 %v1868_v24, %v1867_v48  ;;  %v1896_v26 = vpop.f32.mrf.mxu1 }
 0x1ed   : > { %v1548_v52 = vadd.f32 %v1534_v49, %v1190_v22  ;;  %v1897_v27 = vadd.f32 %v1896_v26, %v1895_v23  ;;  %v1870_v28 = vpop.f32.mrf.mxu0 }
 0x1ee   : > { %v1898_v53 = vpop.f32.mrf.mxu1 }
 0x1ef   : > { %1552 = vst [vmem:[#allocation2 + $0x10] sm:$0xff] %v1548_v52  ;;  %v1537_v30 = vadd.f32 %v1897_v27, %v1869_v25  ;;  %v1871_v31 = vpop.f32.mrf.mxu0 }
 0x1f0   : > { %v1872_v32 = vadd.f32 %v1871_v31, %v1870_v28  ;;  %v1899_v33 = vpop.f32.mrf.mxu1 }
 0x1f1   : > { %v1549_v34 = vadd.f32 %v1537_v30, %v1191_v29  ;;  %v1900_v35 = vadd.f32 %v1899_v33, %v1898_v53  ;;  %v1873_v36 = vpop.f32.mrf.mxu0 }
 0x1f2   : > { %v1901_v38 = vpop.f32.mrf.mxu1 }
 0x1f3   : > { %1553 = vst [vmem:[#allocation2] sm:$0xff] %v1549_v34  ;;  %v1542_v39 = vadd.f32 %v1900_v35, %v1872_v32  ;;  %v1874_v56 = vpop.f32.mrf.mxu0 }
 0x1f4   : > { %v1875_v42 = vadd.f32 %v1874_v56, %v1873_v36  ;;  %v1902_v43 = vpop.f32.mrf.mxu1 }
 0x1f5   : > { %v1550_v46 = vadd.f32 %v1542_v39, %v1192_v37  ;;  %v1903_v47 = vadd.f32 %v1902_v43, %v1901_v38 }
 0x1f6   : > { %v1561_v54 = vld [vmem:[#allocation2 + $0x10] sm:$0xff] (%p1556_p6) }
 0x1f7   : > { %1554 = vst [vmem:[#allocation2 + $0x18] sm:$0xff] %v1550_v46  ;;  %v1545_v50 = vadd.f32 %v1903_v47, %v1875_v42  ;;  %1560 = sbr.rel (!%p1556_p6) target bundleno = 516 (0x204), region = 48  ;;  %1565 = vst [vmem:[%s2446_s5] sm:$0xff] (%p1556_p6), %v1561_v54 }
 0x1f9   : > { %v1551_v51 = vadd.f32 %v1545_v50, %v1193_v60 }
 0x1fa   : > { %v1562_v55 = vld [vmem:[#allocation2] sm:$0xff] (%p1556_p6) }
 0x1fb   : > { %1555 = vst [vmem:[#allocation2 + $0x8] sm:$0xff] %v1551_v51  ;;  %1566 = vst [vmem:[%s2446_s5 + $0x8] sm:$0xff] (%p1556_p6), %v1562_v55 }
 0x1fe   : > { %v1563_v58 = vld [vmem:[#allocation2 + $0x18] sm:$0xff] }
 0x1ff   : > { %1567 = vst [vmem:[%s2446_s5 + $0x10] sm:$0xff] %v1563_v58 }
 0x202   : > { %v1564_v61 = vld [vmem:[#allocation2 + $0x8] sm:$0xff] }
 0x203   : > { %1568 = vst [vmem:[%s2446_s5 + $0x18] sm:$0xff] %v1564_v61 }
 0x204 PF: > { %s15_s20 = sadd.s32 1, %s2148_s20   ;;  %s2447_s18 = smov %s2144_s19 }
 0x205   : > { %p12_p7 = scmp.ge.s32.totalorder %s15_s20, 6   ;;  %s2448_s19 = smov %s2450_s21 }
 0x207   :  { %14 = sbr.rel (!%p12_p7) target bundleno = 2 (0x2), region = 90 }

</bundles_post_ra>
